<compile_context>
chip_gen: v7x
topology: tpu7x:2x2x1
jax: 0.10.0
libtpu: 0.0.40
codegen_flags: <defaults>
</compile_context>

<pallas_src>
import functools
import math

import numpy as np
import jax
import jax.numpy as jnp
from jax.experimental import pallas as pl
from jax.experimental.pallas import tpu as pltpu

CLASS_NUMBER = 19
FEAT_DIM = 256
LANE = 128      # TPU lane width (last block dim pads to a multiple of this)
SUBLANE = 8     # TPU sublane width (second-minor block dim granularity)


def _round_up(x, m):
    return ((x + m - 1) // m) * m


def _cdiv(a, b):
    return -(-a // b)


@functools.lru_cache(maxsize=None)
def _vmem_limit_bytes():
    """Scoped-VMEM limit: physical capacity minus headroom (v7x-safe)."""
    try:
        cap = int(pltpu.get_tpu_info().vmem_capacity_bytes)
    except Exception:  # pragma: no cover - conservative fallback, safe on all gens
        cap = 64 * 2**20
    return int(max(32 * 2**20, min(cap - 12 * 2**20, 112 * 2**20)))


# ---------------------------------------------------------------------------
# Pallas kernel: fused 1x1 projection + coverage-count scaling, one spatial tile.
# ---------------------------------------------------------------------------
def _project_scale_kernel(x_ref, w_ref, b_ref, o_ref, *, cin):
    # x_ref: (tile_h, tile_w, cin+1)  -- channels 0..cin-1 = image, channel cin = count
    # w_ref: (cin, c_pad)             -- fused feat|score weights, lane-padded
    # b_ref: (1, c_pad)               -- fused feat|score bias, lane-padded
    # o_ref: (tile_h, tile_w, c_pad)  -- lane-dense output block
    x = x_ref[...]
    w = w_ref[...]
    b = b_ref[...]

    # Per-input-channel broadcast MAC on the VPU (cin == 3, static unroll).
    proj = x[:, :, 0:1] * w[None, 0:1, :]
    for c in range(1, cin):
        proj = proj + x[:, :, c:c + 1] * w[None, c:c + 1, :]
    proj = proj + b[None]                         # single fused bias add

    # Sum over overlapping sliding windows == coverage count * (W·x + b).
    o_ref[...] = x[:, :, cin:cin + 1] * proj


def _choose_spatial_tiles(ph, pw, c_img_pad, c_out_pad, budget_bytes):
    """Pick (tile_h, tile_w) so double-buffered blocks + temporaries fit VMEM.

    Per-pixel VMEM cost accounts for lane padding: the (h, w, 4) image block
    occupies h*w*128*4 B, the output block h*w*384*4 B, plus ~2 output-sized
    projection temporaries.  Both blocks are double-buffered by the pipeline.
    """
    per_pixel = 4 * (2 * c_img_pad + 4 * c_out_pad)
    ph8 = _round_up(ph, SUBLANE)
    pw8 = _round_up(pw, SUBLANE)
    max_pixels = max(budget_bytes // per_pixel, SUBLANE * SUBLANE)

    # Width tile first (full width if it fits with the minimum 8-row band).
    tile_w = min(pw8, max(SUBLANE, (max_pixels // SUBLANE) // SUBLANE * SUBLANE))
    n_w = _cdiv(pw8, tile_w)
    tile_w = _round_up(_cdiv(pw8, n_w), SUBLANE)
    pw_pad = tile_w * n_w

    # Then the tallest row band that still fits.
    max_h = max(SUBLANE, (max_pixels // tile_w) // SUBLANE * SUBLANE)
    tile_h = min(ph8, max_h)
    n_h = _cdiv(ph8, tile_h)
    tile_h = _round_up(_cdiv(ph8, n_h), SUBLANE)
    ph_pad = tile_h * n_h
    return (tile_h, n_h, ph_pad), (tile_w, n_w, pw_pad)


def _project_and_scale(img_aug, w_all, b_all, tiles):
    (tile_h, n_h, ph_pad), (tile_w, n_w, pw_pad) = tiles
    cin1 = img_aug.shape[-1]
    cin = cin1 - 1
    c_pad = w_all.shape[1]

    kernel = functools.partial(_project_scale_kernel, cin=cin)
    return pl.pallas_call(
        kernel,
        out_shape=jax.ShapeDtypeStruct((ph_pad, pw_pad, c_pad), jnp.float32),
        grid=(n_h, n_w),
        in_specs=[
            pl.BlockSpec((tile_h, tile_w, cin1), lambda i, j: (i, j, 0)),
            pl.BlockSpec((cin, c_pad), lambda i, j: (0, 0)),
            pl.BlockSpec((1, c_pad), lambda i, j: (0, 0)),
        ],
        out_specs=pl.BlockSpec((tile_h, tile_w, c_pad), lambda i, j: (i, j, 0)),
        compiler_params=pltpu.CompilerParams(
            # No cross-step accumulation remains: both spatial axes are parallel,
            # so v7x megacore splits evenly on the (balanced) spatial grid.
            dimension_semantics=("parallel", "parallel"),
            vmem_limit_bytes=_vmem_limit_bytes()),
    )(img_aug, w_all, b_all)


# ---------------------------------------------------------------------------
# Wrapper replicating SlidingEval.forward / scale_process glue (jit-friendly).
# ---------------------------------------------------------------------------
def _pad_and_windows(img_hwc, crop_size, stride_rate):
    H, W, _ = img_hwc.shape
    if isinstance(crop_size, int):
        crop_size = (crop_size, crop_size)
    ch, cw = crop_size
    # pad_image_to_shape (cv2.BORDER_CONSTANT, value=0)
    pad_h = max(ch - H, 0)
    pad_w = max(cw - W, 0)
    m0, m1 = pad_h // 2, pad_h // 2 + pad_h % 2
    m2, m3 = pad_w // 2, pad_w // 2 + pad_w % 2
    img_pad = jnp.pad(img_hwc, ((m0, m1), (m2, m3), (0, 0)))
    ph, pw = H + pad_h, W + pad_w
    stride0 = int(math.ceil(ch * stride_rate))
    stride1 = int(math.ceil(cw * stride_rate))
    r_grid = int(math.ceil((ph - ch) / stride0)) + 1
    c_grid = int(math.ceil((pw - cw) / stride1)) + 1
    sy_l, sx_l = [], []
    for gy in range(r_grid):
        for gx in range(c_grid):
            ey = min(gy * stride0 + ch, ph)
            ex = min(gx * stride1 + cw, pw)
            sy_l.append(ey - ch)
            sx_l.append(ex - cw)
    return img_pad, (m0, m1, m2, m3), (ch, cw), sy_l, sx_l


def _coverage_count(ph, pw, ch, cw, sy_l, sx_l):
    """Static per-pixel window-coverage counts (host numpy; shapes only)."""
    cnt = np.zeros((ph, pw), np.float32)
    for sy, sx in zip(sy_l, sx_l):
        cnt[sy:sy + ch, sx:sx + cw] += 1.0
    return cnt


def sliding_eval_forward(img_nchw, params, crop_size=16, stride_rate=0.5,
                         class_number=CLASS_NUMBER, feat_dim=FEAT_DIM):
    """Pallas implementation of SlidingEval.forward (val_id=1, sliding branch)."""
    wf, bf, ws, bs = params
    # img.squeeze().permute(1, 2, 0) -> HWC
    img = jnp.transpose(jnp.squeeze(img_nchw, axis=0), (1, 2, 0)).astype(jnp.float32)
    ori_rows, ori_cols, cin = img.shape

    img_pad, (m0, m1, m2, m3), (ch, cw), sy_l, sx_l = _pad_and_windows(
        img, crop_size, stride_rate)
    ph, pw, _ = img_pad.shape
    cnt = _coverage_count(ph, pw, ch, cw, sy_l, sx_l)   # values in {1,2,4,...}

    # Fuse feat + score heads into one lane-padded (384) weight so every output
    # store is a full unmasked 128-lane vst.
    c_used = feat_dim + class_number
    c_pad = _round_up(c_used, LANE)
    w_all = jnp.zeros((cin, c_pad), jnp.float32)
    w_all = w_all.at[:, :feat_dim].set(wf).at[:, feat_dim:c_used].set(ws)
    b_all = jnp.zeros((1, c_pad), jnp.float32)
    b_all = b_all.at[:, :feat_dim].set(bf[0]).at[:, feat_dim:c_used].set(bs[0])

    # The coverage count rides along as channel `cin` of the image block so it
    # shares the image's (already lane-padded) VMEM tile.
    img_aug = jnp.concatenate([img_pad, jnp.asarray(cnt)[:, :, None]], axis=-1)

    tiles = _choose_spatial_tiles(ph, pw, LANE, c_pad,
                                  int(0.75 * _vmem_limit_bytes()))
    (tile_h, n_h, ph_pad), (tile_w, n_w, pw_pad) = tiles
    img_aug = jnp.pad(img_aug, ((0, ph_pad - ph), (0, pw_pad - pw), (0, 0)))

    out = _project_and_scale(img_aug, w_all, b_all, tiles)   # (ph_pad, pw_pad, 384)

    # remove padding margins (score[:, m0:H-m1, m2:W-m3] in the original, CHW)
    feat = out[m0:ph - m1, m2:pw - m3, :feat_dim]
    score = out[m0:ph - m1, m2:pw - m3, feat_dim:c_used]
    # cv2.resize(..., (ori_cols, ori_rows), INTER_LINEAR): identity at native res.
    # forward(): processed_{feat,pred} += scale result; return CHW transposes.
    return jnp.transpose(feat, (2, 0, 1)), jnp.transpose(score, (2, 0, 1))


# ---------------------------------------------------------------------------
# Deterministic synthetic "model" parameters (1x1 conv heads).
# ---------------------------------------------------------------------------
def init_model_params(key, cin=3, feat_dim=FEAT_DIM, class_number=CLASS_NUMBER):
    k1, k2, k3, k4 = jax.random.split(key, 4)
    wf = jax.random.normal(k1, (cin, feat_dim), jnp.float32) * 0.1
    bf = jax.random.normal(k2, (1, feat_dim), jnp.float32) * 0.1
    ws = jax.random.normal(k3, (cin, class_number), jnp.float32) * 0.1
    bs = jax.random.normal(k4, (1, class_number), jnp.float32) * 0.1
    return wf, bf, ws, bs


# ---------------------------------------------------------------------------
# Pure-JAX reference mirroring the PyTorch per-window sliding loop exactly
# (explicit project + accumulate per window; no count-map shortcut).
# ---------------------------------------------------------------------------
def reference_forward(img_nchw, params, crop_size=16, stride_rate=0.5):
    wf, bf, ws, bs = params
    img = jnp.transpose(jnp.squeeze(img_nchw, axis=0), (1, 2, 0)).astype(jnp.float32)
    img_pad, (m0, m1, m2, m3), (ch, cw), sy_l, sx_l = _pad_and_windows(
        img, crop_size, stride_rate)
    ph, pw, _ = img_pad.shape
    feat = jnp.zeros((ph, pw, wf.shape[1]), jnp.float32)
    score = jnp.zeros((ph, pw, ws.shape[1]), jnp.float32)
    for y, x0 in zip(sy_l, sx_l):
        crop = img_pad[y:y + ch, x0:x0 + cw, :]
        f = (crop[:, :, :, None] * wf[None, None]).sum(axis=2) + bf[0]
        s = (crop[:, :, :, None] * ws[None, None]).sum(axis=2) + bs[0]
        feat = feat.at[y:y + ch, x0:x0 + cw, :].add(f)
        score = score.at[y:y + ch, x0:x0 + cw, :].add(s)
    feat = feat[m0:ph - m1, m2:pw - m3, :]
    score = score[m0:ph - m1, m2:pw - m3, :]
    return jnp.transpose(feat, (2, 0, 1)), jnp.transpose(score, (2, 0, 1))


if __name__ == "__main__":
    key = jax.random.PRNGKey(0)
    k_img, k_par = jax.random.split(key)

    # Small shapes: one image, 3 channels, 24x24 spatial, crop 16, stride 0.5
    # -> 2x2 = 4 overlapping sliding windows (coverage counts in {1,2,4}).
    x = jax.random.normal(k_img, (1, 3, 24, 24), jnp.float32)
    params = init_model_params(k_par)

    forward = jax.jit(functools.partial(sliding_eval_forward,
                                        crop_size=16, stride_rate=0.5))
    feat, pred = forward(x, params)
    feat, pred = jax.block_until_ready((feat, pred))
    assert feat.shape == (FEAT_DIM, 24, 24), feat.shape
    assert pred.shape == (CLASS_NUMBER, 24, 24), pred.shape

    feat_ref, pred_ref = reference_forward(x, params, crop_size=16, stride_rate=0.5)
    np.testing.assert_allclose(np.asarray(feat), np.asarray(feat_ref),
                               rtol=1e-3, atol=1e-4)
    np.testing.assert_allclose(np.asarray(pred), np.asarray(pred_ref),
                               rtol=1e-3, atol=1e-4)

    print("KERNEL_OK")
</pallas_src>

<mosaic_0001>
module attributes {stable_mosaic.version = 11 : i64} {
  func.func @_project_scale_kernel(%arg0: i32, %arg1: i32, %arg2: memref<24x24x4xf32, #tpu.memory_space<vmem>>, %arg3: memref<3x384xf32, #tpu.memory_space<vmem>>, %arg4: memref<1x384xf32, #tpu.memory_space<vmem>>, %arg5: memref<24x24x384xf32, #tpu.memory_space<vmem>>) attributes {dimension_semantics = [#tpu.dimension_semantics<parallel>, #tpu.dimension_semantics<parallel>], iteration_bounds = array<i64: 1, 1>, scalar_prefetch = 0 : i64, scratch_operands = 0 : i64, tpu.core_type = #tpu.core_type<tc>, window_params = [{transform_indices = @transform_0, window_bounds = array<i64: 24, 24, 4>}, {pipeline_mode = #tpu.pipeline_mode<synchronous>, transform_indices = @transform_1, window_bounds = array<i64: 3, 384>}, {pipeline_mode = #tpu.pipeline_mode<synchronous>, transform_indices = @transform_2, window_bounds = array<i64: 1, 384>}, {transform_indices = @transform_3, window_bounds = array<i64: 24, 24, 384>}]} {
    %c0 = arith.constant 0 : index
    %c0_0 = arith.constant 0 : index
    %c0_1 = arith.constant 0 : index
    %0 = vector.load %arg2[%c0, %c0_0, %c0_1] : memref<24x24x4xf32, #tpu.memory_space<vmem>>, vector<24x24x4xf32>
    %c0_2 = arith.constant 0 : index
    %c0_3 = arith.constant 0 : index
    %1 = vector.load %arg3[%c0_2, %c0_3] : memref<3x384xf32, #tpu.memory_space<vmem>>, vector<3x384xf32>
    %c0_4 = arith.constant 0 : index
    %c0_5 = arith.constant 0 : index
    %2 = vector.load %arg4[%c0_4, %c0_5] : memref<1x384xf32, #tpu.memory_space<vmem>>, vector<1x384xf32>
    %3 = vector.extract_strided_slice %0 {offsets = [0, 0, 0], sizes = [24, 24, 1], strides = [1, 1, 1]} : vector<24x24x4xf32> to vector<24x24x1xf32>
    %4 = vector.extract_strided_slice %1 {offsets = [0, 0], sizes = [1, 384], strides = [1, 1]} : vector<3x384xf32> to vector<1x384xf32>
    %5 = vector.shape_cast %4 : vector<1x384xf32> to vector<1x1x384xf32>
    %6 = vector.broadcast %3 : vector<24x24x1xf32> to vector<24x24x384xf32>
    %7 = vector.broadcast %5 : vector<1x1x384xf32> to vector<24x24x384xf32>
    %8 = arith.mulf %6, %7 : vector<24x24x384xf32>
    %9 = vector.extract_strided_slice %0 {offsets = [0, 0, 1], sizes = [24, 24, 1], strides = [1, 1, 1]} : vector<24x24x4xf32> to vector<24x24x1xf32>
    %10 = vector.extract_strided_slice %1 {offsets = [1, 0], sizes = [1, 384], strides = [1, 1]} : vector<3x384xf32> to vector<1x384xf32>
    %11 = vector.shape_cast %10 : vector<1x384xf32> to vector<1x1x384xf32>
    %12 = vector.broadcast %9 : vector<24x24x1xf32> to vector<24x24x384xf32>
    %13 = vector.broadcast %11 : vector<1x1x384xf32> to vector<24x24x384xf32>
    %14 = arith.mulf %12, %13 : vector<24x24x384xf32>
    %15 = arith.addf %8, %14 : vector<24x24x384xf32>
    %16 = vector.extract_strided_slice %0 {offsets = [0, 0, 2], sizes = [24, 24, 1], strides = [1, 1, 1]} : vector<24x24x4xf32> to vector<24x24x1xf32>
    %17 = vector.extract_strided_slice %1 {offsets = [2, 0], sizes = [1, 384], strides = [1, 1]} : vector<3x384xf32> to vector<1x384xf32>
    %18 = vector.shape_cast %17 : vector<1x384xf32> to vector<1x1x384xf32>
    %19 = vector.broadcast %16 : vector<24x24x1xf32> to vector<24x24x384xf32>
    %20 = vector.broadcast %18 : vector<1x1x384xf32> to vector<24x24x384xf32>
    %21 = arith.mulf %19, %20 : vector<24x24x384xf32>
    %22 = arith.addf %15, %21 : vector<24x24x384xf32>
    %23 = vector.shape_cast %2 : vector<1x384xf32> to vector<1x1x384xf32>
    %24 = vector.broadcast %23 : vector<1x1x384xf32> to vector<24x24x384xf32>
    %25 = arith.addf %22, %24 : vector<24x24x384xf32>
    %26 = vector.extract_strided_slice %0 {offsets = [0, 0, 3], sizes = [24, 24, 1], strides = [1, 1, 1]} : vector<24x24x4xf32> to vector<24x24x1xf32>
    %27 = vector.broadcast %26 : vector<24x24x1xf32> to vector<24x24x384xf32>
    %28 = arith.mulf %27, %25 : vector<24x24x384xf32>
    %c0_6 = arith.constant 0 : index
    %c0_7 = arith.constant 0 : index
    %c0_8 = arith.constant 0 : index
    %29 = vector.load %arg5[%c0_6, %c0_7, %c0_8] : memref<24x24x384xf32, #tpu.memory_space<vmem>>, vector<24x24x384xf32>
    tpu.vector_store %arg5[%c0_6, %c0_7, %c0_8], %28 {strides = array<i32>} : memref<24x24x384xf32, #tpu.memory_space<vmem>>, vector<24x24x384xf32>,
    return
  }
  func.func @transform_0(%arg0: i32, %arg1: i32) -> (i32, i32, i32) {
    %c0_i32 = arith.constant 0 : i32
    %c0_i32_0 = arith.constant 0 : i32
    return %arg0, %arg1, %c0_i32 : i32, i32, i32
  }
  func.func @transform_1(%arg0: i32, %arg1: i32) -> (i32, i32) {
    %c0_i32 = arith.constant 0 : i32
    %c0_i32_0 = arith.constant 0 : i32
    %c0_i32_1 = arith.constant 0 : i32
    return %c0_i32, %c0_i32_0 : i32, i32
  }
  func.func @transform_2(%arg0: i32, %arg1: i32) -> (i32, i32) {
    %c0_i32 = arith.constant 0 : i32
    %c0_i32_0 = arith.constant 0 : i32
    %c0_i32_1 = arith.constant 0 : i32
    return %c0_i32, %c0_i32_0 : i32, i32
  }
  func.func @transform_3(%arg0: i32, %arg1: i32) -> (i32, i32, i32) {
    %c0_i32 = arith.constant 0 : i32
    %c0_i32_0 = arith.constant 0 : i32
    return %arg0, %arg1, %c0_i32 : i32, i32, i32
  }
}

</mosaic_0001>

<bundles_post_ra>
// kernel: sliding_eval_forward.1
= control target key start
LH: loop header
LB: loop body
LE: loop exit
PB: predicated region body
PF: predicated region fallthrough
CT: control target
= control target key end

     0   :  { %v3260_v0 = vmov 0   ;;  %s8901_s0 = inlined_call_operand.vmem [shape: f32[24,24,4], index: 0, kind: input, shape index: {}]   ;;  %s8902_s1 = inlined_call_operand.vmem [shape: f32[3,384], index: 1, kind: input, shape index: {}]   ;;  %s8903_s2 = inlined_call_operand.vmem [shape: f32[1,384], index: 2, kind: input, shape index: {}]   ;;  %s8904_s3 = inlined_call_operand.vmem [shape: f32[24,24,384], index: 3, kind: output, shape index: {}]  }
   0x1   :  { %3149 = vset.pattern.permute.xlu1 %v3260_v0  ;;  %3148 = vset.pattern.permute.xlu0 %v3260_v0  ;;  %v3287_v1 = vld [vmem:[%s8901_s0 + $0x10] sm:$0xff]  ;;  %v3292_v2 = vld [vmem:[%s8901_s0] sm:$0xff]  ;;  %v3299_v3 = vld [vmem:[%s8901_s0 + $0x18] sm:$0xff] }
   0x2   :  { %101 = vperm.xlu1 %3149, %v3287_v1   ;;  %91 = vperm.xlu0 %3148, %v3292_v2   ;;  %v3304_v4 = vld [vmem:[%s8901_s0 + $0x8] sm:$0xff]  ;;  %v3316_v6 = vld [vmem:[%s8901_s0 + $0x20] sm:$0xff]  ;;  %v3323_v7 = vld [vmem:[%s8901_s0 + $0x38] sm:$0xff] }
   0x3   :  { %v3311_v5 = vld [vmem:[%s8901_s0 + $0x28] sm:$0xff]  ;;  %v3328_v8 = vld [vmem:[%s8901_s0 + $0x30] sm:$0xff]  ;;  %v3340_v10 = vld [vmem:[%s8901_s0 + $0x40] sm:$0xff] }
   0x4   :  { %v3335_v9 = vld [vmem:[%s8901_s0 + $0x48] sm:$0xff]  ;;  %v3347_v11 = vld [vmem:[%s8901_s0 + $0x58] sm:$0xff]  ;;  %v3352_v12 = vld [vmem:[%s8901_s0 + $0x50] sm:$0xff] }
   0x5   :  { %v3359_v13 = vld [vmem:[%s8901_s0 + $0x68] sm:$0xff]  ;;  %v3364_v14 = vld [vmem:[%s8901_s0 + $0x60] sm:$0xff]  ;;  %v3371_v15 = vld [vmem:[%s8901_s0 + $0x78] sm:$0xff] }
   0x6   :  { %106 = vperm.xlu1 %3149, %v3299_v3   ;;  %96 = vperm.xlu0 %3148, %v3304_v4   ;;  %v3376_v16 = vld [vmem:[%s8901_s0 + $0x70] sm:$0xff]  ;;  %v3383_v17 = vld [vmem:[%s8901_s0 + $0x88] sm:$0xff]  ;;  %v3388_v18 = vld [vmem:[%s8901_s0 + $0x80] sm:$0xff] }
   0x7   :  { %v3395_v19 = vld [vmem:[%s8901_s0 + $0x98] sm:$0xff]  ;;  %v3400_v20 = vld [vmem:[%s8901_s0 + $0x90] sm:$0xff]  ;;  %v3407_v21 = vld [vmem:[%s8901_s0 + $0xa8] sm:$0xff] }
   0x8   :  { %v3412_v22 = vld [vmem:[%s8901_s0 + $0xa0] sm:$0xff]  ;;  %v3419_v23 = vld [vmem:[%s8901_s0 + $0xb8] sm:$0xff]  ;;  %v3424_v24 = vld [vmem:[%s8901_s0 + $0xb0] sm:$0xff] }
   0x9   :  { %v3431_v25 = vld [vmem:[%s8901_s0 + $0xc8] sm:$0xff]  ;;  %v3436_v26 = vld [vmem:[%s8901_s0 + $0xc0] sm:$0xff]  ;;  %v3443_v27 = vld [vmem:[%s8901_s0 + $0xd8] sm:$0xff] }
   0xa   :  { %116 = vperm.xlu1 %3149, %v3311_v5   ;;  %111 = vperm.xlu0 %3148, %v3316_v6   ;;  %v3448_v28 = vld [vmem:[%s8901_s0 + $0xd0] sm:$0xff]  ;;  %v3455_v29 = vld [vmem:[%s8901_s0 + $0xe8] sm:$0xff]  ;;  %v3460_v30 = vld [vmem:[%s8901_s0 + $0xe0] sm:$0xff] }
   0xb   :  { %v3467_v31 = vld [vmem:[%s8901_s0 + $0xf8] sm:$0xff]  ;;  %v3472_v32 = vld [vmem:[%s8901_s0 + $0xf0] sm:$0xff]  ;;  %v3479_v33 = vld [vmem:[%s8901_s0 + $0x108] sm:$0xff] }
   0xc   :  { %9073 = vst [vmem:[#allocation2_spill] sm:$0xff] %v3467_v31  ;;  %9074 = vst [vmem:[#allocation3_spill] sm:$0xff] %v3479_v33  ;;  %v3484_v34 = vld [vmem:[%s8901_s0 + $0x100] sm:$0xff]  ;;  %v3491_v35 = vld [vmem:[%s8901_s0 + $0x118] sm:$0xff] }
   0xd   :  { %9075 = vst [vmem:[#allocation4_spill] sm:$0xff] %v3491_v35  ;;  %v3496_v36 = vld [vmem:[%s8901_s0 + $0x110] sm:$0xff]  ;;  %v3503_v37 = vld [vmem:[%s8901_s0 + $0x128] sm:$0xff]  ;;  %v3508_v38 = vld [vmem:[%s8901_s0 + $0x120] sm:$0xff] }
   0xe   :  { %126 = vperm.xlu1 %3149, %v3323_v7   ;;  %121 = vperm.xlu0 %3148, %v3328_v8   ;;  %9076 = vst [vmem:[#allocation5_spill] sm:$0xff] %v3496_v36  ;;  %9077 = vst [vmem:[#allocation6_spill] sm:$0xff] %v3503_v37  ;;  %v3515_v39 = vld [vmem:[%s8901_s0 + $0x138] sm:$0xff]  ;;  %v3520_v40 = vld [vmem:[%s8901_s0 + $0x130] sm:$0xff] }
   0xf   :  { %9078 = vst [vmem:[#allocation7_spill] sm:$0xff] %v3508_v38  ;;  %9079 = vst [vmem:[#allocation8_spill] sm:$0xff] %v3520_v40  ;;  %v3527_v41 = vld [vmem:[%s8901_s0 + $0x148] sm:$0xff]  ;;  %v3532_v42 = vld [vmem:[%s8901_s0 + $0x140] sm:$0xff] }
  0x10   :  { %9080 = vst [vmem:[#allocation9_spill] sm:$0xff] %v3532_v42  ;;  %v3539_v43 = vld [vmem:[%s8901_s0 + $0x158] sm:$0xff]  ;;  %v3544_v44 = vld [vmem:[%s8901_s0 + $0x150] sm:$0xff]  ;;  %v3551_v45 = vld [vmem:[%s8901_s0 + $0x168] sm:$0xff] }
  0x11   :  { %v3556_v46 = vld [vmem:[%s8901_s0 + $0x160] sm:$0xff]  ;;  %v3563_v47 = vld [vmem:[%s8901_s0 + $0x178] sm:$0xff]  ;;  %v3568_v48 = vld [vmem:[%s8901_s0 + $0x170] sm:$0xff] }
  0x12   :  { %136 = vperm.xlu1 %3149, %v3335_v9   ;;  %131 = vperm.xlu0 %3148, %v3340_v10   ;;  %v3575_v49 = vld [vmem:[%s8901_s0 + $0x188] sm:$0xff]  ;;  %v3580_v50 = vld [vmem:[%s8901_s0 + $0x180] sm:$0xff]  ;;  %v3587_v51 = vld [vmem:[%s8901_s0 + $0x198] sm:$0xff] }
  0x13   :  { %v3592_v52 = vld [vmem:[%s8901_s0 + $0x190] sm:$0xff]  ;;  %v3599_v53 = vld [vmem:[%s8901_s0 + $0x1a8] sm:$0xff]  ;;  %v3604_v54 = vld [vmem:[%s8901_s0 + $0x1a0] sm:$0xff] }
  0x14   :  { %v3611_v55 = vld [vmem:[%s8901_s0 + $0x1b8] sm:$0xff]  ;;  %v3616_v56 = vld [vmem:[%s8901_s0 + $0x1b0] sm:$0xff]  ;;  %v3623_v57 = vld [vmem:[%s8901_s0 + $0x1c8] sm:$0xff] }
  0x15   :  { %9081 = vst [vmem:[#allocation10_spill] sm:$0xff] %v3623_v57  ;;  %v3628_v58 = vld [vmem:[%s8901_s0 + $0x1c0] sm:$0xff]  ;;  %v3635_v59 = vld [vmem:[%s8901_s0 + $0x1d8] sm:$0xff]  ;;  %v3640_v60 = vld [vmem:[%s8901_s0 + $0x1d0] sm:$0xff] }
  0x16   :  { %146 = vperm.xlu1 %3149, %v3347_v11   ;;  %141 = vperm.xlu0 %3148, %v3352_v12   ;;  %9082 = vst [vmem:[#allocation11_spill] sm:$0xff] %v3628_v58  ;;  %9083 = vst [vmem:[#allocation12_spill] sm:$0xff] %v3635_v59  ;;  %v3647_v61 = vld [vmem:[%s8901_s0 + $0x1e8] sm:$0xff]  ;;  %v3652_v62 = vld [vmem:[%s8901_s0 + $0x1e0] sm:$0xff] }
  0x17   :  { %9084 = vst [vmem:[#allocation13_spill] sm:$0xff] %v3640_v60  ;;  %9085 = vst [vmem:[#allocation14_spill] sm:$0xff] %v3647_v61  ;;  %v3659_v63 = vld [vmem:[%s8901_s0 + $0x1f8] sm:$0xff]  ;;  %v3664_v0 = vld [vmem:[%s8901_s0 + $0x1f0] sm:$0xff] }
  0x18   :  { %9086 = vst [vmem:[#allocation15_spill] sm:$0xff] %v3652_v62  ;;  %9087 = vst [vmem:[#allocation16_spill] sm:$0xff] %v3659_v63 }
  0x19   :  { %9088 = vst [vmem:[#allocation17_spill] sm:$0xff] %v3664_v0 }
  0x1a   :  { %156 = vperm.xlu1 %3149, %v3359_v13   ;;  %151 = vperm.xlu0 %3148, %v3364_v14  }
  0x1e   :  { %166 = vperm.xlu1 %3149, %v3371_v15   ;;  %161 = vperm.xlu0 %3148, %v3376_v16  }
  0x22   :  { %176 = vperm.xlu1 %3149, %v3383_v17   ;;  %171 = vperm.xlu0 %3148, %v3388_v18  }
  0x26   :  { %186 = vperm.xlu1 %3149, %v3395_v19   ;;  %181 = vperm.xlu0 %3148, %v3400_v20  }
  0x2a   :  { %196 = vperm.xlu1 %3149, %v3407_v21   ;;  %191 = vperm.xlu0 %3148, %v3412_v22  }
  0x2e   :  { %206 = vperm.xlu1 %3149, %v3419_v23   ;;  %201 = vperm.xlu0 %3148, %v3424_v24  }
  0x32   :  { %216 = vperm.xlu1 %3149, %v3431_v25   ;;  %211 = vperm.xlu0 %3148, %v3436_v26  }
  0x36   :  { %226 = vperm.xlu1 %3149, %v3443_v27   ;;  %221 = vperm.xlu0 %3148, %v3448_v28  }
  0x3a   :  { %236 = vperm.xlu1 %3149, %v3455_v29   ;;  %231 = vperm.xlu0 %3148, %v3460_v30  }
  0x3e   :  { %246 = vperm.xlu1 %3149, %v3467_v31   ;;  %241 = vperm.xlu0 %3148, %v3472_v32  }
  0x42   :  { %256 = vperm.xlu1 %3149, %v3479_v33   ;;  %251 = vperm.xlu0 %3148, %v3484_v34  }
  0x46   :  { %266 = vperm.xlu1 %3149, %v3491_v35   ;;  %261 = vperm.xlu0 %3148, %v3496_v36  }
  0x4a   :  { %276 = vperm.xlu1 %3149, %v3503_v37   ;;  %271 = vperm.xlu0 %3148, %v3508_v38  }
  0x4e   :  { %286 = vperm.xlu1 %3149, %v3515_v39   ;;  %281 = vperm.xlu0 %3148, %v3520_v40  }
  0x52   :  { %296 = vperm.xlu1 %3149, %v3527_v41   ;;  %291 = vperm.xlu0 %3148, %v3532_v42  }
  0x56   :  { %306 = vperm.xlu1 %3149, %v3539_v43   ;;  %301 = vperm.xlu0 %3148, %v3544_v44  }
  0x5a   :  { %316 = vperm.xlu1 %3149, %v3551_v45   ;;  %311 = vperm.xlu0 %3148, %v3556_v46  }
  0x5e   :  { %326 = vperm.xlu1 %3149, %v3563_v47   ;;  %321 = vperm.xlu0 %3148, %v3568_v48  }
  0x62   :  { %336 = vperm.xlu1 %3149, %v3575_v49   ;;  %331 = vperm.xlu0 %3148, %v3580_v50  }
  0x66   :  { %346 = vperm.xlu1 %3149, %v3587_v51   ;;  %341 = vperm.xlu0 %3148, %v3592_v52  }
  0x6a   :  { %356 = vperm.xlu1 %3149, %v3599_v53   ;;  %351 = vperm.xlu0 %3148, %v3604_v54  }
  0x6e   :  { %366 = vperm.xlu1 %3149, %v3611_v55   ;;  %361 = vperm.xlu0 %3148, %v3616_v56  }
  0x72   :  { %376 = vperm.xlu1 %3149, %v3623_v57   ;;  %371 = vperm.xlu0 %3148, %v3628_v58  }
  0x76   :  { %386 = vperm.xlu1 %3149, %v3635_v59   ;;  %381 = vperm.xlu0 %3148, %v3640_v60  }
  0x7a   :  { %396 = vperm.xlu1 %3149, %v3647_v61   ;;  %391 = vperm.xlu0 %3148, %v3652_v62   ;;  %v3671_v61 = vld [vmem:[%s8901_s0 + $0x208] sm:$0xff]  ;;  %v3676_v62 = vld [vmem:[%s8901_s0 + $0x200] sm:$0xff] }
  0x7b   :  { %9089 = vst [vmem:[#allocation18_spill] sm:$0xff] %v3671_v61  ;;  %9090 = vst [vmem:[#allocation19_spill] sm:$0xff] %v3676_v62 }
  0x7e   :  { %406 = vperm.xlu1 %3149, %v3659_v63   ;;  %401 = vperm.xlu0 %3148, %v3664_v0   ;;  %v3687_v63 = vld [vmem:[%s8901_s0 + $0x218] sm:$0xff]  ;;  %v3692_v0 = vld [vmem:[%s8901_s0 + $0x210] sm:$0xff] }
  0x7f   :  { %9093 = vst [vmem:[#allocation22_spill] sm:$0xff] %v3687_v63  ;;  %9094 = vst [vmem:[#allocation23_spill] sm:$0xff] %v3692_v0 }
  0x81   :  { %v3678_v59 = vpop.permute.xlu1 %101  ;;  %v3680_v60 = vpop.permute.xlu0 %91 }
  0x82   :  { %9091 = vst [vmem:[#allocation20_spill] sm:$0xff] %v3678_v59  ;;  %9092 = vst [vmem:[#allocation21_spill] sm:$0xff] %v3680_v60  ;;  %416 = vperm.xlu1 %3149, %v3671_v61   ;;  %411 = vperm.xlu0 %3148, %v3676_v62   ;;  %v3703_v60 = vld [vmem:[%s8901_s0 + $0x228] sm:$0xff]  ;;  %v3708_v59 = vld [vmem:[%s8901_s0 + $0x220] sm:$0xff] }
  0x83   :  { %9097 = vst [vmem:[#allocation26_spill] sm:$0xff] %v3703_v60  ;;  %9098 = vst [vmem:[#allocation27_spill] sm:$0xff] %v3708_v59 }
  0x85   :  { %v3694_v57 = vpop.permute.xlu1 %106  ;;  %v3696_v58 = vpop.permute.xlu0 %96 }
  0x86   :  { %9095 = vst [vmem:[#allocation24_spill] sm:$0xff] %v3694_v57  ;;  %9096 = vst [vmem:[#allocation25_spill] sm:$0xff] %v3696_v58  ;;  %426 = vperm.xlu1 %3149, %v3687_v63   ;;  %421 = vperm.xlu0 %3148, %v3692_v0   ;;  %v3719_v58 = vld [vmem:[%s8901_s0 + $0x238] sm:$0xff]  ;;  %v3724_v57 = vld [vmem:[%s8901_s0 + $0x230] sm:$0xff] }
  0x89   :  { %v3710_v61 = vpop.permute.xlu1 %116  ;;  %v3712_v62 = vpop.permute.xlu0 %111 }
  0x8a   :  { %9099 = vst [vmem:[#allocation28_spill] sm:$0xff] %v3710_v61  ;;  %9100 = vst [vmem:[#allocation29_spill] sm:$0xff] %v3712_v62  ;;  %436 = vperm.xlu1 %3149, %v3703_v60   ;;  %431 = vperm.xlu0 %3148, %v3708_v59   ;;  %v3261_v60 = vmov 1  }
  0x8d   :  { %v3726_v63 = vpop.permute.xlu1 %126  ;;  %v3728_v0 = vpop.permute.xlu0 %121 }
  0x8e   :  { %9101 = vst [vmem:[#allocation30_spill] sm:$0xff] %v3726_v63  ;;  %9102 = vst [vmem:[#allocation31_spill] sm:$0xff] %v3728_v0  ;;  %446 = vperm.xlu1 %3149, %v3719_v58   ;;  %441 = vperm.xlu0 %3148, %v3724_v57  }
  0x91   :  { %v3732_v62 = vpop.permute.xlu1 %136  ;;  %v3734_v61 = vpop.permute.xlu0 %131 }
  0x92   :  { %9103 = vst [vmem:[#allocation32_spill] sm:$0xff] %v3732_v62  ;;  %9104 = vst [vmem:[#allocation33_spill] sm:$0xff] %v3734_v61  ;;  %3151 = vset.pattern.permute.xlu1 %v3261_v60  ;;  %3150 = vset.pattern.permute.xlu0 %v3261_v60 }
  0x93   :  { %699 = vperm.xlu1 %3151, %v3304_v4   ;;  %695 = vperm.xlu0 %3150, %v3292_v2  }
  0x95   :  { %v3738_v59 = vpop.permute.xlu1 %146  ;;  %v3740_v63 = vpop.permute.xlu0 %141 }
  0x96   :  { %9105 = vst [vmem:[#allocation34_spill] sm:$0xff] %v3738_v59  ;;  %9106 = vst [vmem:[#allocation35_spill] sm:$0xff] %v3740_v63 }
  0x97   :  { %703 = vperm.xlu1 %3151, %v3287_v1   ;;  %707 = vperm.xlu0 %3150, %v3299_v3  }
  0x99   :  { %v3744_v0 = vpop.permute.xlu1 %156  ;;  %v3746_v62 = vpop.permute.xlu0 %151 }
  0x9a   :  { %9107 = vst [vmem:[#allocation36_spill] sm:$0xff] %v3744_v0  ;;  %9108 = vst [vmem:[#allocation37_spill] sm:$0xff] %v3746_v62 }
  0x9b   :  { %711 = vperm.xlu1 %3151, %v3316_v6   ;;  %715 = vperm.xlu0 %3150, %v3311_v5  }
  0x9d   :  { %v3750_v60 = vpop.permute.xlu1 %166  ;;  %v3752_v61 = vpop.permute.xlu0 %161 }
  0x9e   :  { %9109 = vst [vmem:[#allocation38_spill] sm:$0xff] %v3750_v60  ;;  %9110 = vst [vmem:[#allocation39_spill] sm:$0xff] %v3752_v61 }
  0x9f   :  { %719 = vperm.xlu1 %3151, %v3328_v8   ;;  %723 = vperm.xlu0 %3150, %v3323_v7  }
  0xa1   :  { %v3756_v63 = vpop.permute.xlu1 %176  ;;  %v3758_v59 = vpop.permute.xlu0 %171 }
  0xa2   :  { %9111 = vst [vmem:[#allocation40_spill] sm:$0xff] %v3756_v63  ;;  %9112 = vst [vmem:[#allocation41_spill] sm:$0xff] %v3758_v59 }
  0xa3   :  { %727 = vperm.xlu1 %3151, %v3340_v10   ;;  %731 = vperm.xlu0 %3150, %v3335_v9  }
  0xa5   :  { %v3762_v62 = vpop.permute.xlu1 %186  ;;  %v3764_v0 = vpop.permute.xlu0 %181 }
  0xa6   :  { %9113 = vst [vmem:[#allocation42_spill] sm:$0xff] %v3762_v62  ;;  %9114 = vst [vmem:[#allocation43_spill] sm:$0xff] %v3764_v0 }
  0xa7   :  { %735 = vperm.xlu1 %3151, %v3352_v12   ;;  %739 = vperm.xlu0 %3150, %v3347_v11  }
  0xa9   :  { %v3768_v61 = vpop.permute.xlu1 %196  ;;  %v3770_v60 = vpop.permute.xlu0 %191 }
  0xaa   :  { %9115 = vst [vmem:[#allocation44_spill] sm:$0xff] %v3768_v61  ;;  %9116 = vst [vmem:[#allocation45_spill] sm:$0xff] %v3770_v60 }
  0xab   :  { %743 = vperm.xlu1 %3151, %v3364_v14   ;;  %747 = vperm.xlu0 %3150, %v3359_v13  }
  0xad   :  { %v3774_v59 = vpop.permute.xlu1 %206  ;;  %v3776_v63 = vpop.permute.xlu0 %201 }
  0xae   :  { %9117 = vst [vmem:[#allocation46_spill] sm:$0xff] %v3774_v59  ;;  %9118 = vst [vmem:[#allocation47_spill] sm:$0xff] %v3776_v63 }
  0xaf   :  { %751 = vperm.xlu1 %3151, %v3376_v16   ;;  %755 = vperm.xlu0 %3150, %v3371_v15  }
  0xb1   :  { %v3780_v0 = vpop.permute.xlu1 %216  ;;  %v3782_v62 = vpop.permute.xlu0 %211 }
  0xb2   :  { %9119 = vst [vmem:[#allocation48_spill] sm:$0xff] %v3780_v0  ;;  %9120 = vst [vmem:[#allocation49_spill] sm:$0xff] %v3782_v62 }
  0xb3   :  { %759 = vperm.xlu1 %3151, %v3388_v18   ;;  %763 = vperm.xlu0 %3150, %v3383_v17  }
  0xb5   :  { %v3786_v60 = vpop.permute.xlu1 %226  ;;  %v3788_v61 = vpop.permute.xlu0 %221 }
  0xb6   :  { %9121 = vst [vmem:[#allocation50_spill] sm:$0xff] %v3786_v60  ;;  %9122 = vst [vmem:[#allocation51_spill] sm:$0xff] %v3788_v61 }
  0xb7   :  { %767 = vperm.xlu1 %3151, %v3400_v20   ;;  %771 = vperm.xlu0 %3150, %v3395_v19  }
  0xb9   :  { %v3792_v63 = vpop.permute.xlu1 %236  ;;  %v3794_v59 = vpop.permute.xlu0 %231 }
  0xba   :  { %9123 = vst [vmem:[#allocation52_spill] sm:$0xff] %v3792_v63  ;;  %9124 = vst [vmem:[#allocation53_spill] sm:$0xff] %v3794_v59 }
  0xbb   :  { %775 = vperm.xlu1 %3151, %v3412_v22   ;;  %779 = vperm.xlu0 %3150, %v3407_v21  }
  0xbd   :  { %v3798_v62 = vpop.permute.xlu1 %246  ;;  %v3800_v0 = vpop.permute.xlu0 %241 }
  0xbe   :  { %9125 = vst [vmem:[#allocation54_spill] sm:$0xff] %v3798_v62  ;;  %9126 = vst [vmem:[#allocation55_spill] sm:$0xff] %v3800_v0 }
  0xbf   :  { %783 = vperm.xlu1 %3151, %v3424_v24   ;;  %787 = vperm.xlu0 %3150, %v3419_v23  }
  0xc1   :  { %v3804_v61 = vpop.permute.xlu1 %256  ;;  %v3806_v60 = vpop.permute.xlu0 %251 }
  0xc2   :  { %9127 = vst [vmem:[#allocation56_spill] sm:$0xff] %v3804_v61  ;;  %9128 = vst [vmem:[#allocation57_spill] sm:$0xff] %v3806_v60 }
  0xc3   :  { %791 = vperm.xlu1 %3151, %v3436_v26   ;;  %795 = vperm.xlu0 %3150, %v3431_v25  }
  0xc5   :  { %v3810_v59 = vpop.permute.xlu1 %266  ;;  %v3812_v63 = vpop.permute.xlu0 %261 }
  0xc6   :  { %9129 = vst [vmem:[#allocation58_spill] sm:$0xff] %v3810_v59  ;;  %9130 = vst [vmem:[#allocation59_spill] sm:$0xff] %v3812_v63 }
  0xc7   :  { %799 = vperm.xlu1 %3151, %v3448_v28   ;;  %803 = vperm.xlu0 %3150, %v3443_v27  }
  0xc9   :  { %v3816_v0 = vpop.permute.xlu1 %276  ;;  %v3818_v62 = vpop.permute.xlu0 %271 }
  0xca   :  { %9131 = vst [vmem:[#allocation60_spill] sm:$0xff] %v3816_v0  ;;  %9132 = vst [vmem:[#allocation61_spill] sm:$0xff] %v3818_v62 }
  0xcb   :  { %807 = vperm.xlu1 %3151, %v3460_v30   ;;  %811 = vperm.xlu0 %3150, %v3455_v29  }
  0xcd   :  { %v3822_v60 = vpop.permute.xlu1 %286  ;;  %v3824_v61 = vpop.permute.xlu0 %281 }
  0xce   :  { %9133 = vst [vmem:[#allocation62_spill] sm:$0xff] %v3822_v60  ;;  %9134 = vst [vmem:[#allocation63_spill] sm:$0xff] %v3824_v61 }
  0xcf   :  { %815 = vperm.xlu1 %3151, %v3472_v32   ;;  %819 = vperm.xlu0 %3150, %v3467_v31  }
  0xd1   :  { %v3828_v63 = vpop.permute.xlu1 %296  ;;  %v3830_v59 = vpop.permute.xlu0 %291 }
  0xd2   :  { %9135 = vst [vmem:[#allocation64_spill] sm:$0xff] %v3830_v59 }
  0xd3   :  { %823 = vperm.xlu1 %3151, %v3484_v34   ;;  %827 = vperm.xlu0 %3150, %v3479_v33  }
  0xd5   :  { %v3834_v62 = vpop.permute.xlu1 %306  ;;  %v3836_v0 = vpop.permute.xlu0 %301 }
  0xd7   :  { %831 = vperm.xlu1 %3151, %v3496_v36   ;;  %835 = vperm.xlu0 %3150, %v3491_v35  }
  0xd9   :  { %v3840_v61 = vpop.permute.xlu1 %316  ;;  %v3842_v60 = vpop.permute.xlu0 %311 }
  0xdb   :  { %839 = vperm.xlu1 %3151, %v3508_v38   ;;  %843 = vperm.xlu0 %3150, %v3503_v37  }
  0xdd   :  { %v3846_v31 = vpop.permute.xlu1 %326  ;;  %v3848_v59 = vpop.permute.xlu0 %321 }
  0xdf   :  { %847 = vperm.xlu1 %3151, %v3520_v40   ;;  %851 = vperm.xlu0 %3150, %v3515_v39  }
  0xe1   :  { %v3852_v33 = vpop.permute.xlu1 %336  ;;  %v3854_v36 = vpop.permute.xlu0 %331 }
  0xe3   :  { %855 = vperm.xlu1 %3151, %v3532_v42   ;;  %859 = vperm.xlu0 %3150, %v3527_v41  }
  0xe5   :  { %v3858_v35 = vpop.permute.xlu1 %346  ;;  %v3860_v38 = vpop.permute.xlu0 %341 }
  0xe7   :  { %863 = vperm.xlu1 %3151, %v3544_v44   ;;  %867 = vperm.xlu0 %3150, %v3539_v43  }
  0xe9   :  { %v3864_v37 = vpop.permute.xlu1 %356  ;;  %v3866_v40 = vpop.permute.xlu0 %351 }
  0xeb   :  { %871 = vperm.xlu1 %3151, %v3556_v46   ;;  %875 = vperm.xlu0 %3150, %v3551_v45  }
  0xed   :  { %v3870_v39 = vpop.permute.xlu1 %366  ;;  %v3872_v42 = vpop.permute.xlu0 %361 }
  0xef   :  { %879 = vperm.xlu1 %3151, %v3568_v48   ;;  %883 = vperm.xlu0 %3150, %v3563_v47  }
  0xf1   :  { %v3876_v41 = vpop.permute.xlu1 %376  ;;  %v3878_v44 = vpop.permute.xlu0 %371 }
  0xf3   :  { %887 = vperm.xlu1 %3151, %v3580_v50   ;;  %891 = vperm.xlu0 %3150, %v3575_v49  }
  0xf5   :  { %v3882_v43 = vpop.permute.xlu1 %386  ;;  %v3884_v46 = vpop.permute.xlu0 %381 }
  0xf7   :  { %895 = vperm.xlu1 %3151, %v3592_v52   ;;  %899 = vperm.xlu0 %3150, %v3587_v51   ;;  %v9142_v51 = vld [vmem:[#allocation11_spill] sm:$0xff] }
  0xf9   :  { %v3888_v45 = vpop.permute.xlu1 %396  ;;  %v3890_v48 = vpop.permute.xlu0 %391 }
  0xfa   :  { %9136 = vst [vmem:[#allocation65_spill] sm:$0xff] %v3888_v45  ;;  %9137 = vst [vmem:[#allocation66_spill] sm:$0xff] %v3890_v48  ;;  %v9143_v45 = vld [vmem:[#allocation10_spill] sm:$0xff] }
  0xfb   :  { %903 = vperm.xlu1 %3151, %v3604_v54   ;;  %907 = vperm.xlu0 %3150, %v3599_v53   ;;  %v9146_v53 = vld [vmem:[#allocation13_spill] sm:$0xff] }
  0xfd   :  { %v3894_v47 = vpop.permute.xlu1 %406  ;;  %v3896_v50 = vpop.permute.xlu0 %401 }
  0xfe   :  { %9138 = vst [vmem:[#allocation67_spill] sm:$0xff] %v3894_v47  ;;  %9139 = vst [vmem:[#allocation68_spill] sm:$0xff] %v3896_v50  ;;  %v9147_v47 = vld [vmem:[#allocation12_spill] sm:$0xff] }
  0xff   :  { %911 = vperm.xlu1 %3151, %v3616_v56   ;;  %915 = vperm.xlu0 %3150, %v3611_v55   ;;  %v9150_v55 = vld [vmem:[#allocation15_spill] sm:$0xff] }
 0x101   :  { %v3900_v49 = vpop.permute.xlu1 %416  ;;  %v3902_v52 = vpop.permute.xlu0 %411 }
 0x102   :  { %9140 = vst [vmem:[#allocation69_spill] sm:$0xff] %v3900_v49  ;;  %9141 = vst [vmem:[#allocation70_spill] sm:$0xff] %v3902_v52  ;;  %v9151_v49 = vld [vmem:[#allocation14_spill] sm:$0xff] }
 0x103   :  { %919 = vperm.xlu1 %3151, %v9142_v51   ;;  %923 = vperm.xlu0 %3150, %v9143_v45   ;;  %v9154_v45 = vld [vmem:[#allocation17_spill] sm:$0xff] }
 0x105   :  { %v3906_v48 = vpop.permute.xlu1 %426  ;;  %v3908_v54 = vpop.permute.xlu0 %421 }
 0x106   :  { %9144 = vst [vmem:[#allocation11_spill] sm:$0xff] %v3906_v48  ;;  %9145 = vst [vmem:[#allocation10_spill] sm:$0xff] %v3908_v54  ;;  %v9155_v48 = vld [vmem:[#allocation16_spill] sm:$0xff] }
 0x107   :  { %927 = vperm.xlu1 %3151, %v9146_v53   ;;  %931 = vperm.xlu0 %3150, %v9147_v47   ;;  %v9158_v47 = vld [vmem:[#allocation19_spill] sm:$0xff] }
 0x109   :  { %v3912_v50 = vpop.permute.xlu1 %436  ;;  %v3914_v56 = vpop.permute.xlu0 %431 }
 0x10a   :  { %9148 = vst [vmem:[#allocation13_spill] sm:$0xff] %v3912_v50  ;;  %9149 = vst [vmem:[#allocation12_spill] sm:$0xff] %v3914_v56  ;;  %v9159_v50 = vld [vmem:[#allocation18_spill] sm:$0xff] }
 0x10b   :  { %935 = vperm.xlu1 %3151, %v9150_v55   ;;  %939 = vperm.xlu0 %3150, %v9151_v49   ;;  %v9160_v49 = vld [vmem:[#allocation23_spill] sm:$0xff] }
 0x10d   :  { %v3918_v52 = vpop.permute.xlu1 %446  ;;  %v3920_v51 = vpop.permute.xlu0 %441 }
 0x10e   :  { %9152 = vst [vmem:[#allocation15_spill] sm:$0xff] %v3918_v52  ;;  %9153 = vst [vmem:[#allocation14_spill] sm:$0xff] %v3920_v51  ;;  %v9161_v52 = vld [vmem:[#allocation22_spill] sm:$0xff] }
 0x10f   :  { %943 = vperm.xlu1 %3151, %v9154_v45   ;;  %947 = vperm.xlu0 %3150, %v9155_v48   ;;  %v9162_v48 = vld [vmem:[#allocation27_spill] sm:$0xff] }
 0x112   :  { %v3924_v54 = vpop.permute.xlu1 %699  ;;  %v3926_v53 = vpop.permute.xlu0 %695 }
 0x113   :  { %9156 = vst [vmem:[#allocation17_spill] sm:$0xff] %v3924_v54  ;;  %9157 = vst [vmem:[#allocation16_spill] sm:$0xff] %v3926_v53  ;;  %951 = vperm.xlu1 %3151, %v9158_v47   ;;  %955 = vperm.xlu0 %3150, %v9159_v50   ;;  %v9163_v54 = vld [vmem:[#allocation26_spill] sm:$0xff] }
 0x116   :  { %v3930_v56 = vpop.permute.xlu1 %703  ;;  %v3932_v55 = vpop.permute.xlu0 %707 }
 0x117   :  { %959 = vperm.xlu1 %3151, %v9160_v49   ;;  %963 = vperm.xlu0 %3150, %v9161_v52   ;;  %v3262_v52 = vmov 2  }
 0x11a   :  { %v3936_v51 = vpop.permute.xlu1 %711  ;;  %v3938_v45 = vpop.permute.xlu0 %715 }
 0x11b   :  { %967 = vperm.xlu1 %3151, %v9162_v48   ;;  %971 = vperm.xlu0 %3150, %v9163_v54  }
 0x11e   :  { %v3942_v53 = vpop.permute.xlu1 %719  ;;  %v3944_v47 = vpop.permute.xlu0 %723 }
 0x11f   :  { %9164 = vst [vmem:[#allocation19_spill] sm:$0xff] %v3942_v53  ;;  %9165 = vst [vmem:[#allocation18_spill] sm:$0xff] %v3944_v47  ;;  %975 = vperm.xlu1 %3151, %v3724_v57   ;;  %979 = vperm.xlu0 %3150, %v3719_v58  }
 0x122   :  { %v3948_v50 = vpop.permute.xlu1 %727  ;;  %v3950_v49 = vpop.permute.xlu0 %731 }
 0x123   :  { %9166 = vst [vmem:[#allocation23_spill] sm:$0xff] %v3948_v50  ;;  %9167 = vst [vmem:[#allocation22_spill] sm:$0xff] %v3950_v49  ;;  %3152 = vset.pattern.permute.xlu1 %v3262_v52  ;;  %3153 = vset.pattern.permute.xlu0 %v3262_v52  ;;  %v9194_v49 = vld [vmem:[#allocation28_spill] sm:$0xff] }
 0x124   :  { %1442 = vperm.xlu1 %3152, %v3292_v2   ;;  %1446 = vperm.xlu0 %3153, %v3304_v4   ;;  %v451_v2 = vlaneseq }
 0x126   :  { %v3954_v54 = vpop.permute.xlu1 %735  ;;  %v3956_v48 = vpop.permute.xlu0 %739 }
 0x127   :  { %9168 = vst [vmem:[#allocation27_spill] sm:$0xff] %v3954_v54  ;;  %9169 = vst [vmem:[#allocation26_spill] sm:$0xff] %v3956_v48  ;;  %v9193_v48 = vld [vmem:[#allocation25_spill] sm:$0xff] }
 0x128   :  { %1450 = vperm.xlu1 %3152, %v3287_v1   ;;  %1458 = vperm.xlu0 %3153, %v3316_v6   ;;  %v3974_v6 = vshrl.u32 %v451_v2, 7 }
 0x12a   :  { %v3960_v57 = vpop.permute.xlu1 %743  ;;  %v3962_v58 = vpop.permute.xlu0 %747  ;;  %9175 = vst [vmem:[#allocation76_spill] sm:$0xff] %v3974_v6 }
 0x12b   :  { %9170 = vst [vmem:[#allocation71_spill] sm:$0xff] %v3960_v57  ;;  %9171 = vst [vmem:[#allocation72_spill] sm:$0xff] %v3962_v58 }
 0x12c   :  { %1454 = vperm.xlu1 %3152, %v3299_v3   ;;  %1466 = vperm.xlu0 %3153, %v3328_v8   ;;  %v3983_v8 = vsub.s32 0, %v3974_v6 }
 0x12e   :  { %v3966_v52 = vpop.permute.xlu1 %751  ;;  %v3968_v4 = vpop.permute.xlu0 %755  ;;  %9178 = vst [vmem:[#allocation79_spill] sm:$0xff] %v3983_v8 }
 0x12f   :  { %9172 = vst [vmem:[#allocation73_spill] sm:$0xff] %v3966_v52  ;;  %9173 = vst [vmem:[#allocation74_spill] sm:$0xff] %v3968_v4  ;;  %v457_v4 = vsub.s32 4, %v3974_v6 }
 0x130   :  { %1462 = vperm.xlu1 %3152, %v3311_v5   ;;  %1474 = vperm.xlu0 %3153, %v3340_v10   ;;  %v3991_v10 = vld [vmem:[%s8902_s1] sm:$0x77] }
 0x131   :  { %9180 = vst [vmem:[#allocation81_spill] sm:$0xff] %v3991_v10  ;;  %v454_v2 = vrot.slane %v3991_v10, %v3983_v8 }
 0x132   :  { %v3972_v1 = vpop.permute.xlu1 %759  ;;  %v3976_v57 = vpop.permute.xlu0 %763 }
 0x133   :  { %9174 = vst [vmem:[#allocation75_spill] sm:$0xff] %v3972_v1  ;;  %9176 = vst [vmem:[#allocation77_spill] sm:$0xff] %v3976_v57 }
 0x134   :  { %1470 = vperm.xlu1 %3152, %v3323_v7   ;;  %1482 = vperm.xlu0 %3153, %v3352_v12   ;;  %v3996_v7 = vld [vmem:[%s8902_s1 + $0x8] sm:$0x7] }
 0x135   :  { %9181 = vst [vmem:[#allocation82_spill] sm:$0xff] %v3996_v7 }
 0x136   :  { %v3980_v3 = vpop.permute.xlu1 %767  ;;  %v3986_v5 = vpop.permute.xlu0 %771 }
 0x137   :  { %9177 = vst [vmem:[#allocation78_spill] sm:$0xff] %v3980_v3  ;;  %9179 = vst [vmem:[#allocation80_spill] sm:$0xff] %v3986_v5  ;;  %v458_v5 = vrot.slane %v3991_v10, %v457_v4  ;;  %v462_v3 = vrot.slane %v3996_v7, %v3983_v8 }
 0x138   :  { %1478 = vperm.xlu1 %3152, %v3335_v9   ;;  %1490 = vperm.xlu0 %3153, %v3364_v14   ;;  %v4014_v9 = vrot.slane %v454_v2, %v3983_v8 }
 0x139   :  { %v4017_v14 = vrot.slane %v458_v5, %v3983_v8 }
 0x13a   :  { %v4000_v12 = vpop.permute.xlu1 %775  ;;  %v4007_v57 = vpop.permute.xlu0 %779  ;;  %v4086_v50 = vmul.f32 %v4014_v9, %v9194_v49 }
 0x13b   :  { %9182 = vst [vmem:[#allocation83_spill] sm:$0xff] %v4000_v12  ;;  %9183 = vst [vmem:[#allocation84_spill] sm:$0xff] %v4007_v57  ;;  %v4020_v12 = vrot.slane %v462_v3, %v3983_v8  ;;  %v988_v57 = vsub.s32 5, %v3974_v6 }
 0x13c   :  { %1486 = vperm.xlu1 %3152, %v3347_v11   ;;  %1498 = vperm.xlu0 %3153, %v3376_v16   ;;  %v9187_v16 = vld [vmem:[#allocation20_spill] sm:$0xff]  ;;  %9195 = vst [vmem:[#allocation25_spill] sm:$0xff] %v4086_v50  ;;  %v9203_v50 = vld [vmem:[#allocation30_spill] sm:$0xff] }
 0x13d   :  { %v4034_v2 = vmul.f32 %v4017_v14, %v9187_v16  ;;  %v4038_v3 = vmul.f32 %v4020_v12, %v9187_v16  ;;  %v4082_v54 = vmul.f32 %v4020_v12, %v9193_v48  ;;  %v4096_v47 = vmul.f32 %v4020_v12, %v9194_v49 }
 0x13e   :  { %v4011_v1 = vpop.permute.xlu1 %783  ;;  %v4022_v4 = vpop.permute.xlu0 %787 }
 0x13f   :  { %9184 = vst [vmem:[#allocation85_spill] sm:$0xff] %v4011_v1  ;;  %9185 = vst [vmem:[#allocation86_spill] sm:$0xff] %v4022_v4  ;;  %v4030_v1 = vmul.f32 %v4014_v9, %v9187_v16  ;;  %v9189_v4 = vld [vmem:[#allocation21_spill] sm:$0xff] }
 0x140   :  { %1494 = vperm.xlu1 %3152, %v3359_v13   ;;  %1506 = vperm.xlu0 %3153, %v3388_v18   ;;  %v4044_v13 = vmul.f32 %v4014_v9, %v9189_v4  ;;  %v4048_v18 = vmul.f32 %v4017_v14, %v9189_v4  ;;  %v4057_v16 = vmul.f32 %v4020_v12, %v9189_v4 }
 0x141   :  { %v4078_v4 = vmul.f32 %v4017_v14, %v9193_v48  ;;  %9198 = vst [vmem:[#allocation89_spill] sm:$0xff] %v4096_v47 }
 0x142   :  { %v4026_v11 = vpop.permute.xlu1 %791  ;;  %v4040_v5 = vpop.permute.xlu0 %795 }
 0x143   :  { %9186 = vst [vmem:[#allocation87_spill] sm:$0xff] %v4026_v11  ;;  %9188 = vst [vmem:[#allocation20_spill] sm:$0xff] %v4040_v5  ;;  %v4051_v11 = vsub.s32 1, %v3974_v6  ;;  %v9191_v5 = vld [vmem:[#allocation24_spill] sm:$0xff]  ;;  %v9199_v6 = vld [vmem:[#allocation29_spill] sm:$0xff] }
 0x144   :  { %1502 = vperm.xlu1 %3152, %v3371_v15   ;;  %v4061_v52 = vmul.f32 %v4014_v9, %v9191_v5  ;;  %v4065_v58 = vmul.f32 %v4017_v14, %v9191_v5  ;;  %v4069_v8 = vmul.f32 %v4020_v12, %v9191_v5  ;;  %1514 = vperm.xlu0 %3153, %v3400_v20  }
 0x145   :  { %9190 = vst [vmem:[#allocation21_spill] sm:$0xff] %v4051_v11  ;;  %v4074_v15 = vmul.f32 %v4014_v9, %v9193_v48  ;;  %v4092_v20 = vmul.f32 %v4017_v14, %v9194_v49  ;;  %v4100_v53 = vmul.f32 %v4014_v9, %v9199_v6  ;;  %v4104_v48 = vmul.f32 %v4017_v14, %v9199_v6 }
 0x146   :  { %9192 = vst [vmem:[#allocation24_spill] sm:$0xff] %v4069_v8  ;;  %v4088_v5 = vpop.permute.xlu1 %799  ;;  %v4106_v8 = vpop.permute.xlu0 %803  ;;  %v989_v49 = vrot.slane %v3991_v10, %v988_v57  ;;  %v993_v47 = vrot.slane %v3996_v7, %v4051_v11 }
 0x147   :  { %9196 = vst [vmem:[#allocation28_spill] sm:$0xff] %v4088_v5  ;;  %9197 = vst [vmem:[#allocation88_spill] sm:$0xff] %v4092_v20  ;;  %v4110_v5 = vmul.f32 %v4020_v12, %v9199_v6  ;;  %v985_v20 = vrot.slane %v3991_v10, %v4051_v11  ;;  %v4128_v6 = vmul.f32 %v4020_v12, %v9203_v50  ;;  %v9215_v10 = vld [vmem:[#allocation33_spill] sm:$0xff] }
 0x148   :  { %9200 = vst [vmem:[#allocation29_spill] sm:$0xff] %v4100_v53  ;;  %9201 = vst [vmem:[#allocation90_spill] sm:$0xff] %v4106_v8  ;;  %1510 = vperm.xlu1 %3152, %v3383_v17   ;;  %v4120_v53 = vmul.f32 %v4014_v9, %v9203_v50  ;;  %v4124_v8 = vmul.f32 %v4017_v14, %v9203_v50  ;;  %1522 = vperm.xlu0 %3153, %v3412_v22  }
 0x149   :  { %9202 = vst [vmem:[#allocation91_spill] sm:$0xff] %v4110_v5  ;;  %9206 = vst [vmem:[#allocation93_spill] sm:$0xff] %v4128_v6  ;;  %v9207_v5 = vld [vmem:[#allocation31_spill] sm:$0xff] }
 0x14a   :  { %9204 = vst [vmem:[#allocation30_spill] sm:$0xff] %v4120_v53  ;;  %9205 = vst [vmem:[#allocation92_spill] sm:$0xff] %v4124_v8  ;;  %v4132_v57 = vmul.f32 %v4014_v9, %v9207_v5  ;;  %v4137_v17 = vmul.f32 %v4017_v14, %v9207_v5  ;;  %v4141_v7 = vmul.f32 %v4020_v12, %v9207_v5  ;;  %v9210_v53 = vld [vmem:[#allocation32_spill] sm:$0xff]  ;;  %v4151_v6 = vpop.permute.xlu1 %807 }
 0x14b   :  { %v4145_v8 = vmul.f32 %v4014_v9, %v9210_v53  ;;  %v4149_v50 = vmul.f32 %v4017_v14, %v9210_v53  ;;  %9213 = vst [vmem:[#allocation96_spill] sm:$0xff] %v4151_v6  ;;  %v4155_v22 = vmul.f32 %v4020_v12, %v9210_v53  ;;  %v4163_v5 = vmul.f32 %v4017_v14, %v9215_v10 }
 0x14c   :  { %9208 = vst [vmem:[#allocation31_spill] sm:$0xff] %v4137_v17  ;;  %9209 = vst [vmem:[#allocation94_spill] sm:$0xff] %v4141_v7  ;;  %v4159_v17 = vmul.f32 %v4014_v9, %v9215_v10  ;;  %v4169_v7 = vpop.permute.xlu0 %811  ;;  %v4176_v53 = vrot.slane %v985_v20, %v4051_v11  ;;  %1518 = vperm.xlu1 %3152, %v3395_v19   ;;  %1530 = vperm.xlu0 %3153, %v3424_v24  }
 0x14d   :  { %9211 = vst [vmem:[#allocation32_spill] sm:$0xff] %v4145_v8  ;;  %9212 = vst [vmem:[#allocation95_spill] sm:$0xff] %v4149_v50  ;;  %v4167_v8 = vmul.f32 %v4020_v12, %v9215_v10  ;;  %v9218_v50 = vld [vmem:[#allocation34_spill] sm:$0xff] }
 0x14e   :  { %9214 = vst [vmem:[#allocation97_spill] sm:$0xff] %v4155_v22  ;;  %9216 = vst [vmem:[#allocation33_spill] sm:$0xff] %v4159_v17  ;;  %v4173_v6 = vmul.f32 %v4014_v9, %v9218_v50  ;;  %v4179_v22 = vrot.slane %v989_v49, %v4051_v11  ;;  %v4182_v17 = vrot.slane %v993_v47, %v4051_v11  ;;  %v9225_v47 = vld [vmem:[#allocation36_spill] sm:$0xff] }
 0x14f   :  { %9217 = vst [vmem:[#allocation98_spill] sm:$0xff] %v4169_v7  ;;  %v4187_v10 = vmul.f32 %v4017_v14, %v9218_v50  ;;  %v4191_v7 = vmul.f32 %v4020_v12, %v9218_v50  ;;  %v4208_v11 = vmul.f32 %v4014_v9, %v9225_v47  ;;  %v4212_v50 = vmul.f32 %v4017_v14, %v9225_v47 }
 0x150   :  { %9219 = vst [vmem:[#allocation34_spill] sm:$0xff] %v4173_v6  ;;  %v9222_v6 = vld [vmem:[#allocation35_spill] sm:$0xff]  ;;  %1526 = vperm.xlu1 %3152, %v3407_v21   ;;  %1538 = vperm.xlu0 %3153, %v3436_v26  }
 0x151   :  { %9220 = vst [vmem:[#allocation99_spill] sm:$0xff] %v4187_v10  ;;  %9221 = vst [vmem:[#allocation100_spill] sm:$0xff] %v4191_v7  ;;  %v4195_v20 = vmul.f32 %v4014_v9, %v9222_v6  ;;  %v4199_v49 = vmul.f32 %v4017_v14, %v9222_v6  ;;  %v4204_v19 = vmul.f32 %v4020_v12, %v9222_v6  ;;  %v4218_v10 = vpop.permute.xlu1 %815 }
 0x152   :  { %9226 = vst [vmem:[#allocation36_spill] sm:$0xff] %v4208_v11  ;;  %9227 = vst [vmem:[#allocation102_spill] sm:$0xff] %v4212_v50  ;;  %v4216_v7 = vmul.f32 %v4020_v12, %v9225_v47  ;;  %v4236_v47 = vpop.permute.xlu0 %819 }
 0x153   :  { %9223 = vst [vmem:[#allocation35_spill] sm:$0xff] %v4199_v49  ;;  %9224 = vst [vmem:[#allocation101_spill] sm:$0xff] %v4204_v19  ;;  %v9230_v49 = vld [vmem:[#allocation37_spill] sm:$0xff]  ;;  %v9233_v19 = vld [vmem:[#allocation38_spill] sm:$0xff] }
 0x154   :  { %9228 = vst [vmem:[#allocation103_spill] sm:$0xff] %v4216_v7  ;;  %9229 = vst [vmem:[#allocation104_spill] sm:$0xff] %v4218_v10  ;;  %v4222_v24 = vmul.f32 %v4014_v9, %v9230_v49  ;;  %v4226_v6 = vmul.f32 %v4017_v14, %v9230_v49  ;;  %v4230_v11 = vmul.f32 %v4020_v12, %v9230_v49  ;;  %1534 = vperm.xlu1 %3152, %v3419_v23  }
 0x155   :  { %v4234_v50 = vmul.f32 %v4014_v9, %v9233_v19  ;;  %9235 = vst [vmem:[#allocation106_spill] sm:$0xff] %v4236_v47  ;;  %v4240_v10 = vmul.f32 %v4017_v14, %v9233_v19  ;;  %v4244_v7 = vmul.f32 %v4020_v12, %v9233_v19  ;;  %1546 = vperm.xlu0 %3153, %v3448_v28  }
 0x156   :  { %9231 = vst [vmem:[#allocation37_spill] sm:$0xff] %v4222_v24  ;;  %9232 = vst [vmem:[#allocation105_spill] sm:$0xff] %v4226_v6  ;;  %v9238_v24 = vld [vmem:[#allocation39_spill] sm:$0xff] }
 0x157   :  { %9234 = vst [vmem:[#allocation38_spill] sm:$0xff] %v4234_v50  ;;  %9236 = vst [vmem:[#allocation107_spill] sm:$0xff] %v4240_v10  ;;  %v4248_v6 = vmul.f32 %v4014_v9, %v9238_v24  ;;  %v4252_v49 = vmul.f32 %v4017_v14, %v9238_v24  ;;  %v4257_v47 = vmul.f32 %v4020_v12, %v9238_v24  ;;  %v9241_v50 = vld [vmem:[#allocation40_spill] sm:$0xff] }
 0x158   :  { %9237 = vst [vmem:[#allocation108_spill] sm:$0xff] %v4244_v7  ;;  %v4261_v10 = vmul.f32 %v4014_v9, %v9241_v50  ;;  %v4265_v19 = vmul.f32 %v4017_v14, %v9241_v50  ;;  %v4269_v7 = vmul.f32 %v4020_v12, %v9241_v50  ;;  %v4288_v50 = vpop.permute.xlu1 %823  ;;  %1542 = vperm.xlu1 %3152, %v3431_v25  }
 0x159   :  { %9239 = vst [vmem:[#allocation39_spill] sm:$0xff] %v4252_v49  ;;  %9240 = vst [vmem:[#allocation109_spill] sm:$0xff] %v4257_v47  ;;  %v9245_v49 = vld [vmem:[#allocation41_spill] sm:$0xff]  ;;  %v9249_v47 = vld [vmem:[#allocation42_spill] sm:$0xff]  ;;  %1554 = vperm.xlu0 %3153, %v3460_v30  }
 0x15a   :  { %9242 = vst [vmem:[#allocation40_spill] sm:$0xff] %v4261_v10  ;;  %9243 = vst [vmem:[#allocation110_spill] sm:$0xff] %v4265_v19  ;;  %v4274_v21 = vmul.f32 %v4014_v9, %v9245_v49  ;;  %v4278_v24 = vmul.f32 %v4017_v14, %v9245_v49  ;;  %v4282_v10 = vmul.f32 %v4020_v12, %v9245_v49 }
 0x15b   :  { %9244 = vst [vmem:[#allocation111_spill] sm:$0xff] %v4269_v7  ;;  %v4286_v19 = vmul.f32 %v4014_v9, %v9249_v47  ;;  %9251 = vst [vmem:[#allocation114_spill] sm:$0xff] %v4288_v50  ;;  %v4292_v26 = vmul.f32 %v4017_v14, %v9249_v47  ;;  %v4296_v7 = vmul.f32 %v4020_v12, %v9249_v47 }
 0x15c   :  { %9246 = vst [vmem:[#allocation41_spill] sm:$0xff] %v4274_v21  ;;  %9247 = vst [vmem:[#allocation112_spill] sm:$0xff] %v4278_v24  ;;  %v9254_v21 = vld [vmem:[#allocation43_spill] sm:$0xff]  ;;  %1550 = vperm.xlu1 %3152, %v3443_v27  }
 0x15d   :  { %9248 = vst [vmem:[#allocation113_spill] sm:$0xff] %v4282_v10  ;;  %9250 = vst [vmem:[#allocation42_spill] sm:$0xff] %v4286_v19  ;;  %v4300_v24 = vmul.f32 %v4014_v9, %v9254_v21  ;;  %v4304_v49 = vmul.f32 %v4017_v14, %v9254_v21  ;;  %v4306_v10 = vpop.permute.xlu0 %827  ;;  %v4310_v50 = vmul.f32 %v4020_v12, %v9254_v21  ;;  %v9258_v19 = vld [vmem:[#allocation44_spill] sm:$0xff]  ;;  %1562 = vperm.xlu0 %3153, %v3472_v32  }
 0x15e   :  { %9252 = vst [vmem:[#allocation115_spill] sm:$0xff] %v4292_v26  ;;  %9253 = vst [vmem:[#allocation116_spill] sm:$0xff] %v4296_v7  ;;  %v4314_v26 = vmul.f32 %v4014_v9, %v9258_v19  ;;  %v4318_v47 = vmul.f32 %v4017_v14, %v9258_v19  ;;  %v4322_v7 = vmul.f32 %v4020_v12, %v9258_v19 }
 0x15f   :  { %9255 = vst [vmem:[#allocation43_spill] sm:$0xff] %v4304_v49  ;;  %9256 = vst [vmem:[#allocation117_spill] sm:$0xff] %v4306_v10  ;;  %v9262_v49 = vld [vmem:[#allocation45_spill] sm:$0xff] }
 0x160   :  { %9257 = vst [vmem:[#allocation118_spill] sm:$0xff] %v4310_v50  ;;  %9259 = vst [vmem:[#allocation44_spill] sm:$0xff] %v4314_v26  ;;  %v4327_v10 = vmul.f32 %v4014_v9, %v9262_v49  ;;  %v4331_v21 = vmul.f32 %v4017_v14, %v9262_v49  ;;  %v4335_v26 = vmul.f32 %v4020_v12, %v9262_v49  ;;  %v9265_v50 = vld [vmem:[#allocation46_spill] sm:$0xff]  ;;  %1558 = vperm.xlu1 %3152, %v3455_v29  }
 0x161   :  { %9260 = vst [vmem:[#allocation119_spill] sm:$0xff] %v4318_v47  ;;  %9261 = vst [vmem:[#allocation120_spill] sm:$0xff] %v4322_v7  ;;  %v4339_v47 = vmul.f32 %v4014_v9, %v9265_v50  ;;  %v4344_v23 = vmul.f32 %v4017_v14, %v9265_v50  ;;  %v4348_v19 = vmul.f32 %v4020_v12, %v9265_v50  ;;  %v9269_v7 = vld [vmem:[#allocation47_spill] sm:$0xff]  ;;  %1570 = vperm.xlu0 %3153, %v3484_v34  }
 0x162   :  { %9263 = vst [vmem:[#allocation45_spill] sm:$0xff] %v4331_v21  ;;  %9264 = vst [vmem:[#allocation121_spill] sm:$0xff] %v4335_v26  ;;  %v4352_v21 = vmul.f32 %v4014_v9, %v9269_v7  ;;  %v4356_v49 = vmul.f32 %v4017_v14, %v9269_v7  ;;  %v4358_v26 = vpop.permute.xlu1 %831  ;;  %v4362_v28 = vmul.f32 %v4020_v12, %v9269_v7 }
 0x163   :  { %9266 = vst [vmem:[#allocation46_spill] sm:$0xff] %v4339_v47  ;;  %9267 = vst [vmem:[#allocation122_spill] sm:$0xff] %v4344_v23  ;;  %v9274_v47 = vld [vmem:[#allocation48_spill] sm:$0xff] }
 0x164   :  { %9268 = vst [vmem:[#allocation123_spill] sm:$0xff] %v4348_v19  ;;  %9270 = vst [vmem:[#allocation47_spill] sm:$0xff] %v4352_v21  ;;  %v4366_v23 = vmul.f32 %v4014_v9, %v9274_v47  ;;  %v4370_v50 = vmul.f32 %v4017_v14, %v9274_v47  ;;  %v4374_v19 = vmul.f32 %v4020_v12, %v9274_v47  ;;  %v4376_v21 = vpop.permute.xlu0 %835 }
 0x165   :  { %9271 = vst [vmem:[#allocation124_spill] sm:$0xff] %v4356_v49  ;;  %9272 = vst [vmem:[#allocation125_spill] sm:$0xff] %v4358_v26  ;;  %v9279_v49 = vld [vmem:[#allocation49_spill] sm:$0xff] }
 0x166   :  { %9273 = vst [vmem:[#allocation126_spill] sm:$0xff] %v4362_v28  ;;  %9275 = vst [vmem:[#allocation48_spill] sm:$0xff] %v4366_v23  ;;  %v4380_v26 = vmul.f32 %v4014_v9, %v9279_v49  ;;  %v4384_v7 = vmul.f32 %v4017_v14, %v9279_v49  ;;  %v4388_v23 = vmul.f32 %v4020_v12, %v9279_v49  ;;  %v9281_v28 = vld [vmem:[#allocation50_spill] sm:$0xff] }
 0x167   :  { %9276 = vst [vmem:[#allocation127_spill] sm:$0xff] %v4370_v50  ;;  %9277 = vst [vmem:[#allocation128_spill] sm:$0xff] %v4374_v19  ;;  %v4392_v50 = vmul.f32 %v4014_v9, %v9281_v28  ;;  %v4397_v47 = vmul.f32 %v4017_v14, %v9281_v28  ;;  %v9285_v19 = vld [vmem:[#allocation51_spill] sm:$0xff] }
 0x168   :  { %9278 = vst [vmem:[#allocation129_spill] sm:$0xff] %v4376_v21  ;;  %9280 = vst [vmem:[#allocation49_spill] sm:$0xff] %v4384_v7  ;;  %v4401_v21 = vmul.f32 %v4020_v12, %v9281_v28  ;;  %v4405_v7 = vmul.f32 %v4014_v9, %v9285_v19  ;;  %v4409_v49 = vmul.f32 %v4017_v14, %v9285_v19 }
 0x169   :  { %9282 = vst [vmem:[#allocation50_spill] sm:$0xff] %v4392_v50  ;;  %9283 = vst [vmem:[#allocation130_spill] sm:$0xff] %v4397_v47  ;;  %v4414_v25 = vmul.f32 %v4020_v12, %v9285_v19  ;;  %v9289_v50 = vld [vmem:[#allocation52_spill] sm:$0xff] }
 0x16a   :  { %9284 = vst [vmem:[#allocation131_spill] sm:$0xff] %v4401_v21  ;;  %9286 = vst [vmem:[#allocation51_spill] sm:$0xff] %v4405_v7  ;;  %v4418_v47 = vmul.f32 %v4014_v9, %v9289_v50  ;;  %v4422_v28 = vmul.f32 %v4017_v14, %v9289_v50  ;;  %v4426_v21 = vmul.f32 %v4020_v12, %v9289_v50  ;;  %v4428_v7 = vpop.permute.xlu1 %839  ;;  %v4446_v50 = vpop.permute.xlu0 %843 }
 0x16b   :  { %9287 = vst [vmem:[#allocation132_spill] sm:$0xff] %v4409_v49  ;;  %9288 = vst [vmem:[#allocation133_spill] sm:$0xff] %v4414_v25  ;;  %v9294_v49 = vld [vmem:[#allocation53_spill] sm:$0xff]  ;;  %v9297_v25 = vld [vmem:[#allocation54_spill] sm:$0xff] }
 0x16c   :  { %9290 = vst [vmem:[#allocation52_spill] sm:$0xff] %v4418_v47  ;;  %9291 = vst [vmem:[#allocation134_spill] sm:$0xff] %v4422_v28  ;;  %v4432_v30 = vmul.f32 %v4014_v9, %v9294_v49  ;;  %v4436_v19 = vmul.f32 %v4017_v14, %v9294_v49  ;;  %v4440_v47 = vmul.f32 %v4020_v12, %v9294_v49 }
 0x16d   :  { %9292 = vst [vmem:[#allocation135_spill] sm:$0xff] %v4426_v21  ;;  %9293 = vst [vmem:[#allocation136_spill] sm:$0xff] %v4428_v7  ;;  %v4444_v28 = vmul.f32 %v4014_v9, %v9297_v25  ;;  %v4450_v7 = vmul.f32 %v4017_v14, %v9297_v25  ;;  %v4454_v21 = vmul.f32 %v4020_v12, %v9297_v25 }
 0x16e   :  { %9295 = vst [vmem:[#allocation53_spill] sm:$0xff] %v4432_v30  ;;  %9296 = vst [vmem:[#allocation137_spill] sm:$0xff] %v4436_v19  ;;  %v9302_v30 = vld [vmem:[#allocation55_spill] sm:$0xff] }
 0x16f   :  { %9298 = vst [vmem:[#allocation54_spill] sm:$0xff] %v4444_v28  ;;  %9299 = vst [vmem:[#allocation138_spill] sm:$0xff] %v4446_v50  ;;  %v4458_v19 = vmul.f32 %v4014_v9, %v9302_v30  ;;  %v4462_v49 = vmul.f32 %v4017_v14, %v9302_v30  ;;  %v4467_v50 = vmul.f32 %v4020_v12, %v9302_v30  ;;  %v9305_v28 = vld [vmem:[#allocation56_spill] sm:$0xff] }
 0x170   :  { %9300 = vst [vmem:[#allocation139_spill] sm:$0xff] %v4450_v7  ;;  %9301 = vst [vmem:[#allocation140_spill] sm:$0xff] %v4454_v21  ;;  %v4471_v7 = vmul.f32 %v4014_v9, %v9305_v28  ;;  %v4475_v25 = vmul.f32 %v4017_v14, %v9305_v28  ;;  %v4479_v21 = vmul.f32 %v4020_v12, %v9305_v28  ;;  %v4498_v28 = vpop.permute.xlu1 %847 }
 0x171   :  { %9303 = vst [vmem:[#allocation55_spill] sm:$0xff] %v4462_v49  ;;  %9304 = vst [vmem:[#allocation141_spill] sm:$0xff] %v4467_v50  ;;  %v9309_v49 = vld [vmem:[#allocation57_spill] sm:$0xff]  ;;  %v9313_v50 = vld [vmem:[#allocation58_spill] sm:$0xff] }
 0x172   :  { %9306 = vst [vmem:[#allocation56_spill] sm:$0xff] %v4471_v7  ;;  %9307 = vst [vmem:[#allocation142_spill] sm:$0xff] %v4475_v25  ;;  %v4484_v27 = vmul.f32 %v4014_v9, %v9309_v49  ;;  %v4488_v30 = vmul.f32 %v4017_v14, %v9309_v49  ;;  %v4492_v7 = vmul.f32 %v4020_v12, %v9309_v49 }
 0x173   :  { %9308 = vst [vmem:[#allocation143_spill] sm:$0xff] %v4479_v21  ;;  %v4496_v25 = vmul.f32 %v4014_v9, %v9313_v50  ;;  %9315 = vst [vmem:[#allocation146_spill] sm:$0xff] %v4498_v28  ;;  %v4502_v32 = vmul.f32 %v4017_v14, %v9313_v50  ;;  %v4506_v21 = vmul.f32 %v4020_v12, %v9313_v50 }
 0x174   :  { %9310 = vst [vmem:[#allocation57_spill] sm:$0xff] %v4484_v27  ;;  %9311 = vst [vmem:[#allocation144_spill] sm:$0xff] %v4488_v30  ;;  %v9318_v27 = vld [vmem:[#allocation59_spill] sm:$0xff] }
 0x175   :  { %9312 = vst [vmem:[#allocation145_spill] sm:$0xff] %v4492_v7  ;;  %9314 = vst [vmem:[#allocation58_spill] sm:$0xff] %v4496_v25  ;;  %v4510_v30 = vmul.f32 %v4014_v9, %v9318_v27  ;;  %v4514_v49 = vmul.f32 %v4017_v14, %v9318_v27  ;;  %v4516_v7 = vpop.permute.xlu0 %851  ;;  %v4520_v28 = vmul.f32 %v4020_v12, %v9318_v27  ;;  %v9322_v25 = vld [vmem:[#allocation60_spill] sm:$0xff] }
 0x176   :  { %9316 = vst [vmem:[#allocation147_spill] sm:$0xff] %v4502_v32  ;;  %9317 = vst [vmem:[#allocation148_spill] sm:$0xff] %v4506_v21  ;;  %v4524_v32 = vmul.f32 %v4014_v9, %v9322_v25  ;;  %v4528_v50 = vmul.f32 %v4017_v14, %v9322_v25  ;;  %v4532_v21 = vmul.f32 %v4020_v12, %v9322_v25 }
 0x177   :  { %9319 = vst [vmem:[#allocation59_spill] sm:$0xff] %v4514_v49  ;;  %9320 = vst [vmem:[#allocation149_spill] sm:$0xff] %v4516_v7  ;;  %v9326_v49 = vld [vmem:[#allocation61_spill] sm:$0xff] }
 0x178   :  { %9321 = vst [vmem:[#allocation150_spill] sm:$0xff] %v4520_v28  ;;  %9323 = vst [vmem:[#allocation60_spill] sm:$0xff] %v4524_v32  ;;  %v4537_v7 = vmul.f32 %v4014_v9, %v9326_v49  ;;  %v4541_v27 = vmul.f32 %v4017_v14, %v9326_v49  ;;  %v4545_v32 = vmul.f32 %v4020_v12, %v9326_v49  ;;  %v9329_v28 = vld [vmem:[#allocation62_spill] sm:$0xff] }
 0x179   :  { %9324 = vst [vmem:[#allocation151_spill] sm:$0xff] %v4528_v50  ;;  %9325 = vst [vmem:[#allocation152_spill] sm:$0xff] %v4532_v21  ;;  %v4549_v50 = vmul.f32 %v4014_v9, %v9329_v28  ;;  %v4554_v29 = vmul.f32 %v4017_v14, %v9329_v28  ;;  %v4558_v25 = vmul.f32 %v4020_v12, %v9329_v28  ;;  %v9333_v21 = vld [vmem:[#allocation63_spill] sm:$0xff] }
 0x17a   :  { %9327 = vst [vmem:[#allocation61_spill] sm:$0xff] %v4541_v27  ;;  %9328 = vst [vmem:[#allocation153_spill] sm:$0xff] %v4545_v32  ;;  %v4562_v27 = vmul.f32 %v4014_v9, %v9333_v21  ;;  %v4566_v49 = vmul.f32 %v4017_v14, %v9333_v21  ;;  %v4568_v32 = vpop.permute.xlu1 %855  ;;  %v4572_v34 = vmul.f32 %v4020_v12, %v9333_v21 }
 0x17b   :  { %9330 = vst [vmem:[#allocation62_spill] sm:$0xff] %v4549_v50  ;;  %9331 = vst [vmem:[#allocation154_spill] sm:$0xff] %v4554_v29  ;;  %v4576_v29 = vmul.f32 %v4014_v9, %v3828_v63  ;;  %v4580_v28 = vmul.f32 %v4017_v14, %v3828_v63  ;;  %v4586_v50 = vpop.permute.xlu0 %859 }
 0x17c   :  { %9332 = vst [vmem:[#allocation155_spill] sm:$0xff] %v4558_v25  ;;  %9334 = vst [vmem:[#allocation63_spill] sm:$0xff] %v4562_v27  ;;  %v4584_v25 = vmul.f32 %v4020_v12, %v3828_v63  ;;  %v9344_v63 = vld [vmem:[#allocation2_spill] sm:$0xff] }
 0x17d   :  { %9335 = vst [vmem:[#allocation156_spill] sm:$0xff] %v4566_v49  ;;  %9336 = vst [vmem:[#allocation157_spill] sm:$0xff] %v4576_v29  ;;  %v9339_v49 = vld [vmem:[#allocation64_spill] sm:$0xff]  ;;  %1566 = vperm.xlu1 %3152, %v9344_v63   ;;  %v4624_v63 = vmul.f32 %v4020_v12, %v3836_v0 }
 0x17e   :  { %9337 = vst [vmem:[#allocation158_spill] sm:$0xff] %v4580_v28  ;;  %9338 = vst [vmem:[#allocation159_spill] sm:$0xff] %v4584_v25  ;;  %v4590_v27 = vmul.f32 %v4014_v9, %v9339_v49  ;;  %v4594_v21 = vmul.f32 %v4017_v14, %v9339_v49  ;;  %v4598_v29 = vmul.f32 %v4020_v12, %v9339_v49 }
 0x17f   :  { %v4602_v28 = vmul.f32 %v4014_v9, %v3834_v62  ;;  %v4607_v25 = vmul.f32 %v4017_v14, %v3834_v62  ;;  %v4619_v49 = vmul.f32 %v4017_v14, %v3836_v0 }
 0x180   :  { %9340 = vst [vmem:[#allocation64_spill] sm:$0xff] %v4590_v27  ;;  %9341 = vst [vmem:[#allocation160_spill] sm:$0xff] %v4594_v21  ;;  %v4611_v27 = vmul.f32 %v4020_v12, %v3834_v62  ;;  %v4615_v21 = vmul.f32 %v4014_v9, %v3836_v0  ;;  %v4632_v62 = vmul.f32 %v4017_v14, %v3840_v61 }
 0x181   :  { %9342 = vst [vmem:[#allocation161_spill] sm:$0xff] %v4598_v29  ;;  %9343 = vst [vmem:[#allocation162_spill] sm:$0xff] %v4602_v28  ;;  %v9347_v29 = vld [vmem:[#allocation5_spill] sm:$0xff]  ;;  %v4638_v28 = vpop.permute.xlu1 %863  ;;  %v4646_v0 = vmul.f32 %v4017_v14, %v3842_v60 }
 0x182   :  { %9345 = vst [vmem:[#allocation2_spill] sm:$0xff] %v4607_v25  ;;  %9346 = vst [vmem:[#allocation163_spill] sm:$0xff] %v4611_v27  ;;  %1578 = vperm.xlu0 %3153, %v9347_v29   ;;  %v4628_v25 = vmul.f32 %v4014_v9, %v3840_v61  ;;  %v4636_v27 = vmul.f32 %v4020_v12, %v3840_v61  ;;  %v4642_v29 = vmul.f32 %v4014_v9, %v3842_v60  ;;  %v4656_v61 = vpop.permute.xlu0 %867 }
 0x183   :  { %9349 = vst [vmem:[#allocation164_spill] sm:$0xff] %v4632_v62  ;;  %9352 = vst [vmem:[#allocation167_spill] sm:$0xff] %v4646_v0  ;;  %v4654_v62 = vmul.f32 %v4014_v9, %v3846_v31  ;;  %v4668_v0 = vmul.f32 %v4014_v9, %v3848_v59 }
 0x184   :  { %9348 = vst [vmem:[#allocation5_spill] sm:$0xff] %v4628_v25  ;;  %9350 = vst [vmem:[#allocation165_spill] sm:$0xff] %v4636_v27  ;;  %v4650_v25 = vmul.f32 %v4020_v12, %v3842_v60  ;;  %v4660_v27 = vmul.f32 %v4017_v14, %v3846_v31  ;;  %v4672_v60 = vmul.f32 %v4017_v14, %v3848_v59 }
 0x185   :  { %9351 = vst [vmem:[#allocation166_spill] sm:$0xff] %v4642_v29  ;;  %9354 = vst [vmem:[#allocation169_spill] sm:$0xff] %v4654_v62  ;;  %v4664_v29 = vmul.f32 %v4020_v12, %v3846_v31  ;;  %v4677_v62 = vmul.f32 %v4020_v12, %v3848_v59  ;;  %v4685_v31 = vmul.f32 %v4017_v14, %v3852_v33 }
 0x186   :  { %9353 = vst [vmem:[#allocation168_spill] sm:$0xff] %v4650_v25  ;;  %9355 = vst [vmem:[#allocation170_spill] sm:$0xff] %v4660_v27  ;;  %v9358_v25 = vld [vmem:[#allocation3_spill] sm:$0xff]  ;;  %v4681_v27 = vmul.f32 %v4014_v9, %v3852_v33  ;;  %v4698_v59 = vmul.f32 %v4017_v14, %v3854_v36 }
 0x187   :  { %9356 = vst [vmem:[#allocation171_spill] sm:$0xff] %v4664_v29  ;;  %9357 = vst [vmem:[#allocation172_spill] sm:$0xff] %v4668_v0  ;;  %1574 = vperm.xlu1 %3152, %v9358_v25   ;;  %v4689_v29 = vmul.f32 %v4020_v12, %v3852_v33  ;;  %v9362_v0 = vld [vmem:[#allocation7_spill] sm:$0xff]  ;;  %v4694_v25 = vmul.f32 %v4014_v9, %v3854_v36  ;;  %v4708_v33 = vpop.permute.xlu1 %871 }
 0x188   :  { %9359 = vst [vmem:[#allocation3_spill] sm:$0xff] %v4681_v27  ;;  %9360 = vst [vmem:[#allocation173_spill] sm:$0xff] %v4685_v31  ;;  %1586 = vperm.xlu0 %3153, %v9362_v0   ;;  %v4702_v27 = vmul.f32 %v4020_v12, %v3854_v36  ;;  %v4706_v31 = vmul.f32 %v4014_v9, %v3858_v35  ;;  %v4712_v0 = vmul.f32 %v4017_v14, %v3858_v35 }
 0x189   :  { %9361 = vst [vmem:[#allocation174_spill] sm:$0xff] %v4689_v29  ;;  %9363 = vst [vmem:[#allocation7_spill] sm:$0xff] %v4694_v25  ;;  %v4716_v29 = vmul.f32 %v4020_v12, %v3858_v35  ;;  %v4724_v36 = vmul.f32 %v4017_v14, %v3860_v38  ;;  %v4738_v35 = vmul.f32 %v4017_v14, %v3864_v37 }
 0x18a   :  { %9364 = vst [vmem:[#allocation175_spill] sm:$0xff] %v4698_v59  ;;  %9365 = vst [vmem:[#allocation176_spill] sm:$0xff] %v4702_v27  ;;  %v4720_v59 = vmul.f32 %v4014_v9, %v3860_v38  ;;  %v4726_v27 = vpop.permute.xlu0 %875 }
 0x18b   :  { %9366 = vst [vmem:[#allocation177_spill] sm:$0xff] %v4706_v31  ;;  %9367 = vst [vmem:[#allocation178_spill] sm:$0xff] %v4712_v0  ;;  %v4730_v31 = vmul.f32 %v4020_v12, %v3860_v38  ;;  %v4734_v0 = vmul.f32 %v4014_v9, %v3864_v37  ;;  %v4751_v38 = vmul.f32 %v4017_v14, %v3866_v40 }
 0x18c   :  { %9368 = vst [vmem:[#allocation179_spill] sm:$0xff] %v4716_v29  ;;  %9369 = vst [vmem:[#allocation180_spill] sm:$0xff] %v4720_v59  ;;  %v4742_v29 = vmul.f32 %v4020_v12, %v3864_v37  ;;  %v9375_v59 = vld [vmem:[#allocation4_spill] sm:$0xff] }
 0x18d   :  { %9370 = vst [vmem:[#allocation181_spill] sm:$0xff] %v4724_v36  ;;  %9371 = vst [vmem:[#allocation182_spill] sm:$0xff] %v4730_v31  ;;  %1582 = vperm.xlu1 %3152, %v9375_v59   ;;  %v4747_v36 = vmul.f32 %v4014_v9, %v3866_v40  ;;  %v9380_v37 = vld [vmem:[#allocation8_spill] sm:$0xff]  ;;  %v4764_v59 = vmul.f32 %v4017_v14, %v3870_v39 }
 0x18e   :  { %9372 = vst [vmem:[#allocation183_spill] sm:$0xff] %v4734_v0  ;;  %9373 = vst [vmem:[#allocation184_spill] sm:$0xff] %v4738_v35  ;;  %v4755_v0 = vmul.f32 %v4020_v12, %v3866_v40  ;;  %v4759_v35 = vmul.f32 %v4014_v9, %v3870_v39  ;;  %1594 = vperm.xlu0 %3153, %v9380_v37   ;;  %v4776_v40 = vmul.f32 %v4017_v14, %v3872_v42 }
 0x18f   :  { %9374 = vst [vmem:[#allocation185_spill] sm:$0xff] %v4742_v29  ;;  %9376 = vst [vmem:[#allocation4_spill] sm:$0xff] %v4747_v36  ;;  %v4768_v29 = vmul.f32 %v4020_v12, %v3870_v39  ;;  %v4782_v37 = vmul.f32 %v4020_v12, %v3872_v42  ;;  %v4790_v39 = vmul.f32 %v4017_v14, %v3876_v41  ;;  %v9435_v36 = vld [vmem:[#allocation13_spill] sm:$0xff] }
 0x190   :  { %9377 = vst [vmem:[#allocation186_spill] sm:$0xff] %v4751_v38  ;;  %9378 = vst [vmem:[#allocation187_spill] sm:$0xff] %v4755_v0  ;;  %v4772_v38 = vmul.f32 %v4014_v9, %v3872_v42  ;;  %v4778_v0 = vpop.permute.xlu1 %879  ;;  %v4804_v42 = vmul.f32 %v4017_v14, %v3878_v44 }
 0x191   :  { %9379 = vst [vmem:[#allocation188_spill] sm:$0xff] %v4759_v35  ;;  %9381 = vst [vmem:[#allocation8_spill] sm:$0xff] %v4764_v59  ;;  %v4786_v59 = vmul.f32 %v4014_v9, %v3876_v41  ;;  %v4796_v35 = vpop.permute.xlu0 %883 }
 0x192   :  { %9382 = vst [vmem:[#allocation189_spill] sm:$0xff] %v4768_v29  ;;  %9383 = vst [vmem:[#allocation190_spill] sm:$0xff] %v4772_v38  ;;  %v4794_v29 = vmul.f32 %v4020_v12, %v3876_v41  ;;  %v9393_v41 = vld [vmem:[#allocation6_spill] sm:$0xff] }
 0x193   :  { %9384 = vst [vmem:[#allocation191_spill] sm:$0xff] %v4776_v40  ;;  %9385 = vst [vmem:[#allocation192_spill] sm:$0xff] %v4782_v37  ;;  %v4800_v40 = vmul.f32 %v4014_v9, %v3878_v44  ;;  %1590 = vperm.xlu1 %3152, %v9393_v41   ;;  %v4834_v41 = vmul.f32 %v4020_v12, %v3884_v46  ;;  %v9413_v37 = vld [vmem:[#allocation68_spill] sm:$0xff]  ;;  %v9430_v38 = vld [vmem:[#allocation10_spill] sm:$0xff] }
 0x194   :  { %9386 = vst [vmem:[#allocation193_spill] sm:$0xff] %v4786_v59  ;;  %9387 = vst [vmem:[#allocation194_spill] sm:$0xff] %v4790_v39  ;;  %v4808_v59 = vmul.f32 %v4020_v12, %v3878_v44  ;;  %v4812_v39 = vmul.f32 %v4014_v9, %v3882_v43  ;;  %v4829_v44 = vmul.f32 %v4017_v14, %v3884_v46 }
 0x195   :  { %9388 = vst [vmem:[#allocation195_spill] sm:$0xff] %v4794_v29  ;;  %9389 = vst [vmem:[#allocation196_spill] sm:$0xff] %v4800_v40  ;;  %v4817_v29 = vmul.f32 %v4017_v14, %v3882_v43  ;;  %v4821_v40 = vmul.f32 %v4020_v12, %v3882_v43 }
 0x196   :  { %9390 = vst [vmem:[#allocation197_spill] sm:$0xff] %v4804_v42  ;;  %9391 = vst [vmem:[#allocation198_spill] sm:$0xff] %v4808_v59  ;;  %v4825_v42 = vmul.f32 %v4014_v9, %v3884_v46  ;;  %v9398_v59 = vld [vmem:[#allocation9_spill] sm:$0xff] }
 0x197   :  { %9392 = vst [vmem:[#allocation199_spill] sm:$0xff] %v4812_v39  ;;  %9394 = vst [vmem:[#allocation6_spill] sm:$0xff] %v4817_v29  ;;  %1602 = vperm.xlu0 %3153, %v9398_v59   ;;  %v9400_v39 = vld [vmem:[#allocation65_spill] sm:$0xff] }
 0x198   :  { %9395 = vst [vmem:[#allocation200_spill] sm:$0xff] %v4821_v40  ;;  %9396 = vst [vmem:[#allocation201_spill] sm:$0xff] %v4825_v42  ;;  %v4838_v29 = vmul.f32 %v4014_v9, %v9400_v39  ;;  %v4842_v43 = vmul.f32 %v4017_v14, %v9400_v39  ;;  %v4846_v40 = vmul.f32 %v4020_v12, %v9400_v39  ;;  %v4848_v42 = vpop.permute.xlu1 %887  ;;  %v4866_v39 = vpop.permute.xlu0 %891 }
 0x199   :  { %9397 = vst [vmem:[#allocation202_spill] sm:$0xff] %v4829_v44  ;;  %9399 = vst [vmem:[#allocation9_spill] sm:$0xff] %v4834_v41  ;;  %v9404_v44 = vld [vmem:[#allocation66_spill] sm:$0xff]  ;;  %v9408_v41 = vld [vmem:[#allocation67_spill] sm:$0xff] }
 0x19a   :  { %9401 = vst [vmem:[#allocation65_spill] sm:$0xff] %v4838_v29  ;;  %9402 = vst [vmem:[#allocation203_spill] sm:$0xff] %v4842_v43  ;;  %v4852_v59 = vmul.f32 %v4014_v9, %v9404_v44  ;;  %v4856_v46 = vmul.f32 %v4017_v14, %v9404_v44  ;;  %v4860_v29 = vmul.f32 %v4020_v12, %v9404_v44 }
 0x19b   :  { %9403 = vst [vmem:[#allocation204_spill] sm:$0xff] %v4846_v40  ;;  %v4864_v43 = vmul.f32 %v4014_v9, %v9408_v41  ;;  %9410 = vst [vmem:[#allocation207_spill] sm:$0xff] %v4866_v39  ;;  %v4870_v40 = vmul.f32 %v4017_v14, %v9408_v41  ;;  %v4882_v44 = vmul.f32 %v4017_v14, %v9413_v37 }
 0x19c   :  { %9405 = vst [vmem:[#allocation66_spill] sm:$0xff] %v4852_v59  ;;  %9406 = vst [vmem:[#allocation205_spill] sm:$0xff] %v4856_v46  ;;  %v4874_v59 = vmul.f32 %v4020_v12, %v9408_v41  ;;  %v4878_v46 = vmul.f32 %v4014_v9, %v9413_v37 }
 0x19d   :  { %9407 = vst [vmem:[#allocation206_spill] sm:$0xff] %v4860_v29  ;;  %9409 = vst [vmem:[#allocation67_spill] sm:$0xff] %v4864_v43  ;;  %v3156_v43 = vld [vmem:[%s8901_s0 + $0x138] sm:$0xff] }
 0x19e   :  { %9411 = vst [vmem:[#allocation208_spill] sm:$0xff] %v4870_v40  ;;  %9412 = vst [vmem:[#allocation209_spill] sm:$0xff] %v4874_v59  ;;  %1598 = vperm.xlu1 %3152, %v3156_v43   ;;  %v4889_v40 = vmul.f32 %v4020_v12, %v9413_v37  ;;  %v9417_v29 = vld [vmem:[#allocation69_spill] sm:$0xff]  ;;  %v3157_v43 = vld [vmem:[%s8901_s0 + $0x150] sm:$0xff] }
 0x19f   :  { %9414 = vst [vmem:[#allocation68_spill] sm:$0xff] %v4878_v46  ;;  %9415 = vst [vmem:[#allocation210_spill] sm:$0xff] %v4882_v44  ;;  %v4893_v41 = vmul.f32 %v4014_v9, %v9417_v29  ;;  %v4897_v59 = vmul.f32 %v4017_v14, %v9417_v29  ;;  %v4901_v44 = vmul.f32 %v4020_v12, %v9417_v29  ;;  %1610 = vperm.xlu0 %3153, %v3157_v43   ;;  %v9421_v46 = vld [vmem:[#allocation70_spill] sm:$0xff] }
 0x1a0   :  { %9416 = vst [vmem:[#allocation211_spill] sm:$0xff] %v4889_v40  ;;  %v4908_v37 = vmul.f32 %v4014_v9, %v9421_v46  ;;  %v9425_v40 = vld [vmem:[#allocation11_spill] sm:$0xff] }
 0x1a1   :  { %9418 = vst [vmem:[#allocation69_spill] sm:$0xff] %v4893_v41  ;;  %9419 = vst [vmem:[#allocation212_spill] sm:$0xff] %v4897_v59  ;;  %v4912_v41 = vmul.f32 %v4017_v14, %v9421_v46  ;;  %v4916_v59 = vmul.f32 %v4020_v12, %v9421_v46  ;;  %v4920_v29 = vmul.f32 %v4014_v9, %v9425_v40 }
 0x1a2   :  { %9420 = vst [vmem:[#allocation213_spill] sm:$0xff] %v4901_v44  ;;  %9422 = vst [vmem:[#allocation70_spill] sm:$0xff] %v4908_v37  ;;  %v4922_v44 = vpop.permute.xlu1 %895  ;;  %v4926_v43 = vmul.f32 %v4017_v14, %v9425_v40  ;;  %v4930_v37 = vmul.f32 %v4020_v12, %v9425_v40  ;;  %v4938_v46 = vmul.f32 %v4017_v14, %v9430_v38 }
 0x1a3   :  { %9423 = vst [vmem:[#allocation214_spill] sm:$0xff] %v4912_v41  ;;  %9424 = vst [vmem:[#allocation215_spill] sm:$0xff] %v4916_v59  ;;  %v4934_v41 = vmul.f32 %v4014_v9, %v9430_v38  ;;  %v4940_v59 = vpop.permute.xlu0 %899  ;;  %v4952_v40 = vmul.f32 %v4017_v14, %v9435_v36 }
 0x1a4   :  { %9426 = vst [vmem:[#allocation11_spill] sm:$0xff] %v4920_v29  ;;  %9427 = vst [vmem:[#allocation216_spill] sm:$0xff] %v4922_v44  ;;  %v4944_v29 = vmul.f32 %v4020_v12, %v9430_v38 }
 0x1a5   :  { %9428 = vst [vmem:[#allocation217_spill] sm:$0xff] %v4926_v43  ;;  %9429 = vst [vmem:[#allocation218_spill] sm:$0xff] %v4930_v37  ;;  %v4948_v43 = vmul.f32 %v4014_v9, %v9435_v36  ;;  %v4956_v37 = vmul.f32 %v4020_v12, %v9435_v36 }
 0x1a6   :  { %9431 = vst [vmem:[#allocation10_spill] sm:$0xff] %v4934_v41  ;;  %9432 = vst [vmem:[#allocation219_spill] sm:$0xff] %v4938_v46  ;;  %v3158_v46 = vld [vmem:[%s8901_s0 + $0x148] sm:$0xff]  ;;  %v9439_v41 = vld [vmem:[#allocation12_spill] sm:$0xff] }
 0x1a7   :  { %9433 = vst [vmem:[#allocation220_spill] sm:$0xff] %v4940_v59  ;;  %9434 = vst [vmem:[#allocation221_spill] sm:$0xff] %v4944_v29  ;;  %1606 = vperm.xlu1 %3152, %v3158_v46   ;;  %v4963_v38 = vmul.f32 %v4014_v9, %v9439_v41  ;;  %v9443_v29 = vld [vmem:[#allocation17_spill] sm:$0xff]  ;;  %v9444_v46 = vld [vmem:[#allocation15_spill] sm:$0xff]  ;;  %v5004_v39 = vpop.permute.xlu0 %907 }
 0x1a8   :  { %9436 = vst [vmem:[#allocation13_spill] sm:$0xff] %v4948_v43  ;;  %9437 = vst [vmem:[#allocation222_spill] sm:$0xff] %v4952_v40  ;;  %v4967_v43 = vmul.f32 %v4017_v14, %v9439_v41  ;;  %v4971_v40 = vmul.f32 %v4020_v12, %v9439_v41  ;;  %v1012_v36 = vmul.f32 %v4176_v53, %v9443_v29 }
 0x1a9   :  { %9438 = vst [vmem:[#allocation223_spill] sm:$0xff] %v4956_v37  ;;  %9440 = vst [vmem:[#allocation12_spill] sm:$0xff] %v4963_v38  ;;  %v3159_v37 = vld [vmem:[%s8901_s0 + $0x160] sm:$0xff]  ;;  %v4980_v31 = vmul.f32 %v4014_v9, %v9444_v46  ;;  %v4984_v38 = vmul.f32 %v4017_v14, %v9444_v46  ;;  %v1013_v41 = vmul.f32 %v4179_v22, %v9443_v29 }
 0x1aa   :  { %9441 = vst [vmem:[#allocation224_spill] sm:$0xff] %v4967_v43  ;;  %9442 = vst [vmem:[#allocation225_spill] sm:$0xff] %v4971_v40  ;;  %1618 = vperm.xlu0 %3153, %v3159_v37   ;;  %v1014_v40 = vmul.f32 %v4182_v17, %v9443_v29  ;;  %v4990_v43 = vpop.permute.xlu1 %903  ;;  %v4994_v25 = vmul.f32 %v4020_v12, %v9444_v46  ;;  %v9448_v37 = vld [vmem:[#allocation14_spill] sm:$0xff] }
 0x1ab   :  { %9445 = vst [vmem:[#allocation17_spill] sm:$0xff] %v4980_v31  ;;  %9446 = vst [vmem:[#allocation15_spill] sm:$0xff] %v4984_v38  ;;  %v4998_v59 = vmul.f32 %v4014_v9, %v9448_v37  ;;  %v9450_v31 = vld [vmem:[#allocation16_spill] sm:$0xff]  ;;  %v5008_v29 = vmul.f32 %v4017_v14, %v9448_v37  ;;  %v5012_v46 = vmul.f32 %v4020_v12, %v9448_v37 }
 0x1ac   :  { %9447 = vst [vmem:[#allocation226_spill] sm:$0xff] %v4994_v25  ;;  %v1009_v44 = vmul.f32 %v4176_v53, %v9450_v31  ;;  %v1010_v38 = vmul.f32 %v4179_v22, %v9450_v31  ;;  %9451 = vst [vmem:[#allocation16_spill] sm:$0xff] %v5004_v39  ;;  %v1011_v9 = vmul.f32 %v4182_v17, %v9450_v31  ;;  %v3161_v37 = vld [vmem:[%s8901_s0 + $0x170] sm:$0xff] }
 0x1ad   :  { %9449 = vst [vmem:[#allocation14_spill] sm:$0xff] %v4998_v59  ;;  %9452 = vst [vmem:[#allocation227_spill] sm:$0xff] %v5008_v29  ;;  %v1015_v25 = vmul.f32 %v4176_v53, %v3930_v56  ;;  %v3160_v59 = vld [vmem:[%s8901_s0 + $0x158] sm:$0xff]  ;;  %v5022_v39 = vadd.f32 %v1012_v36, %v4074_v15  ;;  %v1016_v14 = vmul.f32 %v4179_v22, %v3930_v56 }
 0x1ae   :  { %9453 = vst [vmem:[#allocation228_spill] sm:$0xff] %v5012_v46  ;;  %1614 = vperm.xlu1 %3152, %v3160_v59   ;;  %v1017_v12 = vmul.f32 %v4182_v17, %v3930_v56  ;;  %v1018_v31 = vmul.f32 %v4176_v53, %v3932_v55  ;;  %1626 = vperm.xlu0 %3153, %v3161_v37   ;;  %v5043_v36 = vpop.permute.xlu1 %911  ;;  %v9465_v37 = vld [vmem:[#allocation24_spill] sm:$0xff] }
 0x1af   :  { %9454 = vst [vmem:[#allocation229_spill] sm:$0xff] %v5022_v39  ;;  %v5034_v46 = vadd.f32 %v1013_v41, %v4078_v4  ;;  %v5037_v15 = vadd.f32 %v1014_v40, %v4082_v54  ;;  %v1019_v59 = vmul.f32 %v4179_v22, %v3932_v55  ;;  %v1020_v56 = vmul.f32 %v4182_v17, %v3932_v55  ;;  %v5055_v40 = vpop.permute.xlu0 %915 }
 0x1b0   :  { %v5046_v39 = vadd.f32 %v1009_v44, %v4044_v13  ;;  %v5049_v29 = vadd.f32 %v1010_v38, %v4048_v18  ;;  %v1021_v4 = vmul.f32 %v4176_v53, %v3936_v51  ;;  %v1022_v54 = vmul.f32 %v4179_v22, %v3936_v51  ;;  %v3162_v44 = vld [vmem:[%s8901_s0 + $0x168] sm:$0xff] }
 0x1b1   :  { %9455 = vst [vmem:[#allocation230_spill] sm:$0xff] %v5034_v46  ;;  %9456 = vst [vmem:[#allocation231_spill] sm:$0xff] %v5037_v15  ;;  %v5058_v41 = vadd.f32 %v1011_v9, %v4057_v16  ;;  %v5061_v55 = vadd.f32 %v1015_v25, %v4030_v1  ;;  %v1023_v13 = vmul.f32 %v4182_v17, %v3936_v51  ;;  %v3163_v25 = vld [vmem:[%s8901_s0 + $0x180] sm:$0xff]  ;;  %v9493_v46 = vld [vmem:[#allocation93_spill] sm:$0xff] }
 0x1b2   :  { %9457 = vst [vmem:[#allocation232_spill] sm:$0xff] %v5046_v39  ;;  %9458 = vst [vmem:[#allocation233_spill] sm:$0xff] %v5049_v29  ;;  %v1024_v18 = vmul.f32 %v4176_v53, %v3938_v45  ;;  %1622 = vperm.xlu1 %3152, %v3162_v44   ;;  %v5071_v38 = vadd.f32 %v1016_v14, %v4034_v2  ;;  %v5074_v16 = vadd.f32 %v1017_v12, %v4038_v3  ;;  %v9467_v14 = vld [vmem:[#allocation19_spill] sm:$0xff]  ;;  %v5094_v12 = vpop.permute.xlu1 %919  ;;  %v9528_v39 = vld [vmem:[#allocation73_spill] sm:$0xff] }
 0x1b3   :  { %9459 = vst [vmem:[#allocation234_spill] sm:$0xff] %v5058_v41  ;;  %9460 = vst [vmem:[#allocation235_spill] sm:$0xff] %v5061_v55  ;;  %v5077_v1 = vadd.f32 %v1018_v31, %v4061_v52  ;;  %v1025_v51 = vmul.f32 %v4179_v22, %v3938_v45  ;;  %1634 = vperm.xlu0 %3153, %v3163_v25   ;;  %v5085_v9 = vadd.f32 %v1019_v59, %v4065_v58  ;;  %v9468_v31 = vld [vmem:[#allocation29_spill] sm:$0xff]  ;;  %v5104_v59 = vpop.permute.xlu0 %923  ;;  %v9526_v41 = vld [vmem:[#allocation100_spill] sm:$0xff] }
 0x1b4   :  { %9461 = vst [vmem:[#allocation236_spill] sm:$0xff] %v5071_v38  ;;  %9462 = vst [vmem:[#allocation237_spill] sm:$0xff] %v5074_v16  ;;  %v5088_v2 = vadd.f32 %v1020_v56, %v9465_v37  ;;  %v1026_v3 = vmul.f32 %v4182_v17, %v3938_v45  ;;  %v1027_v52 = vmul.f32 %v4176_v53, %v9467_v14  ;;  %v9471_v56 = vld [vmem:[#allocation76_spill] sm:$0xff]  ;;  %v9472_v45 = vld [vmem:[#allocation91_spill] sm:$0xff] }
 0x1b5   :  { %9463 = vst [vmem:[#allocation238_spill] sm:$0xff] %v5077_v1  ;;  %9464 = vst [vmem:[#allocation239_spill] sm:$0xff] %v5085_v9  ;;  %v5097_v44 = vadd.f32 %v1021_v4, %v9468_v31  ;;  %v5100_v1 = vadd.f32 %v1022_v54, %v4104_v48  ;;  %v1028_v58 = vmul.f32 %v4179_v22, %v9467_v14  ;;  %v5107_v25 = vsub.s32 2, %v9471_v56  ;;  %v9476_v31 = vld [vmem:[#allocation18_spill] sm:$0xff]  ;;  %v3164_v54 = vld [vmem:[%s8901_s0 + $0x178] sm:$0xff] }
 0x1b6   :  { %9466 = vst [vmem:[#allocation24_spill] sm:$0xff] %v5088_v2  ;;  %v5110_v37 = vadd.f32 %v1023_v13, %v9472_v45  ;;  %v9474_v2 = vld [vmem:[#allocation25_spill] sm:$0xff]  ;;  %v1029_v4 = vmul.f32 %v4182_v17, %v9467_v14  ;;  %v1030_v48 = vmul.f32 %v4176_v53, %v9476_v31  ;;  %1630 = vperm.xlu1 %3152, %v3164_v54   ;;  %v1735_v14 = vsub.s32 6, %v9471_v56  ;;  %v9489_v38 = vld [vmem:[#allocation30_spill] sm:$0xff] }
 0x1b7   :  { %9469 = vst [vmem:[#allocation19_spill] sm:$0xff] %v5097_v44  ;;  %9470 = vst [vmem:[#allocation29_spill] sm:$0xff] %v5100_v1  ;;  %v5113_v9 = vadd.f32 %v1024_v18, %v9474_v2  ;;  %v9477_v1 = vld [vmem:[#allocation88_spill] sm:$0xff]  ;;  %v1031_v13 = vmul.f32 %v4179_v22, %v9476_v31  ;;  %v1032_v18 = vmul.f32 %v4182_v17, %v9476_v31  ;;  %v9479_v45 = vld [vmem:[#allocation89_spill] sm:$0xff]  ;;  %v5143_v31 = vpop.permute.xlu1 %927 }
 0x1b8   :  { %9473 = vst [vmem:[#allocation76_spill] sm:$0xff] %v5110_v37  ;;  %v5123_v44 = vadd.f32 %v1025_v51, %v9477_v1  ;;  %v3165_v2 = vld [vmem:[%s8901_s0 + $0x190] sm:$0xff]  ;;  %v5134_v37 = vadd.f32 %v1026_v3, %v9479_v45  ;;  %v5137_v54 = vadd.f32 %v1027_v52, %v4132_v57  ;;  %v9482_v1 = vld [vmem:[#allocation23_spill] sm:$0xff]  ;;  %v5152_v45 = vpop.permute.xlu0 %931  ;;  %v9486_v57 = vld [vmem:[#allocation81_spill] sm:$0xff]  ;;  %v5160_v55 = vadd.f32 %v1030_v48, %v9489_v38 }
 0x1b9   :  { %9475 = vst [vmem:[#allocation91_spill] sm:$0xff] %v5113_v9  ;;  %1642 = vperm.xlu0 %3153, %v3165_v2   ;;  %v1033_v51 = vmul.f32 %v4176_v53, %v9482_v1  ;;  %v9483_v9 = vld [vmem:[#allocation31_spill] sm:$0xff]  ;;  %v1035_v56 = vmul.f32 %v4182_v17, %v9482_v1  ;;  %v9485_v2 = vld [vmem:[#allocation22_spill] sm:$0xff]  ;;  %v1732_v52 = vrot.slane %v9486_v57, %v5107_v25 }
 0x1ba   :  { %9478 = vst [vmem:[#allocation25_spill] sm:$0xff] %v5123_v44  ;;  %9480 = vst [vmem:[#allocation18_spill] sm:$0xff] %v5134_v37  ;;  %v1034_v44 = vmul.f32 %v4179_v22, %v9482_v1  ;;  %v5146_v16 = vadd.f32 %v1028_v58, %v9483_v9  ;;  %v1036_v3 = vmul.f32 %v4176_v53, %v9485_v2  ;;  %v3166_v1 = vld [vmem:[%s8901_s0 + $0x188] sm:$0xff]  ;;  %v3167_v38 = vld [vmem:[%s8901_s0 + $0x1a0] sm:$0xff] }
 0x1bb   :  { %9481 = vst [vmem:[#allocation88_spill] sm:$0xff] %v5137_v54  ;;  %v9487_v54 = vld [vmem:[#allocation94_spill] sm:$0xff]  ;;  %9490 = vst [vmem:[#allocation31_spill] sm:$0xff] %v5160_v55  ;;  %v1037_v9 = vmul.f32 %v4179_v22, %v9485_v2  ;;  %v1038_v58 = vmul.f32 %v4182_v17, %v9485_v2  ;;  %1638 = vperm.xlu1 %3152, %v3166_v1   ;;  %v1736_v48 = vrot.slane %v9486_v57, %v1735_v14  ;;  %v9496_v55 = vld [vmem:[#allocation33_spill] sm:$0xff] }
 0x1bc   :  { %9484 = vst [vmem:[#allocation89_spill] sm:$0xff] %v5146_v16  ;;  %v5157_v37 = vadd.f32 %v1029_v4, %v9487_v54  ;;  %v9491_v16 = vld [vmem:[#allocation92_spill] sm:$0xff]  ;;  %v5173_v4 = vadd.f32 %v1032_v18, %v9493_v46  ;;  %v9495_v54 = vld [vmem:[#allocation82_spill] sm:$0xff]  ;;  %v5185_v1 = vadd.f32 %v1034_v44, %v4163_v5  ;;  %v5191_v18 = vpop.permute.xlu1 %935  ;;  %v5197_v57 = vadd.f32 %v1035_v56, %v4167_v8  ;;  %v5204_v44 = vpop.permute.xlu0 %939 }
 0x1bd   :  { %v5170_v15 = vadd.f32 %v1031_v13, %v9491_v16  ;;  %1650 = vperm.xlu0 %3153, %v3167_v38   ;;  %v1740_v2 = vrot.slane %v9495_v54, %v5107_v25  ;;  %v9499_v16 = vld [vmem:[#allocation27_spill] sm:$0xff]  ;;  %v88_v14 = vld [vmem:[%s8903_s2] sm:$0x7]  ;;  %v5207_v38 = vrot.slane %v1732_v52, %v5107_v25 }
 0x1be   :  { %9488 = vst [vmem:[#allocation23_spill] sm:$0xff] %v5157_v37  ;;  %9494 = vst [vmem:[#allocation81_spill] sm:$0xff] %v5173_v4  ;;  %v5182_v37 = vadd.f32 %v1033_v51, %v9496_v55  ;;  %v1039_v46 = vmul.f32 %v4176_v53, %v9499_v16  ;;  %v1040_v13 = vmul.f32 %v4179_v22, %v9499_v16  ;;  %v9501_v55 = vld [vmem:[#allocation32_spill] sm:$0xff]  ;;  %v9504_v54 = vld [vmem:[#allocation95_spill] sm:$0xff] }
 0x1bf   :  { %9492 = vst [vmem:[#allocation22_spill] sm:$0xff] %v5170_v15  ;;  %9498 = vst [vmem:[#allocation30_spill] sm:$0xff] %v5185_v1  ;;  %v5200_v51 = vadd.f32 %v1036_v3, %v9501_v55  ;;  %v1041_v5 = vmul.f32 %v4182_v17, %v9499_v16  ;;  %v5210_v1 = vadd.f32 %v1037_v9, %v9504_v54  ;;  %v9508_v15 = vld [vmem:[#allocation26_spill] sm:$0xff]  ;;  %v3168_v3 = vld [vmem:[%s8901_s0 + $0x198] sm:$0xff] }
 0x1c0   :  { %9497 = vst [vmem:[#allocation94_spill] sm:$0xff] %v5182_v37  ;;  %9500 = vst [vmem:[#allocation92_spill] sm:$0xff] %v5197_v57  ;;  %v9506_v37 = vld [vmem:[#allocation97_spill] sm:$0xff]  ;;  %v1042_v8 = vmul.f32 %v4176_v53, %v9508_v15  ;;  %v1043_v56 = vmul.f32 %v4179_v22, %v9508_v15  ;;  %1646 = vperm.xlu1 %3152, %v3168_v3   ;;  %v1044_v52 = vmul.f32 %v4182_v17, %v9508_v15  ;;  %v3169_v9 = vld [vmem:[%s8901_s0 + $0x1b0] sm:$0xff] }
 0x1c1   :  { %9502 = vst [vmem:[#allocation93_spill] sm:$0xff] %v5200_v51  ;;  %9503 = vst [vmem:[#allocation82_spill] sm:$0xff] %v5207_v38  ;;  %v5213_v4 = vadd.f32 %v1038_v58, %v9506_v37  ;;  %1658 = vperm.xlu0 %3153, %v3169_v9   ;;  %v5228_v37 = vrot.slane %v1736_v48, %v5107_v25  ;;  %v5231_v58 = vrot.slane %v1740_v2, %v5107_v25  ;;  %v9511_v16 = vld [vmem:[#allocation79_spill] sm:$0xff]  ;;  %v5246_v48 = vpop.permute.xlu1 %943  ;;  %v9519_v51 = vld [vmem:[#allocation72_spill] sm:$0xff] }
 0x1c2   :  { %9505 = vst [vmem:[#allocation33_spill] sm:$0xff] %v5210_v1  ;;  %v5234_v55 = vrot.slane %v88_v14, %v9511_v16  ;;  %v5237_v54 = vadd.f32 %v1039_v46, %v4195_v20  ;;  %v9514_v3 = vld [vmem:[#allocation35_spill] sm:$0xff]  ;;  %v9517_v1 = vld [vmem:[#allocation101_spill] sm:$0xff]  ;;  %v1048_v20 = vmul.f32 %v4176_v53, %v9519_v51  ;;  %v1049_v46 = vmul.f32 %v4179_v22, %v9519_v51 }
 0x1c3   :  { %9507 = vst [vmem:[#allocation27_spill] sm:$0xff] %v5213_v4  ;;  %9509 = vst [vmem:[#allocation32_spill] sm:$0xff] %v5228_v37  ;;  %v5240_v57 = vadd.f32 %v1040_v13, %v9514_v3  ;;  %v9516_v15 = vld [vmem:[#allocation71_spill] sm:$0xff]  ;;  %v5249_v2 = vadd.f32 %v1041_v5, %v9517_v1  ;;  %v5257_v13 = vpop.permute.xlu0 %947  ;;  %v9520_v3 = vld [vmem:[#allocation34_spill] sm:$0xff]  ;;  %v1050_v1 = vmul.f32 %v4182_v17, %v9519_v51 }
 0x1c4   :  { %9510 = vst [vmem:[#allocation95_spill] sm:$0xff] %v5231_v58  ;;  %9512 = vst [vmem:[#allocation97_spill] sm:$0xff] %v5234_v55  ;;  %v1045_v4 = vmul.f32 %v4176_v53, %v9516_v15  ;;  %v1046_v9 = vmul.f32 %v4179_v22, %v9516_v15  ;;  %v1047_v16 = vmul.f32 %v4182_v17, %v9516_v15  ;;  %v3170_v5 = vld [vmem:[%s8901_s0 + $0x1a8] sm:$0xff]  ;;  %v9524_v15 = vld [vmem:[#allocation21_spill] sm:$0xff] }
 0x1c5   :  { %9513 = vst [vmem:[#allocation26_spill] sm:$0xff] %v5237_v54  ;;  %9515 = vst [vmem:[#allocation79_spill] sm:$0xff] %v5240_v57  ;;  %v5260_v57 = vadd.f32 %v1042_v8, %v9520_v3  ;;  %v9522_v54 = vld [vmem:[#allocation99_spill] sm:$0xff]  ;;  %1654 = vperm.xlu1 %3152, %v3170_v5   ;;  %v5274_v29 = vadd.f32 %v1044_v52, %v9526_v41  ;;  %v1051_v8 = vmul.f32 %v4176_v53, %v9528_v39  ;;  %v9529_v3 = vld [vmem:[#allocation37_spill] sm:$0xff] }
 0x1c6   :  { %9518 = vst [vmem:[#allocation35_spill] sm:$0xff] %v5249_v2  ;;  %v5263_v55 = vadd.f32 %v1043_v56, %v9522_v54  ;;  %v5271_v2 = vrot.slane %v88_v14, %v9524_v15  ;;  %v1052_v56 = vmul.f32 %v4179_v22, %v9528_v39  ;;  %v1053_v51 = vmul.f32 %v4182_v17, %v9528_v39  ;;  %v3171_v54 = vld [vmem:[%s8901_s0 + $0x1c0] sm:$0xff]  ;;  %v9531_v15 = vld [vmem:[#allocation105_spill] sm:$0xff]  ;;  %v9569_v37 = vld [vmem:[#allocation111_spill] sm:$0xff] }
 0x1c7   :  { %9521 = vst [vmem:[#allocation71_spill] sm:$0xff] %v5260_v57  ;;  %9527 = vst [vmem:[#allocation34_spill] sm:$0xff] %v5274_v29  ;;  %1666 = vperm.xlu0 %3153, %v3171_v54   ;;  %v5286_v5 = vadd.f32 %v1045_v4, %v9529_v3  ;;  %v5289_v41 = vadd.f32 %v1046_v9, %v9531_v15  ;;  %v9533_v52 = vld [vmem:[#allocation74_spill] sm:$0xff]  ;;  %v5296_v57 = vrot.slane %v88_v14, %v5107_v25  ;;  %v5309_v3 = vpop.permute.xlu0 %955  ;;  %v9540_v15 = vld [vmem:[#allocation103_spill] sm:$0xff] }
 0x1c8   :  { %9523 = vst [vmem:[#allocation101_spill] sm:$0xff] %v5263_v55  ;;  %9525 = vst [vmem:[#allocation72_spill] sm:$0xff] %v5271_v2  ;;  %v1054_v29 = vmul.f32 %v4176_v53, %v9533_v52  ;;  %v5293_v55 = vpop.permute.xlu1 %951  ;;  %v5299_v39 = vadd.f32 %v1047_v16, %v4230_v11  ;;  %v9536_v2 = vld [vmem:[#allocation36_spill] sm:$0xff]  ;;  %v9538_v54 = vld [vmem:[#allocation102_spill] sm:$0xff]  ;;  %v1055_v9 = vmul.f32 %v4179_v22, %v9533_v52 }
 0x1c9   :  { %9530 = vst [vmem:[#allocation99_spill] sm:$0xff] %v5286_v5  ;;  %9532 = vst [vmem:[#allocation21_spill] sm:$0xff] %v5289_v41  ;;  %v5302_v58 = vadd.f32 %v1048_v20, %v9536_v2  ;;  %v5305_v4 = vadd.f32 %v1049_v46, %v9538_v54  ;;  %v5312_v41 = vadd.f32 %v1050_v1, %v9540_v15  ;;  %v9542_v14 = vld [vmem:[#allocation75_spill] sm:$0xff]  ;;  %v3172_v2 = vld [vmem:[%s8901_s0 + $0x1b8] sm:$0xff] }
 0x1ca   :  { %9534 = vst [vmem:[#allocation100_spill] sm:$0xff] %v5296_v57  ;;  %9535 = vst [vmem:[#allocation73_spill] sm:$0xff] %v5299_v39  ;;  %v1056_v25 = vmul.f32 %v4182_v17, %v9533_v52  ;;  %v1057_v11 = vmul.f32 %v4176_v53, %v9542_v14  ;;  %1662 = vperm.xlu1 %3152, %v3172_v2   ;;  %v5322_v16 = vadd.f32 %v1051_v8, %v4248_v6  ;;  %v9544_v20 = vld [vmem:[#allocation39_spill] sm:$0xff]  ;;  %v9546_v54 = vld [vmem:[#allocation109_spill] sm:$0xff] }
 0x1cb   :  { %9537 = vst [vmem:[#allocation37_spill] sm:$0xff] %v5302_v58  ;;  %9539 = vst [vmem:[#allocation105_spill] sm:$0xff] %v5305_v4  ;;  %v5325_v46 = vadd.f32 %v1052_v56, %v9544_v20  ;;  %v5328_v1 = vadd.f32 %v1053_v51, %v9546_v54  ;;  %v1058_v52 = vmul.f32 %v4179_v22, %v9542_v14  ;;  %v3173_v15 = vld [vmem:[%s8901_s0 + $0x1d0] sm:$0xff]  ;;  %v9548_v39 = vld [vmem:[#allocation38_spill] sm:$0xff] }
 0x1cc   :  { %9541 = vst [vmem:[#allocation74_spill] sm:$0xff] %v5312_v41  ;;  %9543 = vst [vmem:[#allocation36_spill] sm:$0xff] %v5322_v16  ;;  %1674 = vperm.xlu0 %3153, %v3173_v15   ;;  %v5336_v5 = vadd.f32 %v1054_v29, %v9548_v39  ;;  %v1059_v6 = vmul.f32 %v4182_v17, %v9542_v14  ;;  %v9550_v8 = vld [vmem:[#allocation77_spill] sm:$0xff]  ;;  %v5344_v2 = vpop.permute.xlu1 %959  ;;  %v9551_v20 = vld [vmem:[#allocation107_spill] sm:$0xff]  ;;  %v5355_v14 = vpop.permute.xlu0 %963 }
 0x1cd   :  { %9545 = vst [vmem:[#allocation102_spill] sm:$0xff] %v5325_v46  ;;  %9547 = vst [vmem:[#allocation103_spill] sm:$0xff] %v5328_v1  ;;  %v1060_v56 = vmul.f32 %v4176_v53, %v9550_v8  ;;  %v1061_v51 = vmul.f32 %v4179_v22, %v9550_v8  ;;  %v5347_v54 = vadd.f32 %v1055_v9, %v9551_v20  ;;  %v9553_v1 = vld [vmem:[#allocation78_spill] sm:$0xff]  ;;  %v9555_v46 = vld [vmem:[#allocation108_spill] sm:$0xff] }
 0x1ce   :  { %9549 = vst [vmem:[#allocation75_spill] sm:$0xff] %v5336_v5  ;;  %v1062_v15 = vmul.f32 %v4182_v17, %v9550_v8  ;;  %v1063_v29 = vmul.f32 %v4176_v53, %v9553_v1  ;;  %v1064_v39 = vmul.f32 %v4179_v22, %v9553_v1  ;;  %9554 = vst [vmem:[#allocation109_spill] sm:$0xff] %v5355_v14  ;;  %v9557_v5 = vld [vmem:[#allocation41_spill] sm:$0xff]  ;;  %v9559_v20 = vld [vmem:[#allocation80_spill] sm:$0xff] }
 0x1cf   :  { %9552 = vst [vmem:[#allocation39_spill] sm:$0xff] %v5347_v54  ;;  %v5358_v16 = vadd.f32 %v1056_v25, %v9555_v46  ;;  %v5361_v41 = vadd.f32 %v1057_v11, %v9557_v5  ;;  %v1065_v9 = vmul.f32 %v4182_v17, %v9553_v1  ;;  %v1066_v8 = vmul.f32 %v4176_v53, %v9559_v20  ;;  %v3174_v54 = vld [vmem:[%s8901_s0 + $0x1c8] sm:$0xff]  ;;  %v9560_v4 = vld [vmem:[#allocation112_spill] sm:$0xff]  ;;  %v3175_v1 = vld [vmem:[%s8901_s0 + $0x1e0] sm:$0xff] }
 0x1d0   :  { %1670 = vperm.xlu1 %3152, %v3174_v54   ;;  %v5371_v58 = vadd.f32 %v1058_v52, %v9560_v4  ;;  %v1067_v25 = vmul.f32 %v4179_v22, %v9559_v20  ;;  %v1068_v5 = vmul.f32 %v4182_v17, %v9559_v20  ;;  %v9562_v11 = vld [vmem:[#allocation83_spill] sm:$0xff]  ;;  %1682 = vperm.xlu0 %3153, %v3175_v1   ;;  %v9565_v54 = vld [vmem:[#allocation40_spill] sm:$0xff]  ;;  %v9567_v52 = vld [vmem:[#allocation110_spill] sm:$0xff]  ;;  %v5393_v57 = vpop.permute.xlu1 %967 }
 0x1d1   :  { %9556 = vst [vmem:[#allocation38_spill] sm:$0xff] %v5358_v16  ;;  %9558 = vst [vmem:[#allocation77_spill] sm:$0xff] %v5361_v41  ;;  %v1069_v46 = vmul.f32 %v4176_v53, %v9562_v11  ;;  %v9563_v41 = vld [vmem:[#allocation113_spill] sm:$0xff]  ;;  %v5386_v4 = vadd.f32 %v1060_v56, %v9565_v54  ;;  %v1070_v20 = vmul.f32 %v4179_v22, %v9562_v11  ;;  %v9572_v1 = vld [vmem:[#allocation43_spill] sm:$0xff]  ;;  %v5406_v56 = vpop.permute.xlu0 %971 }
 0x1d2   :  { %9561 = vst [vmem:[#allocation107_spill] sm:$0xff] %v5371_v58  ;;  %v5383_v16 = vadd.f32 %v1059_v6, %v9563_v41  ;;  %v5389_v58 = vadd.f32 %v1061_v51, %v9567_v52  ;;  %v5396_v38 = vadd.f32 %v1062_v15, %v9569_v37  ;;  %v5399_v14 = vadd.f32 %v1063_v29, %v4300_v24  ;;  %v9575_v51 = vld [vmem:[#allocation118_spill] sm:$0xff]  ;;  %v3176_v15 = vld [vmem:[%s8901_s0 + $0x1d8] sm:$0xff]  ;;  %v9580_v29 = vld [vmem:[#allocation115_spill] sm:$0xff] }
 0x1d3   :  { %9566 = vst [vmem:[#allocation108_spill] sm:$0xff] %v5386_v4  ;;  %v5402_v41 = vadd.f32 %v1064_v39, %v9572_v1  ;;  %v1071_v6 = vmul.f32 %v4182_v17, %v9562_v11  ;;  %9574 = vst [vmem:[#allocation113_spill] sm:$0xff] %v5406_v56  ;;  %v5409_v54 = vadd.f32 %v1065_v9, %v9575_v51  ;;  %v9577_v52 = vld [vmem:[#allocation42_spill] sm:$0xff]  ;;  %v9582_v11 = vld [vmem:[#allocation116_spill] sm:$0xff] }
 0x1d4   :  { %9564 = vst [vmem:[#allocation78_spill] sm:$0xff] %v5383_v16  ;;  %9568 = vst [vmem:[#allocation41_spill] sm:$0xff] %v5389_v58  ;;  %v5412_v16 = vadd.f32 %v1066_v8, %v9577_v52  ;;  %v9579_v58 = vld [vmem:[#allocation84_spill] sm:$0xff]  ;;  %1678 = vperm.xlu1 %3152, %v3176_v15   ;;  %v5422_v39 = vadd.f32 %v1067_v25, %v9580_v29  ;;  %v5425_v9 = vadd.f32 %v1068_v5, %v9582_v11  ;;  %v9585_v52 = vld [vmem:[#allocation45_spill] sm:$0xff] }
 0x1d5   :  { %9570 = vst [vmem:[#allocation80_spill] sm:$0xff] %v5396_v38  ;;  %9571 = vst [vmem:[#allocation112_spill] sm:$0xff] %v5399_v14  ;;  %v1072_v37 = vmul.f32 %v4176_v53, %v9579_v58  ;;  %v1073_v24 = vmul.f32 %v4179_v22, %v9579_v58  ;;  %v5428_v8 = vadd.f32 %v1069_v46, %v4327_v10  ;;  %v3177_v51 = vld [vmem:[%s8901_s0 + $0x1f0] sm:$0xff]  ;;  %v9587_v15 = vld [vmem:[#allocation85_spill] sm:$0xff]  ;;  %v5444_v46 = vpop.permute.xlu1 %975 }
 0x1d6   :  { %9573 = vst [vmem:[#allocation83_spill] sm:$0xff] %v5402_v41  ;;  %9576 = vst [vmem:[#allocation40_spill] sm:$0xff] %v5409_v54  ;;  %v1074_v1 = vmul.f32 %v4182_v17, %v9579_v58  ;;  %1690 = vperm.xlu0 %3153, %v3177_v51   ;;  %v5436_v54 = vadd.f32 %v1070_v20, %v9585_v52  ;;  %v1075_v25 = vmul.f32 %v4176_v53, %v9587_v15  ;;  %v9589_v58 = vld [vmem:[#allocation121_spill] sm:$0xff]  ;;  %v9591_v11 = vld [vmem:[#allocation86_spill] sm:$0xff] }
 0x1d7   :  { %9578 = vst [vmem:[#allocation110_spill] sm:$0xff] %v5412_v16  ;;  %9581 = vst [vmem:[#allocation111_spill] sm:$0xff] %v5422_v39  ;;  %v1076_v5 = vmul.f32 %v4179_v22, %v9587_v15  ;;  %v1077_v10 = vmul.f32 %v4182_v17, %v9587_v15  ;;  %v5447_v29 = vadd.f32 %v1071_v6, %v9589_v58  ;;  %v9595_v15 = vld [vmem:[#allocation119_spill] sm:$0xff]  ;;  %v9607_v38 = vld [vmem:[#allocation46_spill] sm:$0xff] }
 0x1d8   :  { %9583 = vst [vmem:[#allocation43_spill] sm:$0xff] %v5425_v9  ;;  %9584 = vst [vmem:[#allocation118_spill] sm:$0xff] %v5428_v8  ;;  %v1078_v51 = vmul.f32 %v4176_v53, %v9591_v11  ;;  %v1079_v20 = vmul.f32 %v4179_v22, %v9591_v11  ;;  %v1080_v52 = vmul.f32 %v4182_v17, %v9591_v11  ;;  %v9593_v8 = vld [vmem:[#allocation44_spill] sm:$0xff]  ;;  %v9597_v9 = vld [vmem:[#allocation87_spill] sm:$0xff] }
 0x1d9   :  { %9586 = vst [vmem:[#allocation42_spill] sm:$0xff] %v5436_v54  ;;  %9588 = vst [vmem:[#allocation84_spill] sm:$0xff] %v5444_v46  ;;  %v5455_v54 = vpop.permute.xlu0 %979  ;;  %v5458_v41 = vadd.f32 %v1072_v37, %v9593_v8  ;;  %v5461_v14 = vadd.f32 %v1073_v24, %v9595_v15  ;;  %v1081_v6 = vmul.f32 %v4176_v53, %v9597_v9  ;;  %v9598_v11 = vld [vmem:[#allocation120_spill] sm:$0xff]  ;;  %v9611_v56 = vld [vmem:[#allocation123_spill] sm:$0xff] }
 0x1da   :  { %9590 = vst [vmem:[#allocation115_spill] sm:$0xff] %v5447_v29  ;;  %9592 = vst [vmem:[#allocation116_spill] sm:$0xff] %v5455_v54  ;;  %v1082_v58 = vmul.f32 %v4179_v22, %v9597_v9  ;;  %v3178_v29 = vld [vmem:[%s8901_s0 + $0x1e8] sm:$0xff]  ;;  %v5471_v39 = vadd.f32 %v1074_v1, %v9598_v11  ;;  %v1083_v37 = vmul.f32 %v4182_v17, %v9597_v9  ;;  %v9600_v8 = vld [vmem:[#allocation20_spill] sm:$0xff] }
 0x1db   :  { %9594 = vst [vmem:[#allocation45_spill] sm:$0xff] %v5458_v41  ;;  %9596 = vst [vmem:[#allocation85_spill] sm:$0xff] %v5461_v14  ;;  %1686 = vperm.xlu1 %3152, %v3178_v29   ;;  %v1084_v24 = vmul.f32 %v4176_v53, %v9600_v8  ;;  %v1085_v15 = vmul.f32 %v4179_v22, %v9600_v8  ;;  %v3179_v14 = vld [vmem:[%s8901_s0 + $0x200] sm:$0xff]  ;;  %v9601_v41 = vld [vmem:[#allocation47_spill] sm:$0xff]  ;;  %v1086_v9 = vmul.f32 %v4182_v17, %v9600_v8 }
 0x1dc   :  { %9599 = vst [vmem:[#allocation121_spill] sm:$0xff] %v5471_v39  ;;  %1698 = vperm.xlu0 %3153, %v3179_v14   ;;  %v5483_v16 = vadd.f32 %v1075_v25, %v9601_v41  ;;  %v9603_v29 = vld [vmem:[#allocation124_spill] sm:$0xff]  ;;  %v9605_v11 = vld [vmem:[#allocation126_spill] sm:$0xff]  ;;  %v5494_v4 = vadd.f32 %v1078_v51, %v9607_v38  ;;  %v5500_v14 = vadd.f32 %v1080_v52, %v9611_v56  ;;  %v3180_v56 = vld [vmem:[%s8901_s0 + $0x1f8] sm:$0xff] }
 0x1dd   :  { %v5486_v1 = vadd.f32 %v1076_v5, %v9603_v29  ;;  %v5489_v39 = vadd.f32 %v1077_v10, %v9605_v11  ;;  %v9609_v54 = vld [vmem:[#allocation122_spill] sm:$0xff]  ;;  %v9613_v41 = vld [vmem:[#allocation28_spill] sm:$0xff]  ;;  %v5504_v5 = vpop.permute.xlu1 %1442  ;;  %v5507_v10 = vadd.f32 %v1081_v6, %v4380_v26  ;;  %v9615_v29 = vld [vmem:[#allocation49_spill] sm:$0xff]  ;;  %v5516_v51 = vpop.permute.xlu0 %1446 }
 0x1de   :  { %9602 = vst [vmem:[#allocation86_spill] sm:$0xff] %v5483_v16  ;;  %9608 = vst [vmem:[#allocation87_spill] sm:$0xff] %v5494_v4  ;;  %v5497_v46 = vadd.f32 %v1079_v20, %v9609_v54  ;;  %v1087_v25 = vmul.f32 %v4176_v53, %v9613_v41  ;;  %v5510_v11 = vadd.f32 %v1082_v58, %v9615_v29  ;;  %v9618_v26 = vld [vmem:[#allocation48_spill] sm:$0xff]  ;;  %v9620_v6 = vld [vmem:[#allocation127_spill] sm:$0xff] }
 0x1df   :  { %9604 = vst [vmem:[#allocation44_spill] sm:$0xff] %v5486_v1  ;;  %9606 = vst [vmem:[#allocation119_spill] sm:$0xff] %v5489_v39  ;;  %v1088_v38 = vmul.f32 %v4179_v22, %v9613_v41  ;;  %v1089_v54 = vmul.f32 %v4182_v17, %v9613_v41  ;;  %1694 = vperm.xlu1 %3152, %v3180_v56   ;;  %v5522_v20 = vadd.f32 %v1083_v37, %v4388_v23  ;;  %v9622_v8 = vld [vmem:[#allocation90_spill] sm:$0xff]  ;;  %v3181_v41 = vld [vmem:[%s8901_s0 + $0x210] sm:$0xff] }
 0x1e0   :  { %9610 = vst [vmem:[#allocation120_spill] sm:$0xff] %v5497_v46  ;;  %9612 = vst [vmem:[#allocation20_spill] sm:$0xff] %v5500_v14  ;;  %v5525_v52 = vadd.f32 %v1084_v24, %v9618_v26  ;;  %v5528_v58 = vadd.f32 %v1085_v15, %v9620_v6  ;;  %v1090_v29 = vmul.f32 %v4176_v53, %v9622_v8  ;;  %1706 = vperm.xlu0 %3153, %v3181_v41   ;;  %v9625_v24 = vld [vmem:[#allocation96_spill] sm:$0xff]  ;;  %v9626_v56 = vld [vmem:[#allocation51_spill] sm:$0xff] }
 0x1e1   :  { %9614 = vst [vmem:[#allocation47_spill] sm:$0xff] %v5507_v10  ;;  %9616 = vst [vmem:[#allocation124_spill] sm:$0xff] %v5510_v11  ;;  %v9623_v11 = vld [vmem:[#allocation128_spill] sm:$0xff]  ;;  %v1091_v23 = vmul.f32 %v4179_v22, %v9622_v8  ;;  %v1092_v37 = vmul.f32 %v4182_v17, %v9622_v8  ;;  %v1093_v15 = vmul.f32 %v4176_v53, %v9625_v24  ;;  %v9631_v8 = vld [vmem:[#allocation133_spill] sm:$0xff] }
 0x1e2   :  { %9617 = vst [vmem:[#allocation126_spill] sm:$0xff] %v5522_v20  ;;  %9619 = vst [vmem:[#allocation46_spill] sm:$0xff] %v5525_v52  ;;  %v5536_v10 = vadd.f32 %v1086_v9, %v9623_v11  ;;  %v5545_v26 = vadd.f32 %v1087_v25, %v9626_v56  ;;  %v1094_v6 = vmul.f32 %v4179_v22, %v9625_v24  ;;  %v9628_v9 = vld [vmem:[#allocation98_spill] sm:$0xff]  ;;  %v5553_v20 = vpop.permute.xlu1 %1450  ;;  %v9629_v39 = vld [vmem:[#allocation132_spill] sm:$0xff] }
 0x1e3   :  { %9621 = vst [vmem:[#allocation122_spill] sm:$0xff] %v5528_v58  ;;  %v1095_v41 = vmul.f32 %v4182_v17, %v9625_v24  ;;  %v1096_v11 = vmul.f32 %v4176_v53, %v9628_v9  ;;  %v5556_v1 = vadd.f32 %v1088_v38, %v9629_v39  ;;  %v5559_v16 = vadd.f32 %v1089_v54, %v9631_v8  ;;  %v3182_v24 = vld [vmem:[%s8901_s0 + $0x208] sm:$0xff]  ;;  %v9636_v39 = vld [vmem:[#allocation104_spill] sm:$0xff]  ;;  %v9643_v52 = vld [vmem:[#allocation106_spill] sm:$0xff] }
 0x1e4   :  { %9624 = vst [vmem:[#allocation123_spill] sm:$0xff] %v5536_v10  ;;  %9627 = vst [vmem:[#allocation28_spill] sm:$0xff] %v5545_v26  ;;  %v1097_v25 = vmul.f32 %v4179_v22, %v9628_v9  ;;  %v1098_v56 = vmul.f32 %v4182_v17, %v9628_v9  ;;  %v5565_v26 = vpop.permute.xlu0 %1458  ;;  %1702 = vperm.xlu1 %3152, %v3182_v24   ;;  %v9634_v10 = vld [vmem:[#allocation50_spill] sm:$0xff]  ;;  %v1099_v38 = vmul.f32 %v4176_v53, %v9636_v39  ;;  %v9639_v24 = vld [vmem:[#allocation131_spill] sm:$0xff] }
 0x1e5   :  { %9630 = vst [vmem:[#allocation49_spill] sm:$0xff] %v5556_v1  ;;  %9632 = vst [vmem:[#allocation48_spill] sm:$0xff] %v5559_v16  ;;  %v5571_v58 = vadd.f32 %v1090_v29, %v9634_v10  ;;  %v1100_v54 = vmul.f32 %v4179_v22, %v9636_v39  ;;  %v1101_v8 = vmul.f32 %v4182_v17, %v9636_v39  ;;  %v3183_v9 = vld [vmem:[%s8901_s0 + $0x220] sm:$0xff]  ;;  %v9641_v29 = vld [vmem:[#allocation53_spill] sm:$0xff] }
 0x1e6   :  { %9633 = vst [vmem:[#allocation127_spill] sm:$0xff] %v5565_v26  ;;  %1714 = vperm.xlu0 %3153, %v3183_v9   ;;  %v9637_v16 = vld [vmem:[#allocation130_spill] sm:$0xff]  ;;  %v5586_v10 = vadd.f32 %v1092_v37, %v9639_v24  ;;  %v1102_v14 = vmul.f32 %v4176_v53, %v9643_v52  ;;  %v9644_v46 = vld [vmem:[#allocation137_spill] sm:$0xff]  ;;  %v5597_v39 = vadd.f32 %v1095_v41, %v4440_v47  ;;  %v9647_v26 = vld [vmem:[#allocation52_spill] sm:$0xff] }
 0x1e7   :  { %9635 = vst [vmem:[#allocation90_spill] sm:$0xff] %v5571_v58  ;;  %v5583_v1 = vadd.f32 %v1091_v23, %v9637_v16  ;;  %v5589_v58 = vadd.f32 %v1093_v15, %v9641_v29  ;;  %v5594_v4 = vadd.f32 %v1094_v6, %v9644_v46  ;;  %v5600_v9 = vadd.f32 %v1096_v11, %v9647_v26  ;;  %v5604_v23 = vpop.permute.xlu1 %1454  ;;  %v9649_v37 = vld [vmem:[#allocation134_spill] sm:$0xff]  ;;  %v9651_v24 = vld [vmem:[#allocation135_spill] sm:$0xff]  ;;  %v3184_v26 = vld [vmem:[%s8901_s0 + $0x218] sm:$0xff] }
 0x1e8   :  { %9640 = vst [vmem:[#allocation96_spill] sm:$0xff] %v5586_v10  ;;  %9646 = vst [vmem:[#allocation132_spill] sm:$0xff] %v5597_v39  ;;  %v1103_v16 = vmul.f32 %v4179_v22, %v9643_v52  ;;  %v5607_v15 = vadd.f32 %v1097_v25, %v9649_v37  ;;  %v5610_v29 = vadd.f32 %v1098_v56, %v9651_v24  ;;  %v9653_v6 = vld [vmem:[#allocation114_spill] sm:$0xff]  ;;  %v5616_v41 = vpop.permute.xlu0 %1466  ;;  %1710 = vperm.xlu1 %3152, %v3184_v26   ;;  %v9655_v25 = vld [vmem:[#allocation55_spill] sm:$0xff] }
 0x1e9   :  { %9638 = vst [vmem:[#allocation128_spill] sm:$0xff] %v5583_v1  ;;  %9642 = vst [vmem:[#allocation51_spill] sm:$0xff] %v5589_v58  ;;  %v1104_v46 = vmul.f32 %v4182_v17, %v9643_v52  ;;  %v1105_v47 = vmul.f32 %v4176_v53, %v9653_v6  ;;  %v5622_v11 = vadd.f32 %v1099_v38, %v4458_v19  ;;  %v9657_v56 = vld [vmem:[#allocation141_spill] sm:$0xff]  ;;  %v3185_v39 = vld [vmem:[%s8901_s0 + $0x230] sm:$0xff] }
 0x1ea   :  { %9645 = vst [vmem:[#allocation98_spill] sm:$0xff] %v5594_v4  ;;  %9648 = vst [vmem:[#allocation133_spill] sm:$0xff] %v5600_v9  ;;  %v5625_v37 = vadd.f32 %v1100_v54, %v9655_v25  ;;  %v5628_v24 = vadd.f32 %v1101_v8, %v9657_v56  ;;  %v1106_v52 = vmul.f32 %v4179_v22, %v9653_v6  ;;  %1722 = vperm.xlu0 %3153, %v3185_v39   ;;  %v9659_v4 = vld [vmem:[#allocation54_spill] sm:$0xff]  ;;  %v9661_v38 = vld [vmem:[#allocation117_spill] sm:$0xff] }
 0x1eb   :  { %9650 = vst [vmem:[#allocation50_spill] sm:$0xff] %v5607_v15  ;;  %9652 = vst [vmem:[#allocation104_spill] sm:$0xff] %v5610_v29  ;;  %v5636_v58 = vadd.f32 %v1102_v14, %v9659_v4  ;;  %v1107_v19 = vmul.f32 %v4182_v17, %v9653_v6  ;;  %v1108_v54 = vmul.f32 %v4176_v53, %v9661_v38  ;;  %v9662_v26 = vld [vmem:[#allocation139_spill] sm:$0xff]  ;;  %v5653_v14 = vpop.permute.xlu1 %1462  ;;  %v9665_v6 = vld [vmem:[#allocation140_spill] sm:$0xff] }
 0x1ec   :  { %9654 = vst [vmem:[#allocation130_spill] sm:$0xff] %v5622_v11  ;;  %9656 = vst [vmem:[#allocation131_spill] sm:$0xff] %v5625_v37  ;;  %v1109_v8 = vmul.f32 %v4179_v22, %v9661_v38  ;;  %v5645_v25 = vadd.f32 %v1103_v16, %v9662_v26  ;;  %v1110_v56 = vmul.f32 %v4182_v17, %v9661_v38  ;;  %v9667_v11 = vld [vmem:[#allocation57_spill] sm:$0xff]  ;;  %v3186_v29 = vld [vmem:[%s8901_s0 + $0x228] sm:$0xff] }
 0x1ed   :  { %9658 = vst [vmem:[#allocation53_spill] sm:$0xff] %v5628_v24  ;;  %9660 = vst [vmem:[#allocation106_spill] sm:$0xff] %v5636_v58  ;;  %v9664_v24 = vld [vmem:[#allocation125_spill] sm:$0xff]  ;;  %v5656_v37 = vadd.f32 %v1104_v46, %v9665_v6  ;;  %v5659_v58 = vadd.f32 %v1105_v47, %v9667_v11  ;;  %1718 = vperm.xlu1 %3152, %v3186_v29   ;;  %v9671_v15 = vld [vmem:[#allocation144_spill] sm:$0xff]  ;;  %v3263_v6 = vmov 3  }
 0x1ee   :  { %9663 = vst [vmem:[#allocation137_spill] sm:$0xff] %v5645_v25  ;;  %v1111_v39 = vmul.f32 %v4176_v53, %v9664_v24  ;;  %v1112_v4 = vmul.f32 %v4179_v22, %v9664_v24  ;;  %v1113_v16 = vmul.f32 %v4182_v17, %v9664_v24  ;;  %v9669_v26 = vld [vmem:[#allocation129_spill] sm:$0xff]  ;;  %v5665_v25 = vpop.permute.xlu0 %1474  ;;  %v5671_v9 = vadd.f32 %v1106_v52, %v9671_v15  ;;  %v9673_v11 = vld [vmem:[#allocation136_spill] sm:$0xff]  ;;  %v9678_v29 = vld [vmem:[#allocation142_spill] sm:$0xff] }
 0x1ef   :  { %9666 = vst [vmem:[#allocation52_spill] sm:$0xff] %v5656_v37  ;;  %9668 = vst [vmem:[#allocation134_spill] sm:$0xff] %v5659_v58  ;;  %v1114_v38 = vmul.f32 %v4176_v53, %v9669_v26  ;;  %v1115_v46 = vmul.f32 %v4179_v22, %v9669_v26  ;;  %v1116_v47 = vmul.f32 %v4182_v17, %v9669_v26  ;;  %3154 = vset.pattern.permute.xlu0 %v3263_v6  ;;  %v9674_v58 = vld [vmem:[#allocation145_spill] sm:$0xff]  ;;  %v9676_v10 = vld [vmem:[#allocation56_spill] sm:$0xff] }
 0x1f0   :  { %9670 = vst [vmem:[#allocation135_spill] sm:$0xff] %v5665_v25  ;;  %9672 = vst [vmem:[#allocation114_spill] sm:$0xff] %v5671_v9  ;;  %v1117_v24 = vmul.f32 %v4176_v53, %v9673_v11  ;;  %v5680_v37 = vadd.f32 %v1107_v19, %v9674_v58  ;;  %v5683_v1 = vadd.f32 %v1108_v54, %v9676_v10  ;;  %v3187_v26 = vld [vmem:[%s8901_s0] sm:$0xff]  ;;  %v9680_v9 = vld [vmem:[#allocation143_spill] sm:$0xff] }
 0x1f1   :  { %v5686_v15 = vadd.f32 %v1109_v8, %v9678_v29  ;;  %v1118_v52 = vmul.f32 %v4179_v22, %v9673_v11  ;;  %2421 = vperm.xlu0 %3154, %v3187_v26   ;;  %v5694_v25 = vadd.f32 %v1110_v56, %v9680_v9  ;;  %v5697_v58 = vadd.f32 %v1111_v39, %v4510_v30  ;;  %v9683_v19 = vld [vmem:[#allocation59_spill] sm:$0xff]  ;;  %v5704_v8 = vpop.permute.xlu1 %1470  ;;  %v9685_v29 = vld [vmem:[#allocation150_spill] sm:$0xff]  ;;  %v3188_v39 = vld [vmem:[%s8901_s0 + $0x238] sm:$0xff] }
 0x1f2   :  { %9675 = vst [vmem:[#allocation55_spill] sm:$0xff] %v5680_v37  ;;  %9677 = vst [vmem:[#allocation141_spill] sm:$0xff] %v5683_v1  ;;  %v5700_v10 = vadd.f32 %v1112_v4, %v9683_v19  ;;  %v1119_v54 = vmul.f32 %v4182_v17, %v9673_v11  ;;  %v5707_v37 = vadd.f32 %v1113_v16, %v9685_v29  ;;  %v9689_v26 = vld [vmem:[#allocation138_spill] sm:$0xff]  ;;  %v5716_v56 = vpop.permute.xlu0 %1482  ;;  %1726 = vperm.xlu1 %3152, %v3188_v39   ;;  %v9690_v4 = vld [vmem:[#allocation147_spill] sm:$0xff] }
 0x1f3   :  { %9679 = vst [vmem:[#allocation54_spill] sm:$0xff] %v5686_v15  ;;  %9681 = vst [vmem:[#allocation117_spill] sm:$0xff] %v5694_v25  ;;  %v9687_v15 = vld [vmem:[#allocation58_spill] sm:$0xff]  ;;  %v1120_v9 = vmul.f32 %v4176_v53, %v9689_v26  ;;  %v1121_v30 = vmul.f32 %v4179_v22, %v9689_v26  ;;  %v5722_v11 = vadd.f32 %v1115_v46, %v9690_v4  ;;  %v9692_v16 = vld [vmem:[#allocation148_spill] sm:$0xff] }
 0x1f4   :  { %9682 = vst [vmem:[#allocation139_spill] sm:$0xff] %v5697_v58  ;;  %9684 = vst [vmem:[#allocation125_spill] sm:$0xff] %v5700_v10  ;;  %v5710_v1 = vadd.f32 %v1114_v38, %v9687_v15  ;;  %v5725_v19 = vadd.f32 %v1116_v47, %v9692_v16  ;;  %v5728_v38 = vadd.f32 %v1117_v24, %v4537_v7  ;;  %v9695_v29 = vld [vmem:[#allocation61_spill] sm:$0xff]  ;;  %v9697_v10 = vld [vmem:[#allocation146_spill] sm:$0xff] }
 0x1f5   :  { %9686 = vst [vmem:[#allocation140_spill] sm:$0xff] %v5707_v37  ;;  %9691 = vst [vmem:[#allocation129_spill] sm:$0xff] %v5722_v11  ;;  %v1122_v15 = vmul.f32 %v4182_v17, %v9689_v26  ;;  %v5733_v37 = vadd.f32 %v1118_v52, %v9695_v29  ;;  %v1123_v58 = vmul.f32 %v4176_v53, %v9697_v10  ;;  %v3189_v7 = vld [vmem:[%s8901_s0 + $0x18] sm:$0xff]  ;;  %v5753_v29 = vpop.permute.xlu1 %1478 }
 0x1f6   :  { %9688 = vst [vmem:[#allocation57_spill] sm:$0xff] %v5710_v1  ;;  %9693 = vst [vmem:[#allocation144_spill] sm:$0xff] %v5725_v19  ;;  %v1124_v39 = vmul.f32 %v4179_v22, %v9697_v10  ;;  %v1125_v46 = vmul.f32 %v4182_v17, %v9697_v10  ;;  %2433 = vperm.xlu0 %3154, %v3189_v7   ;;  %v9698_v47 = vld [vmem:[#allocation153_spill] sm:$0xff]  ;;  %v9701_v10 = vld [vmem:[#allocation60_spill] sm:$0xff]  ;;  %v1130_v7 = vmul.f32 %v4179_v22, %v4568_v32 }
 0x1f7   :  { %9694 = vst [vmem:[#allocation136_spill] sm:$0xff] %v5728_v38  ;;  %9696 = vst [vmem:[#allocation145_spill] sm:$0xff] %v5733_v37  ;;  %v5745_v24 = vadd.f32 %v1119_v54, %v9698_v47  ;;  %v9700_v26 = vld [vmem:[#allocation149_spill] sm:$0xff]  ;;  %v5756_v37 = vadd.f32 %v1120_v9, %v9701_v10  ;;  %v9703_v38 = vld [vmem:[#allocation151_spill] sm:$0xff]  ;;  %v1129_v54 = vmul.f32 %v4176_v53, %v4568_v32  ;;  %v5765_v47 = vpop.permute.xlu0 %1490  ;;  %3155 = vset.pattern.permute.xlu1 %v3263_v6 }
 0x1f8   :  { %v1126_v52 = vmul.f32 %v4176_v53, %v9700_v26  ;;  %v1127_v4 = vmul.f32 %v4179_v22, %v9700_v26  ;;  %v1128_v16 = vmul.f32 %v4182_v17, %v9700_v26  ;;  %v5759_v19 = vadd.f32 %v1121_v30, %v9703_v38  ;;  %v3190_v38 = vld [vmem:[%s8901_s0 + $0x8] sm:$0xff]  ;;  %v9709_v6 = vld [vmem:[#allocation156_spill] sm:$0xff] }
 0x1f9   :  { %9699 = vst [vmem:[#allocation56_spill] sm:$0xff] %v5745_v24  ;;  %9702 = vst [vmem:[#allocation142_spill] sm:$0xff] %v5756_v37  ;;  %v9705_v24 = vld [vmem:[#allocation152_spill] sm:$0xff]  ;;  %v1131_v26 = vmul.f32 %v4182_v17, %v4568_v32  ;;  %v1132_v9 = vmul.f32 %v4176_v53, %v4586_v50  ;;  %v1133_v30 = vmul.f32 %v4179_v22, %v4586_v50  ;;  %2425 = vperm.xlu1 %3155, %v3190_v38   ;;  %v9707_v10 = vld [vmem:[#allocation63_spill] sm:$0xff] }
 0x1fa   :  { %9704 = vst [vmem:[#allocation143_spill] sm:$0xff] %v5759_v19  ;;  %v5768_v11 = vadd.f32 %v1122_v15, %v9705_v24  ;;  %v5780_v19 = vadd.f32 %v1123_v58, %v9707_v10  ;;  %v5783_v15 = vadd.f32 %v1124_v39, %v9709_v6  ;;  %v5786_v24 = vadd.f32 %v1125_v46, %v4572_v34  ;;  %v9712_v37 = vld [vmem:[#allocation62_spill] sm:$0xff]  ;;  %v9716_v10 = vld [vmem:[#allocation155_spill] sm:$0xff]  ;;  %v5804_v46 = vpop.permute.xlu1 %1486 }
 0x1fb   :  { %v1134_v32 = vmul.f32 %v4182_v17, %v4586_v50  ;;  %v5794_v1 = vadd.f32 %v1126_v52, %v9712_v37  ;;  %v9714_v38 = vld [vmem:[#allocation154_spill] sm:$0xff]  ;;  %v5800_v39 = vadd.f32 %v1128_v16, %v9716_v10  ;;  %v1135_v34 = vmul.f32 %v4176_v53, %v4638_v28  ;;  %v9718_v50 = vld [vmem:[#allocation64_spill] sm:$0xff]  ;;  %v5816_v52 = vpop.permute.xlu0 %1498 }
 0x1fc   :  { %9706 = vst [vmem:[#allocation59_spill] sm:$0xff] %v5768_v11  ;;  %9708 = vst [vmem:[#allocation150_spill] sm:$0xff] %v5780_v19  ;;  %v3191_v11 = vld [vmem:[%s8901_s0 + $0x28] sm:$0xff]  ;;  %v5797_v58 = vadd.f32 %v1127_v4, %v9714_v38  ;;  %v5807_v6 = vadd.f32 %v1129_v54, %v9718_v50  ;;  %v1136_v37 = vmul.f32 %v4179_v22, %v4638_v28  ;;  %v9722_v4 = vld [vmem:[#allocation161_spill] sm:$0xff] }
 0x1fd   :  { %9710 = vst [vmem:[#allocation58_spill] sm:$0xff] %v5783_v15  ;;  %9711 = vst [vmem:[#allocation138_spill] sm:$0xff] %v5786_v24  ;;  %2441 = vperm.xlu0 %3154, %v3191_v11   ;;  %v9720_v24 = vld [vmem:[#allocation160_spill] sm:$0xff]  ;;  %v1137_v11 = vmul.f32 %v4182_v17, %v4638_v28  ;;  %v5819_v16 = vadd.f32 %v1131_v26, %v9722_v4  ;;  %v9724_v38 = vld [vmem:[#allocation157_spill] sm:$0xff]  ;;  %v1139_v26 = vmul.f32 %v4179_v22, %v4656_v61 }
 0x1fe   :  { %9713 = vst [vmem:[#allocation147_spill] sm:$0xff] %v5794_v1  ;;  %9715 = vst [vmem:[#allocation148_spill] sm:$0xff] %v5797_v58  ;;  %v5810_v15 = vadd.f32 %v1130_v7, %v9720_v24  ;;  %v5822_v10 = vadd.f32 %v1132_v9, %v9724_v38  ;;  %v9726_v19 = vld [vmem:[#allocation158_spill] sm:$0xff]  ;;  %v1138_v7 = vmul.f32 %v4176_v53, %v4656_v61  ;;  %v3192_v24 = vld [vmem:[%s8901_s0 + $0x10] sm:$0xff] }
 0x1ff   :  { %9717 = vst [vmem:[#allocation61_spill] sm:$0xff] %v5800_v39  ;;  %9719 = vst [vmem:[#allocation146_spill] sm:$0xff] %v5807_v6  ;;  %v5825_v54 = vadd.f32 %v1133_v30, %v9726_v19  ;;  %2429 = vperm.xlu1 %3155, %v3192_v24   ;;  %v9728_v28 = vld [vmem:[#allocation159_spill] sm:$0xff]  ;;  %v1140_v9 = vmul.f32 %v4182_v17, %v4656_v61  ;;  %v1141_v19 = vmul.f32 %v4176_v53, %v4708_v33  ;;  %v3193_v30 = vld [vmem:[%s8901_s0 + $0x38] sm:$0xff]  ;;  %v5853_v24 = vpop.permute.xlu1 %1494 }
 0x200   :  { %9721 = vst [vmem:[#allocation153_spill] sm:$0xff] %v5810_v15  ;;  %9723 = vst [vmem:[#allocation149_spill] sm:$0xff] %v5819_v16  ;;  %v5833_v50 = vadd.f32 %v1134_v32, %v9728_v28  ;;  %v5845_v4 = vadd.f32 %v1135_v34, %v4615_v21  ;;  %v1142_v32 = vmul.f32 %v4179_v22, %v4708_v33  ;;  %v9772_v39 = vld [vmem:[#allocation173_spill] sm:$0xff] }
 0x201   :  { %9725 = vst [vmem:[#allocation60_spill] sm:$0xff] %v5822_v10  ;;  %9727 = vst [vmem:[#allocation151_spill] sm:$0xff] %v5825_v54  ;;  %2449 = vperm.xlu0 %3154, %v3193_v30   ;;  %v1143_v38 = vmul.f32 %v4182_v17, %v4708_v33  ;;  %v1144_v61 = vmul.f32 %v4176_v53, %v4726_v27  ;;  %v5856_v28 = vadd.f32 %v1136_v37, %v4619_v49  ;;  %v5865_v30 = vpop.permute.xlu0 %1506  ;;  %v9733_v33 = vld [vmem:[#allocation162_spill] sm:$0xff]  ;;  %v9764_v54 = vld [vmem:[#allocation171_spill] sm:$0xff] }
 0x202   :  { %9729 = vst [vmem:[#allocation152_spill] sm:$0xff] %v5833_v50  ;;  %9730 = vst [vmem:[#allocation63_spill] sm:$0xff] %v5845_v4  ;;  %v5859_v16 = vadd.f32 %v1137_v11, %v4624_v63  ;;  %v1145_v21 = vmul.f32 %v4179_v22, %v4726_v27  ;;  %v1146_v34 = vmul.f32 %v4182_v17, %v4726_v27  ;;  %v3194_v37 = vld [vmem:[%s8901_s0 + $0x20] sm:$0xff]  ;;  %v9776_v1 = vld [vmem:[#allocation181_spill] sm:$0xff] }
 0x203   :  { %9731 = vst [vmem:[#allocation156_spill] sm:$0xff] %v5856_v28  ;;  %v5868_v4 = vadd.f32 %v1138_v7, %v9733_v33  ;;  %v1147_v15 = vmul.f32 %v4176_v53, %v4778_v0  ;;  %v1148_v49 = vmul.f32 %v4179_v22, %v4778_v0  ;;  %v1149_v63 = vmul.f32 %v4182_v17, %v4778_v0  ;;  %v9735_v27 = vld [vmem:[#allocation2_spill] sm:$0xff]  ;;  %v3195_v0 = vld [vmem:[%s8901_s0 + $0x48] sm:$0xff] }
 0x204   :  { %9732 = vst [vmem:[#allocation62_spill] sm:$0xff] %v5859_v16  ;;  %2437 = vperm.xlu1 %3155, %v3194_v37   ;;  %v5880_v11 = vadd.f32 %v1139_v26, %v9735_v27  ;;  %v9737_v16 = vld [vmem:[#allocation163_spill] sm:$0xff]  ;;  %v9739_v33 = vld [vmem:[#allocation166_spill] sm:$0xff]  ;;  %v1150_v6 = vmul.f32 %v4176_v53, %v4796_v35  ;;  %v9743_v37 = vld [vmem:[#allocation168_spill] sm:$0xff] }
 0x205   :  { %9734 = vst [vmem:[#allocation154_spill] sm:$0xff] %v5868_v4  ;;  %v5883_v7 = vadd.f32 %v1140_v9, %v9737_v16  ;;  %v5886_v28 = vadd.f32 %v1141_v19, %v9739_v33  ;;  %2457 = vperm.xlu0 %3154, %v3195_v0   ;;  %v9741_v4 = vld [vmem:[#allocation167_spill] sm:$0xff]  ;;  %v5897_v26 = vadd.f32 %v1143_v38, %v9743_v37  ;;  %v9745_v27 = vld [vmem:[#allocation5_spill] sm:$0xff]  ;;  %v5904_v19 = vpop.permute.xlu1 %1502  ;;  %v9747_v33 = vld [vmem:[#allocation164_spill] sm:$0xff]  ;;  %v5916_v38 = vpop.permute.xlu0 %1514 }
 0x206   :  { %9736 = vst [vmem:[#allocation155_spill] sm:$0xff] %v5880_v11  ;;  %v5894_v50 = vadd.f32 %v1142_v32, %v9741_v4  ;;  %v5900_v16 = vadd.f32 %v1144_v61, %v9745_v27  ;;  %v1151_v9 = vmul.f32 %v4179_v22, %v4796_v35  ;;  %v1152_v4 = vmul.f32 %v4182_v17, %v4796_v35  ;;  %v3196_v0 = vld [vmem:[%s8901_s0 + $0x30] sm:$0xff]  ;;  %v9755_v27 = vld [vmem:[#allocation207_spill] sm:$0xff] }
 0x207   :  { %9738 = vst [vmem:[#allocation64_spill] sm:$0xff] %v5883_v7  ;;  %9740 = vst [vmem:[#allocation160_spill] sm:$0xff] %v5886_v28  ;;  %v5907_v28 = vadd.f32 %v1145_v21, %v9747_v33  ;;  %v9749_v7 = vld [vmem:[#allocation165_spill] sm:$0xff]  ;;  %v1153_v32 = vmul.f32 %v4176_v53, %v4848_v42  ;;  %v1154_v61 = vmul.f32 %v4179_v22, %v4848_v42  ;;  %v9751_v21 = vld [vmem:[#allocation172_spill] sm:$0xff] }
 0x208   :  { %9742 = vst [vmem:[#allocation161_spill] sm:$0xff] %v5894_v50  ;;  %9744 = vst [vmem:[#allocation157_spill] sm:$0xff] %v5897_v26  ;;  %v5910_v11 = vadd.f32 %v1146_v34, %v9749_v7  ;;  %2445 = vperm.xlu1 %3155, %v3196_v0   ;;  %v5924_v37 = vadd.f32 %v1147_v15, %v9751_v21  ;;  %v5927_v34 = vadd.f32 %v1148_v49, %v4672_v60  ;;  %v3197_v15 = vld [vmem:[%s8901_s0 + $0x58] sm:$0xff]  ;;  %v9758_v49 = vld [vmem:[#allocation216_spill] sm:$0xff] }
 0x209   :  { %9746 = vst [vmem:[#allocation158_spill] sm:$0xff] %v5900_v16  ;;  %9748 = vst [vmem:[#allocation159_spill] sm:$0xff] %v5907_v28  ;;  %v5930_v35 = vadd.f32 %v1149_v63, %v4677_v62  ;;  %v1155_v7 = vmul.f32 %v4182_v17, %v4848_v42  ;;  %v1156_v33 = vmul.f32 %v4176_v53, %v9755_v27  ;;  %2465 = vperm.xlu0 %3154, %v3197_v15   ;;  %v9756_v0 = vld [vmem:[#allocation169_spill] sm:$0xff]  ;;  %v5950_v21 = vpop.permute.xlu1 %1510  ;;  %v9759_v50 = vld [vmem:[#allocation170_spill] sm:$0xff] }
 0x20a   :  { %9750 = vst [vmem:[#allocation162_spill] sm:$0xff] %v5910_v11  ;;  %9752 = vst [vmem:[#allocation2_spill] sm:$0xff] %v5924_v37  ;;  %v1157_v26 = vmul.f32 %v4179_v22, %v9755_v27  ;;  %v5942_v60 = vadd.f32 %v1150_v6, %v9756_v0  ;;  %v1158_v62 = vmul.f32 %v4182_v17, %v9755_v27  ;;  %v9761_v28 = vld [vmem:[#allocation220_spill] sm:$0xff]  ;;  %v5959_v0 = vpop.permute.xlu0 %1522  ;;  %v9762_v27 = vld [vmem:[#allocation7_spill] sm:$0xff] }
 0x20b   :  { %9753 = vst [vmem:[#allocation163_spill] sm:$0xff] %v5927_v34  ;;  %9754 = vst [vmem:[#allocation166_spill] sm:$0xff] %v5930_v35  ;;  %v1159_v42 = vmul.f32 %v4176_v53, %v9758_v49  ;;  %v1160_v63 = vmul.f32 %v4179_v22, %v9758_v49  ;;  %v5953_v11 = vadd.f32 %v1151_v9, %v9759_v50 }
 0x20c   :  { %9757 = vst [vmem:[#allocation167_spill] sm:$0xff] %v5942_v60  ;;  %v1161_v15 = vmul.f32 %v4182_v17, %v9758_v49  ;;  %v1162_v6 = vmul.f32 %v4176_v53, %v9761_v28  ;;  %v5962_v16 = vadd.f32 %v1153_v32, %v9762_v27  ;;  %v5965_v10 = vadd.f32 %v1152_v4, %v9764_v54  ;;  %v3198_v49 = vld [vmem:[%s8901_s0 + $0x40] sm:$0xff]  ;;  %v3199_v4 = vld [vmem:[%s8901_s0 + $0x68] sm:$0xff] }
 0x20d   :  { %9760 = vst [vmem:[#allocation168_spill] sm:$0xff] %v5953_v11  ;;  %v1163_v60 = vmul.f32 %v4179_v22, %v9761_v28  ;;  %v1164_v50 = vmul.f32 %v4182_v17, %v9761_v28  ;;  %v1165_v9 = vmul.f32 %v4176_v53, %v4990_v43  ;;  %2453 = vperm.xlu1 %3155, %v3198_v49   ;;  %v9766_v11 = vld [vmem:[#allocation175_spill] sm:$0xff]  ;;  %v9768_v28 = vld [vmem:[#allocation176_spill] sm:$0xff] }
 0x20e   :  { %9763 = vst [vmem:[#allocation5_spill] sm:$0xff] %v5962_v16  ;;  %9765 = vst [vmem:[#allocation164_spill] sm:$0xff] %v5965_v10  ;;  %v5977_v32 = vadd.f32 %v1154_v61, %v9766_v11  ;;  %v1166_v54 = vmul.f32 %v4179_v22, %v4990_v43  ;;  %2473 = vperm.xlu0 %3154, %v3199_v4   ;;  %v5985_v27 = vadd.f32 %v1155_v7, %v9768_v28  ;;  %v9770_v10 = vld [vmem:[#allocation3_spill] sm:$0xff]  ;;  %v5995_v61 = vpop.permute.xlu1 %1518  ;;  %v9774_v49 = vld [vmem:[#allocation180_spill] sm:$0xff] }
 0x20f   :  { %v5988_v16 = vadd.f32 %v1156_v33, %v9770_v10  ;;  %v5991_v58 = vadd.f32 %v1157_v26, %v9772_v39  ;;  %v1167_v11 = vmul.f32 %v4182_v17, %v4990_v43  ;;  %v6001_v35 = vadd.f32 %v1160_v63, %v9776_v1  ;;  %v9778_v4 = vld [vmem:[#allocation174_spill] sm:$0xff]  ;;  %v9780_v28 = vld [vmem:[#allocation16_spill] sm:$0xff]  ;;  %v6010_v26 = vpop.permute.xlu0 %1530 }
 0x210   :  { %9767 = vst [vmem:[#allocation165_spill] sm:$0xff] %v5977_v32  ;;  %9769 = vst [vmem:[#allocation172_spill] sm:$0xff] %v5985_v27  ;;  %v5998_v32 = vadd.f32 %v1159_v42, %v9774_v49  ;;  %v6004_v7 = vadd.f32 %v1158_v62, %v9778_v4  ;;  %v1168_v10 = vmul.f32 %v4176_v53, %v9780_v28  ;;  %v9781_v43 = vld [vmem:[#allocation182_spill] sm:$0xff]  ;;  %v3200_v62 = vld [vmem:[%s8901_s0 + $0x50] sm:$0xff] }
 0x211   :  { %9771 = vst [vmem:[#allocation207_spill] sm:$0xff] %v5988_v16  ;;  %9773 = vst [vmem:[#allocation169_spill] sm:$0xff] %v5991_v58  ;;  %v1169_v39 = vmul.f32 %v4179_v22, %v9780_v28  ;;  %v6013_v33 = vadd.f32 %v1161_v15, %v9781_v43  ;;  %v9783_v58 = vld [vmem:[#allocation177_spill] sm:$0xff]  ;;  %v1170_v1 = vmul.f32 %v4182_v17, %v9780_v28  ;;  %2461 = vperm.xlu1 %3155, %v3200_v62   ;;  %v9785_v63 = vld [vmem:[#allocation4_spill] sm:$0xff] }
 0x212   :  { %9775 = vst [vmem:[#allocation216_spill] sm:$0xff] %v5998_v32  ;;  %9777 = vst [vmem:[#allocation170_spill] sm:$0xff] %v6001_v35  ;;  %v6016_v42 = vadd.f32 %v1162_v6, %v9783_v58  ;;  %v6024_v49 = vadd.f32 %v1165_v9, %v9785_v63  ;;  %v9787_v4 = vld [vmem:[#allocation178_spill] sm:$0xff]  ;;  %v9789_v16 = vld [vmem:[#allocation179_spill] sm:$0xff]  ;;  %v1171_v58 = vmul.f32 %v4176_v53, %v5043_v36  ;;  %v6050_v63 = vpop.permute.xlu1 %1526 }
 0x213   :  { %9779 = vst [vmem:[#allocation220_spill] sm:$0xff] %v6004_v7  ;;  %9782 = vst [vmem:[#allocation7_spill] sm:$0xff] %v6013_v33  ;;  %v6027_v7 = vadd.f32 %v1163_v60, %v9787_v4  ;;  %v6030_v15 = vadd.f32 %v1164_v50, %v9789_v16  ;;  %v1172_v6 = vmul.f32 %v4179_v22, %v5043_v36  ;;  %v3201_v9 = vld [vmem:[%s8901_s0 + $0x78] sm:$0xff]  ;;  %v9791_v43 = vld [vmem:[#allocation186_spill] sm:$0xff] }
 0x214   :  { %9784 = vst [vmem:[#allocation171_spill] sm:$0xff] %v6016_v42  ;;  %9786 = vst [vmem:[#allocation175_spill] sm:$0xff] %v6024_v49  ;;  %v1173_v28 = vmul.f32 %v4182_v17, %v5043_v36  ;;  %2481 = vperm.xlu0 %3154, %v3201_v9   ;;  %v6042_v60 = vadd.f32 %v1166_v54, %v9791_v43  ;;  %v1174_v16 = vmul.f32 %v4176_v53, %v5055_v40  ;;  %v9793_v36 = vld [vmem:[#allocation187_spill] sm:$0xff]  ;;  %v6059_v43 = vpop.permute.xlu0 %1538  ;;  %v9797_v42 = vld [vmem:[#allocation184_spill] sm:$0xff] }
 0x215   :  { %9788 = vst [vmem:[#allocation176_spill] sm:$0xff] %v6027_v7  ;;  %9790 = vst [vmem:[#allocation3_spill] sm:$0xff] %v6030_v15  ;;  %v1175_v50 = vmul.f32 %v4179_v22, %v5055_v40  ;;  %v1176_v62 = vmul.f32 %v4182_v17, %v5055_v40  ;;  %v6053_v4 = vadd.f32 %v1167_v11, %v9793_v36  ;;  %v9795_v15 = vld [vmem:[#allocation183_spill] sm:$0xff]  ;;  %v9799_v49 = vld [vmem:[#allocation185_spill] sm:$0xff] }
 0x216   :  { %9792 = vst [vmem:[#allocation173_spill] sm:$0xff] %v6042_v60  ;;  %v1177_v9 = vmul.f32 %v4176_v53, %v5094_v12  ;;  %v1178_v54 = vmul.f32 %v4179_v22, %v5094_v12  ;;  %v6062_v7 = vadd.f32 %v1168_v10, %v9795_v15  ;;  %v6065_v60 = vadd.f32 %v1169_v39, %v9797_v42  ;;  %v9801_v42 = vld [vmem:[#allocation190_spill] sm:$0xff]  ;;  %v9805_v33 = vld [vmem:[#allocation192_spill] sm:$0xff] }
 0x217   :  { %9794 = vst [vmem:[#allocation180_spill] sm:$0xff] %v6053_v4  ;;  %v1179_v40 = vmul.f32 %v4182_v17, %v5094_v12  ;;  %v1180_v11 = vmul.f32 %v4176_v53, %v5104_v59  ;;  %v1181_v36 = vmul.f32 %v4179_v22, %v5104_v59  ;;  %v3202_v4 = vld [vmem:[%s8901_s0 + $0x60] sm:$0xff]  ;;  %v6077_v10 = vadd.f32 %v1170_v1, %v9799_v49  ;;  %v3203_v12 = vld [vmem:[%s8901_s0 + $0x88] sm:$0xff]  ;;  %v6095_v49 = vpop.permute.xlu1 %1534 }
 0x218   :  { %9796 = vst [vmem:[#allocation181_spill] sm:$0xff] %v6062_v7  ;;  %9798 = vst [vmem:[#allocation174_spill] sm:$0xff] %v6065_v60  ;;  %2469 = vperm.xlu1 %3155, %v3202_v4   ;;  %v1182_v39 = vmul.f32 %v4182_v17, %v5104_v59  ;;  %2489 = vperm.xlu0 %3154, %v3203_v12   ;;  %v6085_v15 = vadd.f32 %v1171_v58, %v9801_v42  ;;  %v9803_v60 = vld [vmem:[#allocation191_spill] sm:$0xff]  ;;  %v9807_v59 = vld [vmem:[#allocation188_spill] sm:$0xff] }
 0x219   :  { %9800 = vst [vmem:[#allocation16_spill] sm:$0xff] %v6077_v10  ;;  %v6088_v7 = vadd.f32 %v1172_v6, %v9803_v60  ;;  %v6091_v35 = vadd.f32 %v1173_v28, %v9805_v33  ;;  %v1183_v1 = vmul.f32 %v4176_v53, %v5143_v31  ;;  %v6098_v4 = vadd.f32 %v1174_v16, %v9807_v59  ;;  %v9809_v10 = vld [vmem:[#allocation8_spill] sm:$0xff]  ;;  %v9811_v12 = vld [vmem:[#allocation189_spill] sm:$0xff]  ;;  %v6110_v28 = vpop.permute.xlu0 %1546 }
 0x21a   :  { %9802 = vst [vmem:[#allocation182_spill] sm:$0xff] %v6085_v15  ;;  %v6101_v32 = vadd.f32 %v1175_v50, %v9809_v10  ;;  %v6104_v58 = vadd.f32 %v1176_v62, %v9811_v12  ;;  %v1184_v6 = vmul.f32 %v4179_v22, %v5143_v31  ;;  %v1185_v33 = vmul.f32 %v4182_v17, %v5143_v31  ;;  %v9813_v60 = vld [vmem:[#allocation196_spill] sm:$0xff]  ;;  %v9817_v10 = vld [vmem:[#allocation198_spill] sm:$0xff]  ;;  %v9819_v31 = vld [vmem:[#allocation193_spill] sm:$0xff] }
 0x21b   :  { %9804 = vst [vmem:[#allocation177_spill] sm:$0xff] %v6088_v7  ;;  %9806 = vst [vmem:[#allocation4_spill] sm:$0xff] %v6091_v35  ;;  %v6113_v42 = vadd.f32 %v1177_v9, %v9813_v60  ;;  %v9815_v35 = vld [vmem:[#allocation197_spill] sm:$0xff]  ;;  %v1186_v50 = vmul.f32 %v4176_v53, %v5152_v45  ;;  %v3204_v62 = vld [vmem:[%s8901_s0 + $0x70] sm:$0xff]  ;;  %v6124_v59 = vadd.f32 %v1179_v40, %v9817_v10  ;;  %v6150_v10 = vpop.permute.xlu1 %1542 }
 0x21c   :  { %9808 = vst [vmem:[#allocation178_spill] sm:$0xff] %v6098_v4  ;;  %9810 = vst [vmem:[#allocation179_spill] sm:$0xff] %v6101_v32  ;;  %v6116_v16 = vadd.f32 %v1178_v54, %v9815_v35  ;;  %2477 = vperm.xlu1 %3155, %v3204_v62   ;;  %v6127_v12 = vadd.f32 %v1180_v11, %v9819_v31  ;;  %v1187_v35 = vmul.f32 %v4179_v22, %v5152_v45  ;;  %v3205_v40 = vld [vmem:[%s8901_s0 + $0x98] sm:$0xff]  ;;  %v9823_v62 = vld [vmem:[#allocation195_spill] sm:$0xff] }
 0x21d   :  { %9812 = vst [vmem:[#allocation186_spill] sm:$0xff] %v6104_v58  ;;  %9814 = vst [vmem:[#allocation187_spill] sm:$0xff] %v6113_v42  ;;  %v9821_v58 = vld [vmem:[#allocation194_spill] sm:$0xff]  ;;  %v1188_v54 = vmul.f32 %v4182_v17, %v5152_v45  ;;  %v1189_v60 = vmul.f32 %v4176_v53, %v5191_v18  ;;  %2497 = vperm.xlu0 %3154, %v3205_v40   ;;  %v6142_v11 = vadd.f32 %v1182_v39, %v9823_v62  ;;  %v9825_v31 = vld [vmem:[#allocation201_spill] sm:$0xff]  ;;  %v6159_v62 = vpop.permute.xlu0 %1554 }
 0x21e   :  { %9816 = vst [vmem:[#allocation183_spill] sm:$0xff] %v6116_v16  ;;  %9818 = vst [vmem:[#allocation184_spill] sm:$0xff] %v6124_v59  ;;  %v6130_v9 = vadd.f32 %v1181_v36, %v9821_v58  ;;  %v1190_v36 = vmul.f32 %v4179_v22, %v5191_v18  ;;  %v1191_v58 = vmul.f32 %v4182_v17, %v5191_v18  ;;  %v9829_v18 = vld [vmem:[#allocation9_spill] sm:$0xff]  ;;  %v9837_v59 = vld [vmem:[#allocation200_spill] sm:$0xff] }
 0x21f   :  { %9820 = vst [vmem:[#allocation185_spill] sm:$0xff] %v6127_v12  ;;  %9824 = vst [vmem:[#allocation191_spill] sm:$0xff] %v6142_v11  ;;  %v1192_v45 = vmul.f32 %v4176_v53, %v5204_v44  ;;  %v1193_v40 = vmul.f32 %v4179_v22, %v5204_v44  ;;  %v1194_v39 = vmul.f32 %v4182_v17, %v5204_v44  ;;  %v9827_v11 = vld [vmem:[#allocation202_spill] sm:$0xff] }
 0x220   :  { %9822 = vst [vmem:[#allocation190_spill] sm:$0xff] %v6130_v9  ;;  %v6153_v9 = vadd.f32 %v1183_v1, %v9825_v31  ;;  %v6162_v12 = vadd.f32 %v1184_v6, %v9827_v11  ;;  %v6165_v32 = vadd.f32 %v1185_v33, %v9829_v18  ;;  %v1195_v4 = vmul.f32 %v4176_v53, %v5246_v48  ;;  %v3206_v44 = vld [vmem:[%s8901_s0 + $0x80] sm:$0xff]  ;;  %v3207_v11 = vld [vmem:[%s8901_s0 + $0xa8] sm:$0xff] }
 0x221   :  { %v1196_v1 = vmul.f32 %v4179_v22, %v5246_v48  ;;  %v1197_v31 = vmul.f32 %v4182_v17, %v5246_v48  ;;  %2485 = vperm.xlu1 %3155, %v3206_v44   ;;  %v1198_v33 = vmul.f32 %v4176_v53, %v5257_v13  ;;  %2505 = vperm.xlu0 %3154, %v3207_v11   ;;  %v9833_v18 = vld [vmem:[#allocation66_spill] sm:$0xff]  ;;  %v9839_v44 = vld [vmem:[#allocation205_spill] sm:$0xff] }
 0x222   :  { %9826 = vst [vmem:[#allocation192_spill] sm:$0xff] %v6153_v9  ;;  %9828 = vst [vmem:[#allocation188_spill] sm:$0xff] %v6162_v12  ;;  %v9831_v9 = vld [vmem:[#allocation199_spill] sm:$0xff]  ;;  %v9835_v48 = vld [vmem:[#allocation6_spill] sm:$0xff]  ;;  %v6191_v16 = vadd.f32 %v1188_v54, %v9837_v59  ;;  %v1201_v59 = vmul.f32 %v4176_v53, %v5293_v55  ;;  %v6210_v54 = vpop.permute.xlu0 %1562 }
 0x223   :  { %9830 = vst [vmem:[#allocation8_spill] sm:$0xff] %v6165_v32  ;;  %v6177_v6 = vadd.f32 %v1186_v50, %v9831_v9  ;;  %v6185_v32 = vadd.f32 %v1189_v60, %v9833_v18  ;;  %v6188_v12 = vadd.f32 %v1187_v35, %v9835_v48  ;;  %v1199_v50 = vmul.f32 %v4179_v22, %v5257_v13  ;;  %v6195_v9 = vpop.permute.xlu1 %1550  ;;  %v9841_v42 = vld [vmem:[#allocation206_spill] sm:$0xff]  ;;  %v9843_v11 = vld [vmem:[#allocation65_spill] sm:$0xff]  ;;  %v9845_v18 = vld [vmem:[#allocation203_spill] sm:$0xff] }
 0x224   :  { %9838 = vst [vmem:[#allocation198_spill] sm:$0xff] %v6191_v16  ;;  %v6201_v7 = vadd.f32 %v1191_v58, %v9841_v42  ;;  %v6204_v60 = vadd.f32 %v1192_v45, %v9843_v11  ;;  %v1200_v35 = vmul.f32 %v4182_v17, %v5257_v13  ;;  %v6213_v48 = vadd.f32 %v1193_v40, %v9845_v18  ;;  %v9847_v16 = vld [vmem:[#allocation204_spill] sm:$0xff] }
 0x225   :  { %9832 = vst [vmem:[#allocation189_spill] sm:$0xff] %v6177_v6  ;;  %9834 = vst [vmem:[#allocation196_spill] sm:$0xff] %v6185_v32  ;;  %v6198_v6 = vadd.f32 %v1190_v36, %v9839_v44  ;;  %v6216_v36 = vadd.f32 %v1194_v39, %v9847_v16  ;;  %v1202_v42 = vmul.f32 %v4179_v22, %v5293_v55  ;;  %v3208_v58 = vld [vmem:[%s8901_s0 + $0x90] sm:$0xff]  ;;  %v9851_v44 = vld [vmem:[#allocation210_spill] sm:$0xff] }
 0x226   :  { %9836 = vst [vmem:[#allocation197_spill] sm:$0xff] %v6188_v12  ;;  %9842 = vst [vmem:[#allocation194_spill] sm:$0xff] %v6201_v7  ;;  %2493 = vperm.xlu1 %3155, %v3208_v58   ;;  %v9849_v13 = vld [vmem:[#allocation68_spill] sm:$0xff]  ;;  %v6227_v11 = vadd.f32 %v1196_v1, %v9851_v44  ;;  %v1203_v16 = vmul.f32 %v4182_v17, %v5293_v55  ;;  %v1204_v39 = vmul.f32 %v4176_v53, %v5309_v3  ;;  %v9855_v58 = vld [vmem:[#allocation67_spill] sm:$0xff] }
 0x227   :  { %9840 = vst [vmem:[#allocation193_spill] sm:$0xff] %v6198_v6  ;;  %9844 = vst [vmem:[#allocation195_spill] sm:$0xff] %v6204_v60  ;;  %v6224_v45 = vadd.f32 %v1195_v4, %v9849_v13  ;;  %v9853_v60 = vld [vmem:[#allocation211_spill] sm:$0xff]  ;;  %v1205_v18 = vmul.f32 %v4179_v22, %v5309_v3  ;;  %v3209_v4 = vld [vmem:[%s8901_s0 + $0xb8] sm:$0xff]  ;;  %v6242_v1 = vadd.f32 %v1198_v33, %v9855_v58  ;;  %v6250_v13 = vpop.permute.xlu1 %1558  ;;  %v6259_v58 = vpop.permute.xlu0 %1570 }
 0x228   :  { %9846 = vst [vmem:[#allocation201_spill] sm:$0xff] %v6213_v48  ;;  %9848 = vst [vmem:[#allocation202_spill] sm:$0xff] %v6216_v36  ;;  %v6230_v40 = vadd.f32 %v1197_v31, %v9853_v60  ;;  %2513 = vperm.xlu0 %3154, %v3209_v4   ;;  %v1206_v31 = vmul.f32 %v4182_v17, %v5309_v3  ;;  %v1207_v55 = vmul.f32 %v4176_v53, %v5344_v2  ;;  %v9857_v44 = vld [vmem:[#allocation208_spill] sm:$0xff]  ;;  %v9859_v48 = vld [vmem:[#allocation109_spill] sm:$0xff] }
 0x229   :  { %9850 = vst [vmem:[#allocation9_spill] sm:$0xff] %v6224_v45  ;;  %9852 = vst [vmem:[#allocation199_spill] sm:$0xff] %v6227_v11  ;;  %v1208_v60 = vmul.f32 %v4179_v22, %v5344_v2  ;;  %v6253_v36 = vadd.f32 %v1199_v50, %v9857_v44  ;;  %v1209_v4 = vmul.f32 %v4182_v17, %v5344_v2  ;;  %v9860_v3 = vld [vmem:[#allocation70_spill] sm:$0xff]  ;;  %v9870_v12 = vld [vmem:[#allocation212_spill] sm:$0xff] }
 0x22a   :  { %9854 = vst [vmem:[#allocation66_spill] sm:$0xff] %v6230_v40  ;;  %9856 = vst [vmem:[#allocation6_spill] sm:$0xff] %v6242_v1  ;;  %v1210_v33 = vmul.f32 %v4176_v53, %v9859_v48  ;;  %v6262_v1 = vadd.f32 %v1201_v59, %v9860_v3  ;;  %v9862_v40 = vld [vmem:[#allocation209_spill] sm:$0xff]  ;;  %v1211_v45 = vmul.f32 %v4179_v22, %v9859_v48  ;;  %v3210_v44 = vld [vmem:[%s8901_s0 + $0xa0] sm:$0xff] }
 0x22b   :  { %9858 = vst [vmem:[#allocation200_spill] sm:$0xff] %v6253_v36  ;;  %v6265_v11 = vadd.f32 %v1200_v35, %v9862_v40  ;;  %v1212_v50 = vmul.f32 %v4182_v17, %v9859_v48  ;;  %v1213_v2 = vmul.f32 %v4176_v53, %v5393_v57  ;;  %2501 = vperm.xlu1 %3155, %v3210_v44   ;;  %v9864_v36 = vld [vmem:[#allocation214_spill] sm:$0xff]  ;;  %v3211_v40 = vld [vmem:[%s8901_s0 + $0xc8] sm:$0xff] }
 0x22c   :  { %9861 = vst [vmem:[#allocation205_spill] sm:$0xff] %v6262_v1  ;;  %v6277_v59 = vadd.f32 %v1202_v42, %v9864_v36  ;;  %v1214_v35 = vmul.f32 %v4179_v22, %v5393_v57  ;;  %2521 = vperm.xlu0 %3154, %v3211_v40   ;;  %v9866_v48 = vld [vmem:[#allocation215_spill] sm:$0xff]  ;;  %v6291_v7 = vadd.f32 %v1205_v18, %v9870_v12  ;;  %v6295_v42 = vpop.permute.xlu1 %1566  ;;  %v9872_v44 = vld [vmem:[#allocation10_spill] sm:$0xff]  ;;  %v9876_v40 = vld [vmem:[#allocation213_spill] sm:$0xff] }
 0x22d   :  { %9863 = vst [vmem:[#allocation206_spill] sm:$0xff] %v6265_v11  ;;  %v6285_v3 = vadd.f32 %v1203_v16, %v9866_v48  ;;  %v9868_v11 = vld [vmem:[#allocation69_spill] sm:$0xff]  ;;  %v1215_v36 = vmul.f32 %v4182_v17, %v5393_v57  ;;  %v9874_v6 = vld [vmem:[#allocation219_spill] sm:$0xff]  ;;  %v6304_v16 = vadd.f32 %v1206_v31, %v9876_v40  ;;  %v3212_v31 = vld [vmem:[%s8901_s0 + $0xb0] sm:$0xff] }
 0x22e   :  { %9865 = vst [vmem:[#allocation65_spill] sm:$0xff] %v6277_v59  ;;  %v6288_v1 = vadd.f32 %v1204_v39, %v9868_v11  ;;  %9871 = vst [vmem:[#allocation68_spill] sm:$0xff] %v6291_v7  ;;  %v6298_v59 = vadd.f32 %v1207_v55, %v9872_v44  ;;  %v6301_v32 = vadd.f32 %v1208_v60, %v9874_v6  ;;  %v9878_v48 = vld [vmem:[#allocation113_spill] sm:$0xff]  ;;  %v6310_v39 = vpop.permute.xlu0 %1578  ;;  %v9881_v7 = vld [vmem:[#allocation11_spill] sm:$0xff] }
 0x22f   :  { %9867 = vst [vmem:[#allocation203_spill] sm:$0xff] %v6285_v3  ;;  %9877 = vst [vmem:[#allocation67_spill] sm:$0xff] %v6304_v16  ;;  %v1216_v11 = vmul.f32 %v4176_v53, %v9878_v48  ;;  %v1217_v12 = vmul.f32 %v4179_v22, %v9878_v48  ;;  %v9879_v57 = vld [vmem:[#allocation221_spill] sm:$0xff]  ;;  %v6316_v55 = vadd.f32 %v1210_v33, %v9881_v7  ;;  %2509 = vperm.xlu1 %3155, %v3212_v31   ;;  %v9883_v60 = vld [vmem:[#allocation12_spill] sm:$0xff] }
 0x230   :  { %9869 = vst [vmem:[#allocation204_spill] sm:$0xff] %v6288_v1  ;;  %9873 = vst [vmem:[#allocation210_spill] sm:$0xff] %v6298_v59  ;;  %v6313_v18 = vadd.f32 %v1209_v4, %v9879_v57  ;;  %v1218_v6 = vmul.f32 %v4182_v17, %v9878_v48  ;;  %v6324_v44 = vadd.f32 %v1213_v2, %v9883_v60  ;;  %v9885_v40 = vld [vmem:[#allocation217_spill] sm:$0xff]  ;;  %v9887_v1 = vld [vmem:[#allocation218_spill] sm:$0xff] }
 0x231   :  { %9875 = vst [vmem:[#allocation211_spill] sm:$0xff] %v6301_v32  ;;  %9882 = vst [vmem:[#allocation109_spill] sm:$0xff] %v6316_v55  ;;  %v6327_v16 = vadd.f32 %v1211_v45, %v9885_v40  ;;  %v6330_v4 = vadd.f32 %v1212_v50, %v9887_v1  ;;  %v9889_v57 = vld [vmem:[#allocation84_spill] sm:$0xff]  ;;  %v9890_v48 = vld [vmem:[#allocation82_spill] sm:$0xff] }
 0x232   :  { %9880 = vst [vmem:[#allocation208_spill] sm:$0xff] %v6313_v18  ;;  %9884 = vst [vmem:[#allocation70_spill] sm:$0xff] %v6324_v44  ;;  %v1219_v7 = vmul.f32 %v4176_v53, %v9889_v57  ;;  %v1220_v33 = vmul.f32 %v4179_v22, %v9889_v57  ;;  %v1756_v55 = vmul.f32 %v9890_v48, %v5504_v5  ;;  %v3213_v2 = vld [vmem:[%s8901_s0 + $0xd8] sm:$0xff]  ;;  %v9891_v31 = vld [vmem:[#allocation224_spill] sm:$0xff] }
 0x233   :  { %9886 = vst [vmem:[#allocation209_spill] sm:$0xff] %v6327_v16  ;;  %9888 = vst [vmem:[#allocation214_spill] sm:$0xff] %v6330_v4  ;;  %2529 = vperm.xlu0 %3154, %v3213_v2   ;;  %v6342_v45 = vadd.f32 %v1214_v35, %v9891_v31  ;;  %v9893_v1 = vld [vmem:[#allocation32_spill] sm:$0xff]  ;;  %v9894_v60 = vld [vmem:[#allocation95_spill] sm:$0xff]  ;;  %v1759_v4 = vmul.f32 %v9890_v48, %v5516_v51  ;;  %v6350_v16 = vpop.permute.xlu1 %1574  ;;  %v6359_v31 = vpop.permute.xlu0 %1586  ;;  %v6369_v15 = vmul.f32 %v4182_v17, %v9889_v57 }
 0x234   :  { %v1757_v50 = vmul.f32 %v9893_v1, %v5504_v5  ;;  %v1758_v40 = vmul.f32 %v9894_v60, %v5504_v5  ;;  %v9895_v44 = vld [vmem:[#allocation225_spill] sm:$0xff]  ;;  %v9897_v32 = vld [vmem:[#allocation116_spill] sm:$0xff]  ;;  %v9900_v5 = vld [vmem:[#allocation222_spill] sm:$0xff] }
 0x235   :  { %9892 = vst [vmem:[#allocation215_spill] sm:$0xff] %v6342_v45  ;;  %v6353_v18 = vadd.f32 %v1215_v36, %v9895_v44  ;;  %v1222_v2 = vmul.f32 %v4176_v53, %v9897_v32  ;;  %v1223_v35 = vmul.f32 %v4179_v22, %v9897_v32  ;;  %v9898_v45 = vld [vmem:[#allocation13_spill] sm:$0xff]  ;;  %v6365_v3 = vadd.f32 %v1217_v12, %v9900_v5  ;;  %v3214_v22 = vld [vmem:[%s8901_s0 + $0xc0] sm:$0xff]  ;;  %v3215_v57 = vld [vmem:[%s8901_s0 + $0xe8] sm:$0xff] }
 0x236   :  { %v6362_v59 = vadd.f32 %v1216_v11, %v9898_v45  ;;  %9902 = vst [vmem:[#allocation219_spill] sm:$0xff] %v6369_v15  ;;  %v1224_v36 = vmul.f32 %v4182_v17, %v9897_v32  ;;  %v1760_v53 = vmul.f32 %v9893_v1, %v5516_v51  ;;  %2517 = vperm.xlu1 %3155, %v3214_v22   ;;  %v9903_v11 = vld [vmem:[#allocation223_spill] sm:$0xff]  ;;  %v9905_v17 = vld [vmem:[#allocation14_spill] sm:$0xff]  ;;  %v9909_v15 = vld [vmem:[#allocation232_spill] sm:$0xff] }
 0x237   :  { %9896 = vst [vmem:[#allocation69_spill] sm:$0xff] %v6353_v18  ;;  %9901 = vst [vmem:[#allocation10_spill] sm:$0xff] %v6365_v3  ;;  %v6379_v44 = vadd.f32 %v1218_v6, %v9903_v11  ;;  %v1761_v12 = vmul.f32 %v9894_v60, %v5516_v51  ;;  %2537 = vperm.xlu0 %3154, %v3215_v57   ;;  %v6387_v32 = vadd.f32 %v1219_v7, %v9905_v17  ;;  %v9907_v45 = vld [vmem:[#allocation227_spill] sm:$0xff]  ;;  %v6395_v22 = vpop.permute.xlu1 %1582  ;;  %v9910_v11 = vld [vmem:[#allocation233_spill] sm:$0xff]  ;;  %v6404_v57 = vpop.permute.xlu0 %1594 }
 0x238   :  { %9899 = vst [vmem:[#allocation212_spill] sm:$0xff] %v6362_v59  ;;  %v6390_v5 = vadd.f32 %v1220_v33, %v9907_v45  ;;  %v1972_v18 = vadd.f32 %v1756_v55, %v9909_v15  ;;  %v1762_v6 = vmul.f32 %v9890_v48, %v5553_v20  ;;  %v1973_v51 = vadd.f32 %v1757_v50, %v9910_v11  ;;  %v9912_v59 = vld [vmem:[#allocation229_spill] sm:$0xff]  ;;  %v9915_v17 = vld [vmem:[#allocation15_spill] sm:$0xff] }
 0x239   :  { %9904 = vst [vmem:[#allocation213_spill] sm:$0xff] %v6379_v44  ;;  %9906 = vst [vmem:[#allocation113_spill] sm:$0xff] %v6387_v32  ;;  %v9911_v44 = vld [vmem:[#allocation234_spill] sm:$0xff]  ;;  %v1975_v27 = vadd.f32 %v1759_v4, %v9912_v59  ;;  %v1763_v7 = vmul.f32 %v9893_v1, %v5553_v20  ;;  %v1764_v33 = vmul.f32 %v9894_v60, %v5553_v20  ;;  %v9913_v15 = vld [vmem:[#allocation17_spill] sm:$0xff] }
 0x23a   :  { %9908 = vst [vmem:[#allocation221_spill] sm:$0xff] %v6390_v5  ;;  %v1974_v3 = vadd.f32 %v1758_v40, %v9911_v44  ;;  %v6407_v55 = vadd.f32 %v1222_v2, %v9913_v15  ;;  %v6410_v45 = vadd.f32 %v1223_v35, %v9915_v17  ;;  %v9917_v5 = vld [vmem:[#allocation127_spill] sm:$0xff]  ;;  %v3216_v4 = vld [vmem:[%s8901_s0 + $0xd0] sm:$0xff]  ;;  %v9918_v20 = vld [vmem:[#allocation226_spill] sm:$0xff]  ;;  %v1765_v11 = vmul.f32 %v9890_v48, %v5604_v23 }
 0x23b   :  { %v1768_v50 = vmul.f32 %v9890_v48, %v9917_v5  ;;  %v1769_v59 = vmul.f32 %v9893_v1, %v9917_v5  ;;  %2525 = vperm.xlu1 %3155, %v3216_v4   ;;  %v6420_v40 = vadd.f32 %v1224_v36, %v9918_v20  ;;  %v9920_v44 = vld [vmem:[#allocation230_spill] sm:$0xff]  ;;  %v1770_v35 = vmul.f32 %v9894_v60, %v9917_v5  ;;  %v3217_v15 = vld [vmem:[%s8901_s0 + $0xf8] sm:$0xff]  ;;  %v9922_v4 = vld [vmem:[#allocation231_spill] sm:$0xff]  ;;  %v6434_v36 = vpop.permute.xlu1 %1590 }
 0x23c   :  { %9914 = vst [vmem:[#allocation11_spill] sm:$0xff] %v6407_v55  ;;  %9916 = vst [vmem:[#allocation12_spill] sm:$0xff] %v6410_v45  ;;  %v1976_v2 = vadd.f32 %v1760_v53, %v9920_v44  ;;  %2545 = vperm.xlu0 %3154, %v3217_v15   ;;  %v9921_v17 = vld [vmem:[#allocation97_spill] sm:$0xff]  ;;  %v1977_v45 = vadd.f32 %v1761_v12, %v9922_v4  ;;  %v9924_v20 = vld [vmem:[#allocation72_spill] sm:$0xff]  ;;  %v1766_v15 = vmul.f32 %v9893_v1, %v5604_v23  ;;  %v6450_v12 = vpop.permute.xlu0 %1602 }
 0x23d   :  { %9919 = vst [vmem:[#allocation217_spill] sm:$0xff] %v6420_v40  ;;  %v6431_v32 = vadd.f32 %v9921_v17, %v1972_v18  ;;  %9923 = vst [vmem:[#allocation218_spill] sm:$0xff] %v6434_v36  ;;  %v6437_v53 = vadd.f32 %v9924_v20, %v1973_v51  ;;  %v9925_v44 = vld [vmem:[#allocation100_spill] sm:$0xff]  ;;  %v6443_v40 = vadd.f32 %v9921_v17, %v1975_v27  ;;  %v9928_v55 = vld [vmem:[#allocation235_spill] sm:$0xff] }
 0x23e   :  { %v6440_v5 = vadd.f32 %v9925_v44, %v1974_v3  ;;  %v1978_v34 = vadd.f32 %v1762_v6, %v9928_v55  ;;  %v1767_v18 = vmul.f32 %v9894_v60, %v5604_v23  ;;  %9929 = vst [vmem:[#allocation224_spill] sm:$0xff] %v6450_v12  ;;  %v9930_v4 = vld [vmem:[#allocation236_spill] sm:$0xff]  ;;  %v9931_v51 = vld [vmem:[#allocation237_spill] sm:$0xff]  ;;  %v1771_v3 = vmul.f32 %v9890_v48, %v5653_v14  ;;  %v3218_v27 = vld [vmem:[%s8901_s0 + $0xe0] sm:$0xff] }
 0x23f   :  { %9927 = vst [vmem:[#allocation82_spill] sm:$0xff] %v6443_v40  ;;  %v1979_v37 = vadd.f32 %v1763_v7, %v9930_v4  ;;  %v1980_v25 = vadd.f32 %v1764_v33, %v9931_v51  ;;  %2533 = vperm.xlu1 %3155, %v3218_v27   ;;  %v6460_v6 = vadd.f32 %v9924_v20, %v1976_v2  ;;  %v9933_v55 = vld [vmem:[#allocation19_spill] sm:$0xff]  ;;  %v9934_v23 = vld [vmem:[#allocation29_spill] sm:$0xff]  ;;  %v9935_v51 = vld [vmem:[#allocation238_spill] sm:$0xff] }
 0x240   :  { %9926 = vst [vmem:[#allocation84_spill] sm:$0xff] %v6440_v5  ;;  %v1984_v40 = vadd.f32 %v1768_v50, %v9933_v55  ;;  %v1985_v36 = vadd.f32 %v1769_v59, %v9934_v23  ;;  %v1774_v7 = vmul.f32 %v9890_v48, %v5616_v41  ;;  %v1775_v33 = vmul.f32 %v9893_v1, %v5616_v41  ;;  %v3219_v4 = vld [vmem:[%s8901_s0 + $0x108] sm:$0xff]  ;;  %v6481_v23 = vpop.permute.xlu1 %1598 }
 0x241   :  { %9932 = vst [vmem:[#allocation32_spill] sm:$0xff] %v6460_v6  ;;  %2553 = vperm.xlu0 %3154, %v3219_v4   ;;  %v1981_v27 = vadd.f32 %v1765_v11, %v9935_v51  ;;  %v6473_v2 = vadd.f32 %v9925_v44, %v1977_v45  ;;  %v1776_v50 = vmul.f32 %v9894_v60, %v5616_v41  ;;  %9937 = vst [vmem:[#allocation225_spill] sm:$0xff] %v6481_v23  ;;  %v6486_v4 = vpop.permute.xlu0 %1610  ;;  %v9940_v11 = vld [vmem:[#allocation239_spill] sm:$0xff]  ;;  %v9941_v45 = vld [vmem:[#allocation24_spill] sm:$0xff] }
 0x242   :  { %v1772_v59 = vmul.f32 %v9893_v1, %v5653_v14  ;;  %v1773_v55 = vmul.f32 %v9894_v60, %v5653_v14  ;;  %v6484_v6 = vadd.f32 %v9921_v17, %v1978_v34  ;;  %9939 = vst [vmem:[#allocation13_spill] sm:$0xff] %v6486_v4  ;;  %v1982_v51 = vadd.f32 %v1766_v15, %v9940_v11  ;;  %v3220_v14 = vld [vmem:[%s8901_s0 + $0xf0] sm:$0xff]  ;;  %v9944_v23 = vld [vmem:[#allocation91_spill] sm:$0xff] }
 0x243   :  { %9936 = vst [vmem:[#allocation95_spill] sm:$0xff] %v6473_v2  ;;  %v1983_v2 = vadd.f32 %v1767_v18, %v9941_v45  ;;  %v6491_v12 = vadd.f32 %v9924_v20, %v1979_v37  ;;  %v6494_v41 = vadd.f32 %v9925_v44, %v1980_v25  ;;  %2541 = vperm.xlu1 %3155, %v3220_v14   ;;  %v9948_v37 = vld [vmem:[#allocation135_spill] sm:$0xff]  ;;  %v9951_v14 = vld [vmem:[#allocation18_spill] sm:$0xff] }
 0x244   :  { %9938 = vst [vmem:[#allocation116_spill] sm:$0xff] %v6484_v6  ;;  %v1987_v34 = vadd.f32 %v1771_v3, %v9944_v23  ;;  %v9945_v6 = vld [vmem:[#allocation76_spill] sm:$0xff]  ;;  %v6502_v4 = vadd.f32 %v9921_v17, %v1984_v40  ;;  %v6505_v15 = vadd.f32 %v9924_v20, %v1985_v36  ;;  %v1780_v18 = vmul.f32 %v9890_v48, %v9948_v37  ;;  %v3221_v3 = vld [vmem:[%s8901_s0 + $0x118] sm:$0xff] }
 0x245   :  { %9942 = vst [vmem:[#allocation222_spill] sm:$0xff] %v6491_v12  ;;  %9943 = vst [vmem:[#allocation223_spill] sm:$0xff] %v6494_v41  ;;  %v1986_v5 = vadd.f32 %v1770_v35, %v9945_v6  ;;  %v1781_v25 = vmul.f32 %v9893_v1, %v9948_v37  ;;  %v1777_v11 = vmul.f32 %v9890_v48, %v5704_v8  ;;  %2561 = vperm.xlu0 %3154, %v3221_v3   ;;  %v6523_v6 = vpop.permute.xlu1 %1606  ;;  %v9950_v23 = vld [vmem:[#allocation25_spill] sm:$0xff]  ;;  %v6529_v41 = vpop.permute.xlu0 %1618 }
 0x246   :  { %9946 = vst [vmem:[#allocation14_spill] sm:$0xff] %v6502_v4  ;;  %9947 = vst [vmem:[#allocation227_spill] sm:$0xff] %v6505_v15  ;;  %v6517_v40 = vadd.f32 %v9921_v17, %v1981_v27  ;;  %v1782_v35 = vmul.f32 %v9894_v60, %v9948_v37  ;;  %v1778_v36 = vmul.f32 %v9893_v1, %v5704_v8  ;;  %v9954_v37 = vld [vmem:[#allocation88_spill] sm:$0xff] }
 0x247   :  { %9949 = vst [vmem:[#allocation232_spill] sm:$0xff] %v6523_v6  ;;  %v1988_v45 = vadd.f32 %v1772_v59, %v9950_v23  ;;  %v1989_v15 = vadd.f32 %v1773_v55, %v9951_v14  ;;  %v1779_v4 = vmul.f32 %v9894_v60, %v5704_v8  ;;  %9952 = vst [vmem:[#allocation233_spill] sm:$0xff] %v6529_v41  ;;  %v3222_v6 = vld [vmem:[%s8901_s0 + $0x100] sm:$0xff]  ;;  %v9957_v55 = vld [vmem:[#allocation89_spill] sm:$0xff] }
 0x248   :  { %v6532_v27 = vadd.f32 %v9924_v20, %v1982_v51  ;;  %v6535_v3 = vadd.f32 %v9925_v44, %v1983_v2  ;;  %v1990_v12 = vadd.f32 %v1774_v7, %v9954_v37  ;;  %2549 = vperm.xlu1 %3155, %v3222_v6   ;;  %v6542_v59 = vadd.f32 %v9921_v17, %v1987_v34  ;;  %v9958_v51 = vld [vmem:[#allocation23_spill] sm:$0xff]  ;;  %v9963_v41 = vld [vmem:[#allocation22_spill] sm:$0xff] }
 0x249   :  { %v6545_v8 = vadd.f32 %v9925_v44, %v1986_v5  ;;  %v1991_v23 = vadd.f32 %v1775_v33, %v9957_v55  ;;  %v1992_v14 = vadd.f32 %v1776_v50, %v9958_v51  ;;  %v1786_v2 = vmul.f32 %v9890_v48, %v5716_v56  ;;  %v3223_v34 = vld [vmem:[%s8901_s0 + $0x128] sm:$0xff]  ;;  %v6563_v50 = vpop.permute.xlu1 %1614 }
 0x24a   :  { %9953 = vst [vmem:[#allocation234_spill] sm:$0xff] %v6535_v3  ;;  %9955 = vst [vmem:[#allocation229_spill] sm:$0xff] %v6542_v59  ;;  %v6553_v7 = vmul.f32 %v9893_v1, %v5716_v56  ;;  %v1783_v6 = vmul.f32 %v9890_v48, %v5753_v29  ;;  %2569 = vperm.xlu0 %3154, %v3223_v34   ;;  %v9959_v5 = vld [vmem:[#allocation31_spill] sm:$0xff]  ;;  %v1788_v33 = vmul.f32 %v9894_v60, %v5716_v56 }
 0x24b   :  { %9956 = vst [vmem:[#allocation17_spill] sm:$0xff] %v6545_v8  ;;  %v1993_v37 = vadd.f32 %v1777_v11, %v9959_v5  ;;  %9960 = vst [vmem:[#allocation15_spill] sm:$0xff] %v6563_v50  ;;  %v6566_v55 = vadd.f32 %v9924_v20, %v1988_v45  ;;  %v6569_v51 = vadd.f32 %v9925_v44, %v1989_v15  ;;  %v6576_v11 = vpop.permute.xlu0 %1626  ;;  %v9965_v5 = vld [vmem:[#allocation81_spill] sm:$0xff] }
 0x24c   :  { %v1994_v8 = vadd.f32 %v1778_v36, %v9963_v41  ;;  %v1784_v59 = vmul.f32 %v9893_v1, %v5753_v29  ;;  %v1785_v34 = vmul.f32 %v9894_v60, %v5753_v29  ;;  %9964 = vst [vmem:[#allocation230_spill] sm:$0xff] %v6576_v11  ;;  %v1995_v56 = vadd.f32 %v1779_v4, %v9965_v5  ;;  %v3224_v41 = vld [vmem:[%s8901_s0 + $0x110] sm:$0xff]  ;;  %v9969_v36 = vld [vmem:[#allocation94_spill] sm:$0xff]  ;;  %v3225_v5 = vld [vmem:[%s8901_s0 + $0x138] sm:$0xff] }
 0x24d   :  { %9961 = vst [vmem:[#allocation127_spill] sm:$0xff] %v6566_v55  ;;  %9962 = vst [vmem:[#allocation226_spill] sm:$0xff] %v6569_v51  ;;  %v6580_v50 = vadd.f32 %v9921_v17, %v1990_v12  ;;  %v1789_v45 = vmul.f32 %v9890_v48, %v5804_v46  ;;  %2557 = vperm.xlu1 %3155, %v3224_v41   ;;  %v6588_v15 = vadd.f32 %v9924_v20, %v1991_v23  ;;  %v9978_v51 = vld [vmem:[#allocation30_spill] sm:$0xff] }
 0x24e   :  { %v6591_v29 = vadd.f32 %v9925_v44, %v1992_v14  ;;  %v1996_v11 = vadd.f32 %v1780_v18, %v9969_v36  ;;  %v6596_v12 = vmul.f32 %v9890_v48, %v5765_v47  ;;  %v6600_v4 = vmul.f32 %v9893_v1, %v5765_v47  ;;  %2577 = vperm.xlu0 %3154, %v3225_v5   ;;  %v9971_v14 = vld [vmem:[#allocation93_spill] sm:$0xff] }
 0x24f   :  { %9966 = vst [vmem:[#allocation97_spill] sm:$0xff] %v6580_v50  ;;  %9967 = vst [vmem:[#allocation231_spill] sm:$0xff] %v6588_v15  ;;  %v6606_v23 = vadd.f32 %v9921_v17, %v1993_v37  ;;  %v1999_v41 = vadd.f32 %v1783_v6, %v9971_v14  ;;  %v6611_v18 = vmul.f32 %v9894_v60, %v5765_v47  ;;  %v6617_v15 = vpop.permute.xlu1 %1622  ;;  %v6622_v5 = vpop.permute.xlu0 %1634  ;;  %v9976_v6 = vld [vmem:[#allocation33_spill] sm:$0xff]  ;;  %v9977_v47 = vld [vmem:[#allocation27_spill] sm:$0xff] }
 0x250   :  { %9968 = vst [vmem:[#allocation72_spill] sm:$0xff] %v6591_v29  ;;  %v1790_v36 = vmul.f32 %v9893_v1, %v5804_v46  ;;  %v1791_v29 = vmul.f32 %v9894_v60, %v5804_v46  ;;  %9972 = vst [vmem:[#allocation235_spill] sm:$0xff] %v6617_v15  ;;  %v6620_v50 = vadd.f32 %v9924_v20, %v1994_v8  ;;  %v3226_v46 = vld [vmem:[%s8901_s0 + $0x120] sm:$0xff]  ;;  %v9979_v15 = vld [vmem:[#allocation71_spill] sm:$0xff] }
 0x251   :  { %9970 = vst [vmem:[#allocation100_spill] sm:$0xff] %v6606_v23  ;;  %9974 = vst [vmem:[#allocation237_spill] sm:$0xff] %v6622_v5  ;;  %v6625_v37 = vadd.f32 %v9925_v44, %v1995_v56  ;;  %v2000_v14 = vadd.f32 %v1784_v59, %v9976_v6  ;;  %v2001_v23 = vadd.f32 %v1785_v34, %v9977_v47  ;;  %2565 = vperm.xlu1 %3155, %v3226_v46   ;;  %v9980_v8 = vld [vmem:[#allocation92_spill] sm:$0xff]  ;;  %v9982_v56 = vld [vmem:[#allocation26_spill] sm:$0xff] }
 0x252   :  { %9973 = vst [vmem:[#allocation236_spill] sm:$0xff] %v6620_v50  ;;  %v1997_v55 = vadd.f32 %v1781_v25, %v9978_v51  ;;  %v2005_v3 = vadd.f32 %v1789_v45, %v9979_v15  ;;  %v1998_v50 = vadd.f32 %v1782_v35, %v9980_v8  ;;  %v6636_v5 = vadd.f32 %v9921_v17, %v1996_v11  ;;  %v3227_v35 = vld [vmem:[%s8901_s0 + $0x148] sm:$0xff]  ;;  %v9984_v15 = vld [vmem:[#allocation101_spill] sm:$0xff]  ;;  %v9985_v47 = vld [vmem:[#allocation34_spill] sm:$0xff] }
 0x253   :  { %9975 = vst [vmem:[#allocation19_spill] sm:$0xff] %v6625_v37  ;;  %v2002_v37 = vadd.f32 %v1786_v2, %v9982_v56  ;;  %v6641_v59 = vmul.f32 %v9890_v48, %v5816_v52  ;;  %v6645_v25 = vmul.f32 %v9893_v1, %v5816_v52  ;;  %v1795_v51 = vmul.f32 %v9890_v48, %v5853_v24  ;;  %v6661_v45 = vpop.permute.xlu1 %1630  ;;  %v6667_v56 = vpop.permute.xlu0 %1642 }
 0x254   :  { %9981 = vst [vmem:[#allocation29_spill] sm:$0xff] %v6636_v5  ;;  %2585 = vperm.xlu0 %3154, %v3227_v35   ;;  %v6653_v34 = vadd.f32 %v9921_v17, %v1999_v41  ;;  %v6657_v2 = vmul.f32 %v9894_v60, %v5816_v52  ;;  %v1796_v11 = vmul.f32 %v9893_v1, %v5853_v24  ;;  %9983 = vst [vmem:[#allocation238_spill] sm:$0xff] %v6661_v45 }
 0x255   :  { %v2006_v6 = vadd.f32 %v1790_v36, %v9984_v15  ;;  %v2007_v46 = vadd.f32 %v1791_v29, %v9985_v47  ;;  %v1797_v8 = vmul.f32 %v9894_v60, %v5853_v24  ;;  %9986 = vst [vmem:[#allocation239_spill] sm:$0xff] %v6667_v56  ;;  %v6670_v41 = vadd.f32 %v9924_v20, %v2000_v14  ;;  %v3228_v36 = vld [vmem:[%s8901_s0 + $0x130] sm:$0xff]  ;;  %v9989_v15 = vld [vmem:[#allocation79_spill] sm:$0xff] }
 0x256   :  { %v6673_v52 = vadd.f32 %v9925_v44, %v2001_v23  ;;  %v6676_v35 = vadd.f32 %v9924_v20, %v1997_v55  ;;  %2573 = vperm.xlu1 %3155, %v3228_v36   ;;  %v6682_v29 = vadd.f32 %v9921_v17, %v2005_v3  ;;  %v6685_v24 = vadd.f32 %v9925_v44, %v1998_v50  ;;  %v9990_v47 = vld [vmem:[#allocation35_spill] sm:$0xff]  ;;  %v3229_v50 = vld [vmem:[%s8901_s0 + $0x158] sm:$0xff] }
 0x257   :  { %v2003_v14 = vadd.f32 %v6553_v7, %v9989_v15  ;;  %v2004_v23 = vadd.f32 %v1788_v33, %v9990_v47  ;;  %v6692_v55 = vmul.f32 %v9890_v48, %v5865_v30  ;;  %v6696_v56 = vmul.f32 %v9893_v1, %v5865_v30  ;;  %v9991_v36 = vld [vmem:[#allocation37_spill] sm:$0xff]  ;;  %v6708_v15 = vpop.permute.xlu1 %1638 }
 0x258   :  { %9987 = vst [vmem:[#allocation24_spill] sm:$0xff] %v6676_v35  ;;  %9988 = vst [vmem:[#allocation91_spill] sm:$0xff] %v6685_v24  ;;  %v1801_v3 = vmul.f32 %v9890_v48, %v5904_v19  ;;  %2593 = vperm.xlu0 %3154, %v3229_v50   ;;  %v2011_v7 = vadd.f32 %v1795_v51, %v9991_v36  ;;  %v6706_v33 = vmul.f32 %v9894_v60, %v5865_v30  ;;  %v9995_v24 = vld [vmem:[#allocation105_spill] sm:$0xff]  ;;  %v6721_v50 = vpop.permute.xlu0 %1650  ;;  %v9997_v30 = vld [vmem:[#allocation74_spill] sm:$0xff] }
 0x259   :  { %9992 = vst [vmem:[#allocation76_spill] sm:$0xff] %v6708_v15  ;;  %v6711_v47 = vadd.f32 %v9924_v20, %v2006_v6  ;;  %v6714_v45 = vadd.f32 %v9925_v44, %v2007_v46  ;;  %v2012_v35 = vadd.f32 %v1796_v11, %v9995_v24  ;;  %v1802_v5 = vmul.f32 %v9893_v1, %v5904_v19  ;;  %v3230_v11 = vld [vmem:[%s8901_s0 + $0x140] sm:$0xff]  ;;  %v10001_v24 = vld [vmem:[#allocation99_spill] sm:$0xff] }
 0x25a   :  { %v1803_v51 = vmul.f32 %v9894_v60, %v5904_v19  ;;  %9996 = vst [vmem:[#allocation18_spill] sm:$0xff] %v6721_v50  ;;  %v2013_v36 = vadd.f32 %v1797_v8, %v9997_v30  ;;  %v6725_v15 = vadd.f32 %v9921_v17, %v2002_v37  ;;  %v1807_v6 = vmul.f32 %v9890_v48, %v5950_v21 }
 0x25b   :  { %9993 = vst [vmem:[#allocation135_spill] sm:$0xff] %v6711_v47  ;;  %9994 = vst [vmem:[#allocation25_spill] sm:$0xff] %v6714_v45  ;;  %2581 = vperm.xlu1 %3155, %v3230_v11   ;;  %v6733_v46 = vadd.f32 %v9924_v20, %v2003_v14  ;;  %v6736_v19 = vadd.f32 %v9925_v44, %v2004_v23  ;;  %v2008_v8 = vadd.f32 %v6596_v12, %v10001_v24  ;;  %v3231_v11 = vld [vmem:[%s8901_s0 + $0x168] sm:$0xff]  ;;  %v10010_v47 = vld [vmem:[#allocation21_spill] sm:$0xff] }
 0x25c   :  { %9998 = vst [vmem:[#allocation88_spill] sm:$0xff] %v6725_v15  ;;  %v6742_v37 = vmul.f32 %v9890_v48, %v5916_v38  ;;  %v1808_v30 = vmul.f32 %v9893_v1, %v5950_v21  ;;  %2601 = vperm.xlu0 %3154, %v3231_v11   ;;  %v6750_v14 = vadd.f32 %v9921_v17, %v2011_v7  ;;  %v10003_v23 = vld [vmem:[#allocation75_spill] sm:$0xff]  ;;  %v6768_v7 = vpop.permute.xlu0 %1658 }
 0x25d   :  { %9999 = vst [vmem:[#allocation89_spill] sm:$0xff] %v6733_v46  ;;  %10000 = vst [vmem:[#allocation23_spill] sm:$0xff] %v6736_v19  ;;  %v2017_v50 = vadd.f32 %v1801_v3, %v10003_v23  ;;  %v6755_v12 = vmul.f32 %v9893_v1, %v5916_v38  ;;  %v6759_v24 = vmul.f32 %v9894_v60, %v5916_v38  ;;  %v6763_v46 = vpop.permute.xlu1 %1646  ;;  %v10008_v23 = vld [vmem:[#allocation39_spill] sm:$0xff] }
 0x25e   :  { %10002 = vst [vmem:[#allocation31_spill] sm:$0xff] %v6750_v14  ;;  %v1809_v19 = vmul.f32 %v9894_v60, %v5950_v21  ;;  %10004 = vst [vmem:[#allocation22_spill] sm:$0xff] %v6763_v46  ;;  %v6766_v11 = vadd.f32 %v9924_v20, %v2012_v35  ;;  %v6771_v3 = vadd.f32 %v9925_v44, %v2013_v36  ;;  %v10009_v14 = vld [vmem:[#allocation38_spill] sm:$0xff]  ;;  %v3232_v21 = vld [vmem:[%s8901_s0 + $0x150] sm:$0xff] }
 0x25f   :  { %10006 = vst [vmem:[#allocation94_spill] sm:$0xff] %v6768_v7  ;;  %v2018_v15 = vadd.f32 %v1802_v5, %v10008_v23  ;;  %v2019_v45 = vadd.f32 %v1803_v51, %v10009_v14  ;;  %v2009_v38 = vadd.f32 %v6600_v4, %v10010_v47  ;;  %2589 = vperm.xlu1 %3155, %v3232_v21   ;;  %v10011_v46 = vld [vmem:[#allocation73_spill] sm:$0xff]  ;;  %v10013_v36 = vld [vmem:[#allocation108_spill] sm:$0xff] }
 0x260   :  { %10005 = vst [vmem:[#allocation81_spill] sm:$0xff] %v6766_v11  ;;  %10007 = vst [vmem:[#allocation93_spill] sm:$0xff] %v6771_v3  ;;  %v2010_v35 = vadd.f32 %v6611_v18, %v10011_v46  ;;  %v6783_v7 = vadd.f32 %v9921_v17, %v2008_v8  ;;  %v2023_v3 = vadd.f32 %v1807_v6, %v10013_v36  ;;  %v10014_v11 = vld [vmem:[#allocation36_spill] sm:$0xff]  ;;  %v3233_v18 = vld [vmem:[%s8901_s0 + $0x178] sm:$0xff]  ;;  %v6816_v36 = vpop.permute.xlu0 %1666 }
 0x261   :  { %v2014_v5 = vadd.f32 %v6641_v59, %v10014_v11  ;;  %v6790_v51 = vmul.f32 %v9890_v48, %v5959_v0  ;;  %v6794_v4 = vmul.f32 %v9893_v1, %v5959_v0  ;;  %2609 = vperm.xlu0 %3154, %v3233_v18   ;;  %v6800_v47 = vadd.f32 %v9921_v17, %v2017_v50  ;;  %v10015_v6 = vld [vmem:[#allocation41_spill] sm:$0xff]  ;;  %v6811_v11 = vpop.permute.xlu1 %1654  ;;  %v10017_v23 = vld [vmem:[#allocation80_spill] sm:$0xff] }
 0x262   :  { %10012 = vst [vmem:[#allocation33_spill] sm:$0xff] %v6783_v7  ;;  %v2024_v46 = vadd.f32 %v1808_v30, %v10015_v6  ;;  %v6805_v59 = vmul.f32 %v9894_v60, %v5959_v0  ;;  %v1813_v8 = vmul.f32 %v9890_v48, %v5995_v61  ;;  %v1814_v14 = vmul.f32 %v9893_v1, %v5995_v61  ;;  %v3234_v6 = vld [vmem:[%s8901_s0 + $0x160] sm:$0xff] }
 0x263   :  { %10016 = vst [vmem:[#allocation27_spill] sm:$0xff] %v6811_v11  ;;  %v2025_v21 = vadd.f32 %v1809_v19, %v10017_v23  ;;  %v1815_v50 = vmul.f32 %v9894_v60, %v5995_v61  ;;  %10018 = vst [vmem:[#allocation30_spill] sm:$0xff] %v6816_v36  ;;  %v6819_v30 = vadd.f32 %v9924_v20, %v2018_v15  ;;  %2597 = vperm.xlu1 %3155, %v3234_v6   ;;  %v10023_v23 = vld [vmem:[#allocation102_spill] sm:$0xff]  ;;  %v10024_v36 = vld [vmem:[#allocation103_spill] sm:$0xff] }
 0x264   :  { %v6822_v0 = vadd.f32 %v9925_v44, %v2019_v45  ;;  %v6825_v18 = vadd.f32 %v9924_v20, %v2009_v38  ;;  %v6831_v19 = vadd.f32 %v9925_v44, %v2010_v35  ;;  %v6834_v61 = vadd.f32 %v9921_v17, %v2023_v3  ;;  %v3235_v3 = vld [vmem:[%s8901_s0 + $0x188] sm:$0xff]  ;;  %v6869_v7 = vpop.permute.xlu0 %1674 }
 0x265   :  { %v2015_v15 = vadd.f32 %v6645_v25, %v10023_v23  ;;  %v2016_v45 = vadd.f32 %v6657_v2, %v10024_v36  ;;  %v6842_v38 = vmul.f32 %v9890_v48, %v6010_v26  ;;  %v6846_v11 = vmul.f32 %v9893_v1, %v6010_v26  ;;  %2617 = vperm.xlu0 %3154, %v3235_v3   ;;  %v6860_v36 = vpop.permute.xlu1 %1662  ;;  %v10027_v23 = vld [vmem:[#allocation110_spill] sm:$0xff]  ;;  %v10030_v3 = vld [vmem:[#allocation43_spill] sm:$0xff] }
 0x266   :  { %10019 = vst [vmem:[#allocation71_spill] sm:$0xff] %v6822_v0  ;;  %10020 = vst [vmem:[#allocation92_spill] sm:$0xff] %v6825_v18  ;;  %v6850_v35 = vmul.f32 %v9894_v60, %v6010_v26  ;;  %v6856_v25 = vadd.f32 %v9924_v20, %v2024_v46  ;;  %v1819_v2 = vmul.f32 %v9890_v48, %v6050_v63  ;;  %v10028_v26 = vld [vmem:[#allocation111_spill] sm:$0xff]  ;;  %v10031_v0 = vld [vmem:[#allocation77_spill] sm:$0xff] }
 0x267   :  { %10021 = vst [vmem:[#allocation26_spill] sm:$0xff] %v6831_v19  ;;  %10022 = vst [vmem:[#allocation101_spill] sm:$0xff] %v6834_v61  ;;  %v6863_v6 = vadd.f32 %v9925_v44, %v2025_v21  ;;  %v2029_v61 = vadd.f32 %v1813_v8, %v10027_v23  ;;  %v2030_v19 = vadd.f32 %v1814_v14, %v10028_v26  ;;  %v3236_v8 = vld [vmem:[%s8901_s0 + $0x170] sm:$0xff] }
 0x268   :  { %10025 = vst [vmem:[#allocation34_spill] sm:$0xff] %v6856_v25  ;;  %10026 = vst [vmem:[#allocation79_spill] sm:$0xff] %v6860_v36  ;;  %v1820_v18 = vmul.f32 %v9893_v1, %v6050_v63  ;;  %v6872_v46 = vadd.f32 %v9921_v17, %v2014_v5  ;;  %v2031_v25 = vadd.f32 %v1815_v50, %v10030_v3  ;;  %2605 = vperm.xlu1 %3155, %v3236_v8   ;;  %v10034_v5 = vld [vmem:[#allocation107_spill] sm:$0xff] }
 0x269   :  { %10029 = vst [vmem:[#allocation35_spill] sm:$0xff] %v6869_v7  ;;  %v2020_v36 = vadd.f32 %v6692_v55, %v10031_v0  ;;  %v1821_v21 = vmul.f32 %v9894_v60, %v6050_v63  ;;  %v6883_v14 = vadd.f32 %v9924_v20, %v2015_v15  ;;  %v6886_v23 = vadd.f32 %v9925_v44, %v2016_v45  ;;  %v3237_v15 = vld [vmem:[%s8901_s0 + $0x198] sm:$0xff]  ;;  %v10035_v45 = vld [vmem:[#allocation78_spill] sm:$0xff]  ;;  %v6909_v3 = vpop.permute.xlu1 %1670 }
 0x26a   :  { %v2021_v50 = vadd.f32 %v6696_v56, %v10034_v5  ;;  %v6892_v55 = vmul.f32 %v9890_v48, %v6059_v43  ;;  %v6896_v63 = vmul.f32 %v9893_v1, %v6059_v43  ;;  %v6900_v0 = vmul.f32 %v9894_v60, %v6059_v43  ;;  %2625 = vperm.xlu0 %3154, %v3237_v15   ;;  %v10037_v43 = vld [vmem:[#allocation45_spill] sm:$0xff]  ;;  %v6920_v15 = vpop.permute.xlu0 %1682 }
 0x26b   :  { %10032 = vst [vmem:[#allocation37_spill] sm:$0xff] %v6883_v14  ;;  %10033 = vst [vmem:[#allocation105_spill] sm:$0xff] %v6886_v23  ;;  %v2022_v56 = vadd.f32 %v6706_v33, %v10035_v45  ;;  %v1825_v26 = vmul.f32 %v9890_v48, %v6095_v49  ;;  %v6912_v8 = vadd.f32 %v9921_v17, %v2029_v61 }
 0x26c   :  { %10036 = vst [vmem:[#allocation74_spill] sm:$0xff] %v6909_v3  ;;  %v6915_v5 = vadd.f32 %v9924_v20, %v2030_v19  ;;  %v2035_v7 = vadd.f32 %v1819_v2, %v10037_v43  ;;  %v1826_v23 = vmul.f32 %v9893_v1, %v6095_v49  ;;  %10038 = vst [vmem:[#allocation99_spill] sm:$0xff] %v6920_v15  ;;  %v10041_v3 = vld [vmem:[#allocation85_spill] sm:$0xff]  ;;  %v3238_v19 = vld [vmem:[%s8901_s0 + $0x180] sm:$0xff] }
 0x26d   :  { %v6923_v33 = vadd.f32 %v9925_v44, %v2031_v25  ;;  %v6926_v45 = vadd.f32 %v9921_v17, %v2020_v36  ;;  %v2036_v14 = vadd.f32 %v1820_v18, %v10041_v3  ;;  %v1827_v61 = vmul.f32 %v9894_v60, %v6095_v49  ;;  %2613 = vperm.xlu1 %3155, %v3238_v19   ;;  %v10043_v43 = vld [vmem:[#allocation121_spill] sm:$0xff]  ;;  %v10044_v25 = vld [vmem:[#allocation112_spill] sm:$0xff]  ;;  %v3239_v18 = vld [vmem:[%s8901_s0 + $0x1a8] sm:$0xff]  ;;  %v6960_v19 = vpop.permute.xlu1 %1678 }
 0x26e   :  { %v6935_v2 = vadd.f32 %v9924_v20, %v2021_v50  ;;  %v2037_v15 = vadd.f32 %v1821_v21, %v10043_v43  ;;  %v6942_v36 = vmul.f32 %v9890_v48, %v6110_v28  ;;  %v6946_v49 = vmul.f32 %v9893_v1, %v6110_v28  ;;  %2633 = vperm.xlu0 %3154, %v3239_v18   ;;  %v10046_v21 = vld [vmem:[#allocation83_spill] sm:$0xff] }
 0x26f   :  { %10039 = vst [vmem:[#allocation75_spill] sm:$0xff] %v6923_v33  ;;  %10040 = vst [vmem:[#allocation39_spill] sm:$0xff] %v6926_v45  ;;  %v2026_v33 = vadd.f32 %v6742_v37, %v10044_v25  ;;  %v6952_v50 = vadd.f32 %v9925_v44, %v2022_v56  ;;  %v2027_v3 = vadd.f32 %v6755_v12, %v10046_v21  ;;  %v10049_v25 = vld [vmem:[#allocation40_spill] sm:$0xff]  ;;  %v10050_v45 = vld [vmem:[#allocation87_spill] sm:$0xff]  ;;  %v6972_v21 = vpop.permute.xlu0 %1690 }
 0x270   :  { %10042 = vst [vmem:[#allocation38_spill] sm:$0xff] %v6935_v2  ;;  %v6958_v37 = vmul.f32 %v9894_v60, %v6110_v28  ;;  %10047 = vst [vmem:[#allocation73_spill] sm:$0xff] %v6960_v19  ;;  %v6963_v43 = vadd.f32 %v9921_v17, %v2035_v7  ;;  %v2028_v2 = vadd.f32 %v6759_v24, %v10049_v25  ;;  %v10053_v19 = vld [vmem:[#allocation120_spill] sm:$0xff] }
 0x271   :  { %10045 = vst [vmem:[#allocation21_spill] sm:$0xff] %v6952_v50  ;;  %v2041_v18 = vadd.f32 %v1825_v26, %v10050_v45  ;;  %v1831_v56 = vmul.f32 %v9890_v48, %v6150_v10  ;;  %v1832_v12 = vmul.f32 %v9893_v1, %v6150_v10  ;;  %10051 = vst [vmem:[#allocation36_spill] sm:$0xff] %v6972_v21  ;;  %v3240_v24 = vld [vmem:[%s8901_s0 + $0x190] sm:$0xff] }
 0x272   :  { %10048 = vst [vmem:[#allocation108_spill] sm:$0xff] %v6963_v43  ;;  %v6975_v28 = vadd.f32 %v9924_v20, %v2036_v14  ;;  %v2042_v50 = vadd.f32 %v1826_v23, %v10053_v19  ;;  %v1833_v7 = vmul.f32 %v9894_v60, %v6150_v10  ;;  %2621 = vperm.xlu1 %3155, %v3240_v24   ;;  %v10056_v25 = vld [vmem:[#allocation20_spill] sm:$0xff] }
 0x273   :  { %v6984_v26 = vadd.f32 %v9925_v44, %v2037_v15  ;;  %v6987_v45 = vadd.f32 %v9921_v17, %v2026_v33  ;;  %v2043_v21 = vadd.f32 %v1827_v61, %v10056_v25  ;;  %v6992_v14 = vmul.f32 %v9890_v48, %v6159_v62  ;;  %v3241_v15 = vld [vmem:[%s8901_s0 + $0x1b8] sm:$0xff]  ;;  %v7008_v61 = vpop.permute.xlu1 %1686  ;;  %v10060_v25 = vld [vmem:[#allocation118_spill] sm:$0xff] }
 0x274   :  { %10052 = vst [vmem:[#allocation41_spill] sm:$0xff] %v6975_v28  ;;  %v6996_v10 = vmul.f32 %v9893_v1, %v6159_v62  ;;  %v7000_v23 = vmul.f32 %v9894_v60, %v6159_v62  ;;  %2641 = vperm.xlu0 %3154, %v3241_v15   ;;  %v7006_v33 = vadd.f32 %v9924_v20, %v2027_v3  ;;  %10058 = vst [vmem:[#allocation110_spill] sm:$0xff] %v7008_v61  ;;  %v7020_v28 = vpop.permute.xlu0 %1698  ;;  %v10064_v3 = vld [vmem:[#allocation115_spill] sm:$0xff] }
 0x275   :  { %10054 = vst [vmem:[#allocation80_spill] sm:$0xff] %v6984_v26  ;;  %10055 = vst [vmem:[#allocation102_spill] sm:$0xff] %v6987_v45  ;;  %v7011_v19 = vadd.f32 %v9925_v44, %v2028_v2  ;;  %v7014_v24 = vadd.f32 %v9921_v17, %v2041_v18  ;;  %v2032_v62 = vadd.f32 %v6790_v51, %v10060_v25  ;;  %v10061_v45 = vld [vmem:[#allocation42_spill] sm:$0xff] }
 0x276   :  { %10057 = vst [vmem:[#allocation103_spill] sm:$0xff] %v7006_v33  ;;  %v2033_v26 = vadd.f32 %v6794_v4, %v10061_v45  ;;  %10062 = vst [vmem:[#allocation43_spill] sm:$0xff] %v7020_v28  ;;  %v7023_v15 = vadd.f32 %v9924_v20, %v2042_v50  ;;  %v2034_v61 = vadd.f32 %v6805_v59, %v10064_v3  ;;  %v10065_v33 = vld [vmem:[#allocation46_spill] sm:$0xff] }
 0x277   :  { %10059 = vst [vmem:[#allocation111_spill] sm:$0xff] %v7011_v19  ;;  %v2047_v2 = vadd.f32 %v1831_v56, %v10065_v33  ;;  %v10066_v19 = vld [vmem:[#allocation122_spill] sm:$0xff]  ;;  %v1837_v18 = vmul.f32 %v9890_v48, %v6195_v9  ;;  %v1838_v51 = vmul.f32 %v9893_v1, %v6195_v9  ;;  %v1839_v4 = vmul.f32 %v9894_v60, %v6195_v9  ;;  %v3243_v9 = vld [vmem:[%s8901_s0 + $0x1c8] sm:$0xff] }
 0x278   :  { %10063 = vst [vmem:[#allocation77_spill] sm:$0xff] %v7023_v15  ;;  %v2048_v43 = vadd.f32 %v1832_v12, %v10066_v19  ;;  %v3242_v50 = vld [vmem:[%s8901_s0 + $0x1a0] sm:$0xff]  ;;  %v7039_v59 = vadd.f32 %v9925_v44, %v2043_v21  ;;  %v7043_v56 = vmul.f32 %v9890_v48, %v6210_v54  ;;  %v7047_v12 = vmul.f32 %v9893_v1, %v6210_v54  ;;  %v10068_v33 = vld [vmem:[#allocation123_spill] sm:$0xff]  ;;  %v7057_v19 = vpop.permute.xlu1 %1694  ;;  %v7069_v15 = vpop.permute.xlu0 %1706 }
 0x279   :  { %2629 = vperm.xlu1 %3155, %v3242_v50   ;;  %v7051_v45 = vmul.f32 %v9894_v60, %v6210_v54  ;;  %2649 = vperm.xlu0 %3154, %v3243_v9   ;;  %v2049_v21 = vadd.f32 %v1833_v7, %v10068_v33  ;;  %10069 = vst [vmem:[#allocation78_spill] sm:$0xff] %v7057_v19  ;;  %v10071_v50 = vld [vmem:[#allocation86_spill] sm:$0xff]  ;;  %v10072_v54 = vld [vmem:[#allocation44_spill] sm:$0xff]  ;;  %10073 = vst [vmem:[#allocation85_spill] sm:$0xff] %v7069_v15 }
 0x27a   :  { %10067 = vst [vmem:[#allocation107_spill] sm:$0xff] %v7039_v59  ;;  %v7060_v25 = vadd.f32 %v9921_v17, %v2032_v62  ;;  %v7063_v3 = vadd.f32 %v9924_v20, %v2033_v26  ;;  %v2038_v28 = vadd.f32 %v6842_v38, %v10071_v50  ;;  %v2039_v59 = vadd.f32 %v6846_v11, %v10072_v54  ;;  %v10077_v33 = vld [vmem:[#allocation119_spill] sm:$0xff]  ;;  %v10080_v15 = vld [vmem:[#allocation128_spill] sm:$0xff] }
 0x27b   :  { %v7072_v9 = vadd.f32 %v9925_v44, %v2034_v61  ;;  %v7075_v7 = vadd.f32 %v9921_v17, %v2047_v2  ;;  %v7078_v62 = vadd.f32 %v9924_v20, %v2048_v43  ;;  %v2040_v26 = vadd.f32 %v6850_v35, %v10077_v33  ;;  %v3244_v61 = vld [vmem:[%s8901_s0 + $0x1b0] sm:$0xff]  ;;  %v10078_v2 = vld [vmem:[#allocation90_spill] sm:$0xff]  ;;  %v3245_v33 = vld [vmem:[%s8901_s0 + $0x1d8] sm:$0xff] }
 0x27c   :  { %10070 = vst [vmem:[#allocation45_spill] sm:$0xff] %v7063_v3  ;;  %v1843_v38 = vmul.f32 %v9890_v48, %v6250_v13  ;;  %v1844_v11 = vmul.f32 %v9893_v1, %v6250_v13  ;;  %v1845_v50 = vmul.f32 %v9894_v60, %v6250_v13  ;;  %v2053_v43 = vadd.f32 %v1837_v18, %v10078_v2  ;;  %v7111_v2 = vpop.permute.xlu1 %1702 }
 0x27d   :  { %10074 = vst [vmem:[#allocation121_spill] sm:$0xff] %v7072_v9  ;;  %10075 = vst [vmem:[#allocation112_spill] sm:$0xff] %v7075_v7  ;;  %2637 = vperm.xlu1 %3155, %v3244_v61   ;;  %v7094_v54 = vmul.f32 %v9890_v48, %v6259_v58  ;;  %v7098_v35 = vmul.f32 %v9893_v1, %v6259_v58  ;;  %2657 = vperm.xlu0 %3154, %v3245_v33   ;;  %v10084_v7 = vld [vmem:[#allocation96_spill] sm:$0xff]  ;;  %v7120_v33 = vpop.permute.xlu0 %1714 }
 0x27e   :  { %10076 = vst [vmem:[#allocation83_spill] sm:$0xff] %v7078_v62  ;;  %v7104_v13 = vadd.f32 %v9925_v44, %v2049_v21  ;;  %v2054_v61 = vadd.f32 %v1838_v51, %v10080_v15  ;;  %v7109_v18 = vmul.f32 %v9894_v60, %v6259_v58  ;;  %10081 = vst [vmem:[#allocation87_spill] sm:$0xff] %v7111_v2  ;;  %v10087_v15 = vld [vmem:[#allocation47_spill] sm:$0xff]  ;;  %v10088_v58 = vld [vmem:[#allocation124_spill] sm:$0xff] }
 0x27f   :  { %v7114_v19 = vadd.f32 %v9921_v17, %v2038_v28  ;;  %v7117_v62 = vadd.f32 %v9924_v20, %v2039_v59  ;;  %v2055_v9 = vadd.f32 %v1839_v4, %v10084_v7  ;;  %10085 = vst [vmem:[#allocation118_spill] sm:$0xff] %v7120_v33  ;;  %v7123_v21 = vadd.f32 %v9925_v44, %v2040_v26  ;;  %v10089_v2 = vld [vmem:[#allocation126_spill] sm:$0xff] }
 0x280   :  { %10079 = vst [vmem:[#allocation40_spill] sm:$0xff] %v7104_v13  ;;  %v2044_v51 = vadd.f32 %v6892_v55, %v10087_v15  ;;  %v2045_v13 = vadd.f32 %v6896_v63, %v10088_v58  ;;  %v2046_v28 = vadd.f32 %v6900_v0, %v10089_v2  ;;  %v1849_v59 = vmul.f32 %v9890_v48, %v6295_v42  ;;  %v3246_v26 = vld [vmem:[%s8901_s0 + $0x1c0] sm:$0xff]  ;;  %v7161_v15 = vpop.permute.xlu1 %1710 }
 0x281   :  { %10082 = vst [vmem:[#allocation120_spill] sm:$0xff] %v7114_v19  ;;  %10083 = vst [vmem:[#allocation20_spill] sm:$0xff] %v7117_v62  ;;  %v1850_v4 = vmul.f32 %v9893_v1, %v6295_v42  ;;  %v1851_v7 = vmul.f32 %v9894_v60, %v6295_v42  ;;  %2645 = vperm.xlu1 %3155, %v3246_v26   ;;  %v7141_v55 = vadd.f32 %v9921_v17, %v2053_v43  ;;  %v3247_v42 = vld [vmem:[%s8901_s0 + $0x1e8] sm:$0xff]  ;;  %v10093_v26 = vld [vmem:[#allocation133_spill] sm:$0xff]  ;;  %v7169_v19 = vpop.permute.xlu0 %1722 }
 0x282   :  { %10086 = vst [vmem:[#allocation42_spill] sm:$0xff] %v7123_v21  ;;  %v7145_v63 = vmul.f32 %v9890_v48, %v6310_v39  ;;  %v7149_v0 = vmul.f32 %v9893_v1, %v6310_v39  ;;  %v7153_v2 = vmul.f32 %v9894_v60, %v6310_v39  ;;  %2665 = vperm.xlu0 %3154, %v3247_v42   ;;  %10092 = vst [vmem:[#allocation122_spill] sm:$0xff] %v7161_v15  ;;  %v10095_v62 = vld [vmem:[#allocation104_spill] sm:$0xff] }
 0x283   :  { %10090 = vst [vmem:[#allocation115_spill] sm:$0xff] %v7141_v55  ;;  %v7159_v43 = vadd.f32 %v9924_v20, %v2054_v61  ;;  %v7164_v58 = vadd.f32 %v9925_v44, %v2055_v9  ;;  %v2059_v33 = vadd.f32 %v1843_v38, %v10093_v26  ;;  %v10094_v55 = vld [vmem:[#allocation50_spill] sm:$0xff]  ;;  %v2061_v39 = vadd.f32 %v1845_v50, %v10095_v62  ;;  %v10098_v61 = vld [vmem:[#allocation28_spill] sm:$0xff] }
 0x284   :  { %v2060_v21 = vadd.f32 %v1844_v11, %v10094_v55  ;;  %10096 = vst [vmem:[#allocation123_spill] sm:$0xff] %v7169_v19  ;;  %v7172_v3 = vadd.f32 %v9921_v17, %v2044_v51  ;;  %v7175_v42 = vadd.f32 %v9924_v20, %v2045_v13  ;;  %v2050_v15 = vadd.f32 %v6942_v36, %v10098_v61  ;;  %v3248_v11 = vld [vmem:[%s8901_s0 + $0x1d0] sm:$0xff] }
 0x285   :  { %10091 = vst [vmem:[#allocation46_spill] sm:$0xff] %v7159_v43  ;;  %v10099_v43 = vld [vmem:[#allocation49_spill] sm:$0xff]  ;;  %v1855_v38 = vmul.f32 %v9890_v48, %v6350_v16  ;;  %v1856_v62 = vmul.f32 %v9893_v1, %v6350_v16  ;;  %2653 = vperm.xlu1 %3155, %v3248_v11   ;;  %v7189_v50 = vadd.f32 %v9925_v44, %v2046_v28  ;;  %v10101_v13 = vld [vmem:[#allocation48_spill] sm:$0xff]  ;;  %v10103_v11 = vld [vmem:[#allocation106_spill] sm:$0xff] }
 0x286   :  { %10097 = vst [vmem:[#allocation86_spill] sm:$0xff] %v7175_v42  ;;  %v2051_v9 = vadd.f32 %v6946_v49, %v10099_v43  ;;  %v2052_v36 = vadd.f32 %v6958_v37, %v10101_v13  ;;  %v1857_v49 = vmul.f32 %v9894_v60, %v6350_v16  ;;  %v7197_v51 = vmul.f32 %v9890_v48, %v6359_v31  ;;  %v3249_v28 = vld [vmem:[%s8901_s0 + $0x1f8] sm:$0xff]  ;;  %v7210_v37 = vpop.permute.xlu1 %1718 }
 0x287   :  { %10100 = vst [vmem:[#allocation44_spill] sm:$0xff] %v7189_v50  ;;  %v7201_v55 = vmul.f32 %v9893_v1, %v6359_v31  ;;  %v7205_v43 = vmul.f32 %v9894_v60, %v6359_v31  ;;  %2673 = vperm.xlu0 %3154, %v3249_v28   ;;  %10102 = vst [vmem:[#allocation119_spill] sm:$0xff] %v7210_v37  ;;  %v7213_v16 = vadd.f32 %v9921_v17, %v2059_v33  ;;  %v10106_v28 = vld [vmem:[#allocation137_spill] sm:$0xff]  ;;  %v10107_v37 = vld [vmem:[#allocation52_spill] sm:$0xff] }
 0x288   :  { %v7216_v26 = vadd.f32 %v9924_v20, %v2060_v21  ;;  %v7219_v61 = vadd.f32 %v9925_v44, %v2061_v39  ;;  %v2065_v13 = vadd.f32 %v1849_v59, %v10103_v11  ;;  %v7223_v31 = vadd.f32 %v9921_v17, %v2050_v15  ;;  %v2422_v15 = vpop.permute.xlu0 %2421  ;;  %v3250_v39 = vld [vmem:[%s8901_s0 + $0x1e0] sm:$0xff]  ;;  %v10109_v11 = vld [vmem:[#allocation51_spill] sm:$0xff] }
 0x289   :  { %v7226_v19 = vadd.f32 %v9924_v20, %v2051_v9  ;;  %v2066_v50 = vadd.f32 %v1850_v4, %v10106_v28  ;;  %v2067_v42 = vadd.f32 %v1851_v7, %v10107_v37  ;;  %v7232_v33 = vmul.f32 %v9890_v48, %v6395_v22  ;;  %2661 = vperm.xlu1 %3155, %v3250_v39   ;;  %v3251_v37 = vld [vmem:[%s8901_s0 + $0x208] sm:$0xff] }
 0x28a   :  { %10104 = vst [vmem:[#allocation90_spill] sm:$0xff] %v7223_v31  ;;  %v7236_v21 = vmul.f32 %v9893_v1, %v6395_v22  ;;  %v7240_v59 = vmul.f32 %v9894_v60, %v6395_v22  ;;  %v7246_v4 = vadd.f32 %v9925_v44, %v2052_v36  ;;  %v7250_v7 = vmul.f32 %v9890_v48, %v6404_v57  ;;  %v7268_v31 = vpop.permute.xlu1 %1726 }
 0x28b   :  { %10105 = vst [vmem:[#allocation128_spill] sm:$0xff] %v7226_v19  ;;  %v7254_v9 = vmul.f32 %v9893_v1, %v6404_v57  ;;  %v2708_v22 = vmul.f32 %v2422_v15, %v6431_v32  ;;  %2681 = vperm.xlu0 %3154, %v3251_v37   ;;  %v2056_v28 = vadd.f32 %v6992_v14, %v10109_v11  ;;  %10112 = vst [vmem:[#allocation124_spill] sm:$0xff] %v7268_v31  ;;  %v10113_v14 = vld [vmem:[#allocation98_spill] sm:$0xff]  ;;  %v10114_v11 = vld [vmem:[#allocation132_spill] sm:$0xff] }
 0x28c   :  { %10108 = vst [vmem:[#allocation96_spill] sm:$0xff] %v7246_v4  ;;  %v7264_v36 = vmul.f32 %v9894_v60, %v6404_v57  ;;  %v2709_v39 = vmul.f32 %v2422_v15, %v6437_v53  ;;  %v10111_v4 = vld [vmem:[#allocation84_spill] sm:$0xff]  ;;  %v7271_v32 = vadd.f32 %v9921_v17, %v2065_v13  ;;  %v7277_v37 = vadd.f32 %v9924_v20, %v2066_v50  ;;  %v2434_v50 = vpop.permute.xlu0 %2433 }
 0x28d   :  { %v2710_v19 = vmul.f32 %v2422_v15, %v10111_v4  ;;  %2924 = vst [vmem:[%s8904_s3] sm:$0xff] %v2708_v22  ;;  %v2057_v57 = vadd.f32 %v6996_v10, %v10113_v14  ;;  %v2058_v53 = vadd.f32 %v7000_v23, %v10114_v11  ;;  %v10116_v4 = vld [vmem:[#allocation218_spill] sm:$0xff]  ;;  %v3252_v10 = vld [vmem:[%s8901_s0 + $0x1f0] sm:$0xff]  ;;  %v7298_v23 = vadd.f32 %v9925_v44, %v2067_v42  ;;  %v10119_v22 = vld [vmem:[#allocation117_spill] sm:$0xff] }
 0x28e   :  { %10110 = vst [vmem:[#allocation47_spill] sm:$0xff] %v7264_v36  ;;  %v10115_v36 = vld [vmem:[#allocation141_spill] sm:$0xff]  ;;  %v7286_v31 = vmul.f32 %v9890_v48, %v10116_v4  ;;  %2925 = vst [vmem:[%s8904_s3 + $0x8] sm:$0xff] %v2709_v39  ;;  %2669 = vperm.xlu1 %3155, %v3252_v10   ;;  %v7304_v39 = vmul.f32 %v9893_v1, %v10116_v4  ;;  %v2717_v14 = vmul.f32 %v2434_v50, %v6517_v40 }
 0x28f   :  { %v2071_v15 = vadd.f32 %v1855_v38, %v10115_v36  ;;  %2926 = vst [vmem:[%s8904_s3 + $0x10] sm:$0xff] %v2710_v19  ;;  %10117 = vst [vmem:[#allocation126_spill] sm:$0xff] %v7298_v23  ;;  %v10118_v38 = vld [vmem:[#allocation54_spill] sm:$0xff]  ;;  %v2073_v36 = vadd.f32 %v1857_v49, %v10119_v22  ;;  %v7308_v19 = vmul.f32 %v9894_v60, %v10116_v4  ;;  %v3253_v11 = vld [vmem:[%s8901_s0 + $0x218] sm:$0xff] }
 0x290   :  { %v2072_v13 = vadd.f32 %v1856_v62, %v10118_v38  ;;  %2689 = vperm.xlu0 %3154, %v3253_v11   ;;  %v7315_v42 = vadd.f32 %v9921_v17, %v2056_v28  ;;  %v10121_v62 = vld [vmem:[#allocation224_spill] sm:$0xff]  ;;  %v2718_v4 = vmul.f32 %v2434_v50, %v6532_v27  ;;  %v10124_v38 = vld [vmem:[#allocation234_spill] sm:$0xff]  ;;  %2933 = vst [vmem:[%s8904_s3 + $0x48] sm:$0xff] %v2717_v14  ;;  %v2426_v28 = vpop.permute.xlu1 %2425  ;;  %v10151_v23 = vld [vmem:[#allocation19_spill] sm:$0xff] }
 0x291   :  { %v7319_v49 = vmul.f32 %v9890_v48, %v10121_v62  ;;  %v7323_v10 = vmul.f32 %v9893_v1, %v10121_v62  ;;  %v2719_v40 = vmul.f32 %v2434_v50, %v10124_v38  ;;  %v7329_v22 = vmul.f32 %v9894_v60, %v10121_v62  ;;  %v10129_v27 = vld [vmem:[#allocation82_spill] sm:$0xff]  ;;  %v10130_v14 = vld [vmem:[#allocation32_spill] sm:$0xff] }
 0x292   :  { %10120 = vst [vmem:[#allocation133_spill] sm:$0xff] %v7315_v42  ;;  %v7335_v11 = vadd.f32 %v9924_v20, %v2057_v57  ;;  %2934 = vst [vmem:[%s8904_s3 + $0x50] sm:$0xff] %v2718_v4  ;;  %v2711_v50 = vmul.f32 %v2426_v28, %v10129_v27  ;;  %v2712_v62 = vmul.f32 %v2426_v28, %v10130_v14  ;;  %v10131_v57 = vld [vmem:[#allocation95_spill] sm:$0xff]  ;;  %v10133_v4 = vld [vmem:[#allocation229_spill] sm:$0xff] }
 0x293   :  { %10122 = vst [vmem:[#allocation50_spill] sm:$0xff] %v7319_v49  ;;  %10123 = vst [vmem:[#allocation104_spill] sm:$0xff] %v7323_v10  ;;  %v7338_v49 = vadd.f32 %v9925_v44, %v2058_v53  ;;  %v7341_v10 = vadd.f32 %v9921_v17, %v2071_v15  ;;  %v2713_v38 = vmul.f32 %v2426_v28, %v10131_v57  ;;  %v3254_v53 = vld [vmem:[%s8901_s0 + $0x200] sm:$0xff]  ;;  %v3255_v27 = vld [vmem:[%s8901_s0 + $0x228] sm:$0xff] }
 0x294   :  { %10125 = vst [vmem:[#allocation28_spill] sm:$0xff] %v7329_v22  ;;  %10126 = vst [vmem:[#allocation49_spill] sm:$0xff] %v7335_v11  ;;  %v2442_v22 = vpop.permute.xlu0 %2441  ;;  %2677 = vperm.xlu1 %3155, %v3254_v53   ;;  %v7356_v15 = vadd.f32 %v9924_v20, %v2072_v13  ;;  %2697 = vperm.xlu0 %3154, %v3255_v27   ;;  %v7365_v28 = vadd.f32 %v9925_v44, %v2073_v36  ;;  %v10137_v13 = vld [vmem:[#allocation130_spill] sm:$0xff]  ;;  %v10139_v36 = vld [vmem:[#allocation53_spill] sm:$0xff] }
 0x295   :  { %10127 = vst [vmem:[#allocation48_spill] sm:$0xff] %v7338_v49  ;;  %10128 = vst [vmem:[#allocation106_spill] sm:$0xff] %v7341_v10  ;;  %v2723_v10 = vmul.f32 %v2442_v22, %v10133_v4  ;;  %v10134_v49 = vld [vmem:[#allocation127_spill] sm:$0xff]  ;;  %v2064_v57 = vadd.f32 %v7051_v45, %v10139_v36  ;;  %v10140_v53 = vld [vmem:[#allocation57_spill] sm:$0xff] }
 0x296   :  { %2935 = vst [vmem:[%s8904_s3 + $0x58] sm:$0xff] %v2719_v40  ;;  %10132 = vst [vmem:[#allocation137_spill] sm:$0xff] %v7356_v15  ;;  %v2724_v11 = vmul.f32 %v2442_v22, %v10134_v49  ;;  %v10135_v40 = vld [vmem:[#allocation226_spill] sm:$0xff]  ;;  %v2062_v49 = vadd.f32 %v7043_v56, %v10137_v13  ;;  %v10141_v4 = vld [vmem:[#allocation225_spill] sm:$0xff] }
 0x297   :  { %v2725_v42 = vmul.f32 %v2442_v22, %v10135_v40  ;;  %10136 = vst [vmem:[#allocation52_spill] sm:$0xff] %v7365_v28  ;;  %2927 = vst [vmem:[%s8904_s3 + $0x18] sm:$0xff] %v2711_v50  ;;  %v10138_v22 = vld [vmem:[#allocation131_spill] sm:$0xff]  ;;  %v2077_v50 = vadd.f32 %v7232_v33, %v10140_v53  ;;  %v7386_v40 = vmul.f32 %v9890_v48, %v10141_v4  ;;  %v10142_v45 = vld [vmem:[#allocation129_spill] sm:$0xff] }
 0x298   :  { %2928 = vst [vmem:[%s8904_s3 + $0x20] sm:$0xff] %v2712_v62  ;;  %2929 = vst [vmem:[%s8904_s3 + $0x28] sm:$0xff] %v2713_v38  ;;  %v2063_v14 = vadd.f32 %v7047_v12, %v10138_v22  ;;  %v7390_v62 = vmul.f32 %v9893_v1, %v10141_v4  ;;  %v7394_v56 = vmul.f32 %v9894_v60, %v10141_v4  ;;  %v2430_v12 = vpop.permute.xlu1 %2429  ;;  %v10143_v38 = vld [vmem:[#allocation13_spill] sm:$0xff]  ;;  %v10145_v13 = vld [vmem:[#allocation116_spill] sm:$0xff]  ;;  %v2450_v28 = vpop.permute.xlu0 %2449 }
 0x299   :  { %2939 = vst [vmem:[%s8904_s3 + $0x78] sm:$0xff] %v2723_v10  ;;  %2940 = vst [vmem:[%s8904_s3 + $0x80] sm:$0xff] %v2724_v11  ;;  %v2078_v33 = vadd.f32 %v7236_v21, %v10142_v45  ;;  %v7409_v27 = vmul.f32 %v9890_v48, %v10143_v38  ;;  %v2714_v22 = vmul.f32 %v2430_v12, %v10145_v13  ;;  %v10146_v36 = vld [vmem:[#allocation222_spill] sm:$0xff]  ;;  %v10147_v53 = vld [vmem:[#allocation223_spill] sm:$0xff] }
 0x29a   :  { %2941 = vst [vmem:[%s8904_s3 + $0x88] sm:$0xff] %v2725_v42  ;;  %v2715_v10 = vmul.f32 %v2430_v12, %v10146_v36  ;;  %v2716_v4 = vmul.f32 %v2430_v12, %v10147_v53  ;;  %v3256_v11 = vld [vmem:[%s8901_s0 + $0x210] sm:$0xff]  ;;  %v7419_v42 = vmul.f32 %v9893_v1, %v10143_v38  ;;  %v2731_v13 = vmul.f32 %v2450_v28, %v10151_v23  ;;  %v3257_v12 = vld [vmem:[%s8901_s0 + $0x238] sm:$0xff] }
 0x29b   :  { %10144 = vst [vmem:[#allocation51_spill] sm:$0xff] %v7409_v27  ;;  %2685 = vperm.xlu1 %3155, %v3256_v11   ;;  %v10149_v21 = vld [vmem:[#allocation100_spill] sm:$0xff]  ;;  %2705 = vperm.xlu0 %3154, %v3257_v12   ;;  %v7429_v36 = vmul.f32 %v9894_v60, %v10143_v38  ;;  %2930 = vst [vmem:[%s8904_s3 + $0x30] sm:$0xff] %v2714_v22  ;;  %v7441_v23 = vadd.f32 %v9921_v17, %v2062_v49 }
 0x29c   :  { %10148 = vst [vmem:[#allocation84_spill] sm:$0xff] %v7419_v42  ;;  %v2729_v45 = vmul.f32 %v2450_v28, %v10149_v21  ;;  %v10150_v15 = vld [vmem:[#allocation236_spill] sm:$0xff]  ;;  %2931 = vst [vmem:[%s8904_s3 + $0x38] sm:$0xff] %v2715_v10  ;;  %v2438_v49 = vpop.permute.xlu1 %2437  ;;  %v7458_v22 = vadd.f32 %v9925_v44, %v2064_v57  ;;  %v10155_v10 = vld [vmem:[#allocation134_spill] sm:$0xff] }
 0x29d   :  { %v2730_v27 = vmul.f32 %v2450_v28, %v10150_v15  ;;  %10152 = vst [vmem:[#allocation98_spill] sm:$0xff] %v7429_v36  ;;  %2932 = vst [vmem:[%s8904_s3 + $0x40] sm:$0xff] %v2716_v4  ;;  %v7444_v15 = vadd.f32 %v9924_v20, %v2063_v14  ;;  %v10153_v28 = vld [vmem:[#allocation144_spill] sm:$0xff]  ;;  %v7461_v14 = vadd.f32 %v9921_v17, %v2077_v50  ;;  %v10156_v4 = vld [vmem:[#allocation14_spill] sm:$0xff] }
 0x29e   :  { %v2079_v38 = vadd.f32 %v7240_v59, %v10153_v28  ;;  %2945 = vst [vmem:[%s8904_s3 + $0xa8] sm:$0xff] %v2729_v45  ;;  %2947 = vst [vmem:[%s8904_s3 + $0xb8] sm:$0xff] %v2731_v13  ;;  %v7464_v59 = vadd.f32 %v9924_v20, %v2078_v33  ;;  %v2068_v53 = vadd.f32 %v7094_v54, %v10155_v10  ;;  %v10158_v45 = vld [vmem:[#allocation17_spill] sm:$0xff]  ;;  %v2458_v13 = vpop.permute.xlu0 %2457  ;;  %v3258_v57 = vld [vmem:[%s8901_s0 + $0x220] sm:$0xff] }
 0x29f   :  { %2946 = vst [vmem:[%s8904_s3 + $0xb0] sm:$0xff] %v2730_v27  ;;  %v2720_v11 = vmul.f32 %v2438_v49, %v10156_v4  ;;  %v10157_v27 = vld [vmem:[#allocation227_spill] sm:$0xff]  ;;  %v2722_v12 = vmul.f32 %v2438_v49, %v10158_v45  ;;  %2693 = vperm.xlu1 %3155, %v3258_v57   ;;  %v10159_v50 = vld [vmem:[#allocation114_spill] sm:$0xff]  ;;  %v2735_v33 = vmul.f32 %v2458_v13, %v6653_v34 }
 0x2a0   :  { %10154 = vst [vmem:[#allocation132_spill] sm:$0xff] %v7464_v59  ;;  %v2721_v21 = vmul.f32 %v2438_v49, %v10157_v27  ;;  %v2069_v28 = vadd.f32 %v7098_v35, %v10159_v50  ;;  %v2736_v36 = vmul.f32 %v2458_v13, %v6670_v41  ;;  %v2737_v54 = vmul.f32 %v2458_v13, %v6673_v52  ;;  %v10160_v10 = vld [vmem:[#allocation55_spill] sm:$0xff]  ;;  %v10161_v27 = vld [vmem:[#allocation232_spill] sm:$0xff]  ;;  %v10163_v41 = vld [vmem:[#allocation233_spill] sm:$0xff] }
 0x2a1   :  { %v2070_v4 = vadd.f32 %v7109_v18, %v10160_v10  ;;  %v7483_v49 = vmul.f32 %v9890_v48, %v10161_v27  ;;  %v7487_v45 = vmul.f32 %v9893_v1, %v10161_v27  ;;  %v7491_v35 = vmul.f32 %v9894_v60, %v10161_v27  ;;  %2936 = vst [vmem:[%s8904_s3 + $0x60] sm:$0xff] %v2720_v11  ;;  %v10169_v57 = vld [vmem:[#allocation231_spill] sm:$0xff]  ;;  %v10170_v10 = vld [vmem:[#allocation72_spill] sm:$0xff] }
 0x2a2   :  { %2937 = vst [vmem:[%s8904_s3 + $0x68] sm:$0xff] %v2721_v21  ;;  %2938 = vst [vmem:[%s8904_s3 + $0x70] sm:$0xff] %v2722_v12  ;;  %v7503_v34 = vadd.f32 %v9925_v44, %v2079_v38  ;;  %v7507_v52 = vmul.f32 %v9890_v48, %v10163_v41  ;;  %v7511_v18 = vmul.f32 %v9893_v1, %v10163_v41  ;;  %v2446_v38 = vpop.permute.xlu1 %2445  ;;  %v10168_v12 = vld [vmem:[#allocation97_spill] sm:$0xff]  ;;  %v10185_v42 = vld [vmem:[#allocation91_spill] sm:$0xff] }
 0x2a3   :  { %v7515_v11 = vmul.f32 %v9894_v60, %v10163_v41  ;;  %2951 = vst [vmem:[%s8904_s3 + $0xd8] sm:$0xff] %v2735_v33  ;;  %2952 = vst [vmem:[%s8904_s3 + $0xe0] sm:$0xff] %v2736_v36  ;;  %v7527_v21 = vadd.f32 %v9921_v17, %v2068_v53  ;;  %v2726_v13 = vmul.f32 %v2446_v38, %v10168_v12  ;;  %v2466_v41 = vpop.permute.xlu0 %2465  ;;  %v3259_v33 = vld [vmem:[%s8901_s0 + $0x230] sm:$0xff] }
 0x2a4   :  { %10162 = vst [vmem:[#allocation141_spill] sm:$0xff] %v7503_v34  ;;  %10164 = vst [vmem:[#allocation218_spill] sm:$0xff] %v7507_v52  ;;  %v2727_v50 = vmul.f32 %v2446_v38, %v10169_v57  ;;  %v2728_v27 = vmul.f32 %v2446_v38, %v10170_v10  ;;  %2701 = vperm.xlu1 %3155, %v3259_v33   ;;  %v7536_v36 = vadd.f32 %v9924_v20, %v2069_v28  ;;  %v10178_v57 = vld [vmem:[#allocation139_spill] sm:$0xff]  ;;  %v10182_v33 = vld [vmem:[#allocation230_spill] sm:$0xff] }
 0x2a5   :  { %10165 = vst [vmem:[#allocation54_spill] sm:$0xff] %v7511_v18  ;;  %10166 = vst [vmem:[#allocation117_spill] sm:$0xff] %v7515_v11  ;;  %v10172_v11 = vld [vmem:[#allocation135_spill] sm:$0xff]  ;;  %v10173_v18 = vld [vmem:[#allocation25_spill] sm:$0xff]  ;;  %v7542_v12 = vadd.f32 %v9925_v44, %v2070_v4 }
 0x2a6   :  { %2953 = vst [vmem:[%s8904_s3 + $0xe8] sm:$0xff] %v2737_v54  ;;  %10167 = vst [vmem:[#allocation224_spill] sm:$0xff] %v7527_v21  ;;  %v2741_v54 = vmul.f32 %v2466_v41, %v6682_v29  ;;  %v2742_v53 = vmul.f32 %v2466_v41, %v10172_v11  ;;  %v2743_v52 = vmul.f32 %v2466_v41, %v10173_v18  ;;  %v10175_v29 = vld [vmem:[#allocation142_spill] sm:$0xff]  ;;  %v10176_v11 = vld [vmem:[#allocation143_spill] sm:$0xff] }
 0x2a7   :  { %10171 = vst [vmem:[#allocation234_spill] sm:$0xff] %v7536_v36  ;;  %10174 = vst [vmem:[#allocation82_spill] sm:$0xff] %v7542_v12  ;;  %v2083_v28 = vadd.f32 %v7286_v31, %v10175_v29  ;;  %v2084_v18 = vadd.f32 %v7304_v39, %v10176_v11  ;;  %v10177_v4 = vld [vmem:[#allocation59_spill] sm:$0xff]  ;;  %v10180_v31 = vld [vmem:[#allocation125_spill] sm:$0xff]  ;;  %v1894_v29 = vmul.f32 %v9890_v48, %v10182_v33  ;;  %v2474_v12 = vpop.permute.xlu0 %2473 }
 0x2a8   :  { %2942 = vst [vmem:[%s8904_s3 + $0x90] sm:$0xff] %v2726_v13  ;;  %2943 = vst [vmem:[%s8904_s3 + $0x98] sm:$0xff] %v2727_v50  ;;  %v2085_v38 = vadd.f32 %v7308_v19, %v10177_v4  ;;  %v2074_v13 = vadd.f32 %v7145_v63, %v10178_v57  ;;  %v10179_v10 = vld [vmem:[#allocation15_spill] sm:$0xff]  ;;  %v2454_v63 = vpop.permute.xlu1 %2453  ;;  %v2075_v39 = vadd.f32 %v7149_v0, %v10180_v31  ;;  %v10181_v19 = vld [vmem:[#allocation140_spill] sm:$0xff] }
 0x2a9   :  { %2944 = vst [vmem:[%s8904_s3 + $0xa0] sm:$0xff] %v2728_v27  ;;  %v7563_v41 = vmul.f32 %v9890_v48, %v10179_v10  ;;  %v7567_v50 = vmul.f32 %v9893_v1, %v10179_v10  ;;  %2957 = vst [vmem:[%s8904_s3 + $0x108] sm:$0xff] %v2741_v54  ;;  %v2076_v27 = vadd.f32 %v7153_v2, %v10181_v19  ;;  %v10183_v11 = vld [vmem:[#allocation29_spill] sm:$0xff]  ;;  %v10184_v4 = vld [vmem:[#allocation24_spill] sm:$0xff] }
 0x2aa   :  { %2958 = vst [vmem:[%s8904_s3 + $0x110] sm:$0xff] %v2742_v53  ;;  %2959 = vst [vmem:[%s8904_s3 + $0x118] sm:$0xff] %v2743_v52  ;;  %v2732_v54 = vmul.f32 %v2454_v63, %v10183_v11  ;;  %v2733_v57 = vmul.f32 %v2454_v63, %v10184_v4  ;;  %v2734_v53 = vmul.f32 %v2454_v63, %v10185_v42  ;;  %v10186_v36 = vld [vmem:[#allocation31_spill] sm:$0xff]  ;;  %v10187_v34 = vld [vmem:[#allocation81_spill] sm:$0xff] }
 0x2ab   :  { %v1895_v52 = vmul.f32 %v9893_v1, %v10182_v33  ;;  %v2747_v21 = vmul.f32 %v2474_v12, %v10186_v36  ;;  %v2748_v0 = vmul.f32 %v2474_v12, %v10187_v34  ;;  %v10188_v31 = vld [vmem:[#allocation93_spill] sm:$0xff]  ;;  %v7594_v2 = vmul.f32 %v9894_v60, %v10179_v10  ;;  %v10191_v10 = vld [vmem:[#allocation2_spill] sm:$0xff]  ;;  %v10195_v4 = vld [vmem:[#allocation23_spill] sm:$0xff] }
 0x2ac   :  { %v2749_v59 = vmul.f32 %v2474_v12, %v10188_v31  ;;  %v1896_v19 = vmul.f32 %v9894_v60, %v10182_v33  ;;  %2948 = vst [vmem:[%s8904_s3 + $0xc0] sm:$0xff] %v2732_v54  ;;  %2949 = vst [vmem:[%s8904_s3 + $0xc8] sm:$0xff] %v2733_v57  ;;  %v7608_v42 = vadd.f32 %v9921_v17, %v2083_v28  ;;  %v2462_v36 = vpop.permute.xlu1 %2461  ;;  %v10193_v33 = vld [vmem:[#allocation88_spill] sm:$0xff]  ;;  %v10194_v54 = vld [vmem:[#allocation89_spill] sm:$0xff] }
 0x2ad   :  { %2950 = vst [vmem:[%s8904_s3 + $0xd0] sm:$0xff] %v2734_v53  ;;  %v7611_v34 = vadd.f32 %v9924_v20, %v2084_v18  ;;  %2963 = vst [vmem:[%s8904_s3 + $0x138] sm:$0xff] %v2747_v21  ;;  %v7623_v12 = vadd.f32 %v9925_v44, %v2085_v38  ;;  %v7626_v28 = vadd.f32 %v9921_v17, %v2074_v13  ;;  %v2482_v38 = vpop.permute.xlu0 %2481  ;;  %v10196_v53 = vld [vmem:[#allocation163_spill] sm:$0xff] }
 0x2ae   :  { %2964 = vst [vmem:[%s8904_s3 + $0x140] sm:$0xff] %v2748_v0  ;;  %2965 = vst [vmem:[%s8904_s3 + $0x148] sm:$0xff] %v2749_v59  ;;  %v7629_v18 = vadd.f32 %v9924_v20, %v2075_v39  ;;  %v7632_v21 = vadd.f32 %v9925_v44, %v2076_v27  ;;  %v7635_v63 = vadd.f32 %v1894_v29, %v10191_v10  ;;  %v10198_v31 = vld [vmem:[#allocation71_spill] sm:$0xff] }
 0x2af   :  { %v2738_v11 = vmul.f32 %v2462_v36, %v10193_v33  ;;  %v2739_v59 = vmul.f32 %v2462_v36, %v10194_v54  ;;  %v2740_v57 = vmul.f32 %v2462_v36, %v10195_v4  ;;  %v7641_v0 = vadd.f32 %v1895_v52, %v10196_v53  ;;  %v10201_v29 = vld [vmem:[#allocation235_spill] sm:$0xff]  ;;  %v10203_v52 = vld [vmem:[#allocation148_spill] sm:$0xff]  ;;  %v10204_v33 = vld [vmem:[#allocation237_spill] sm:$0xff] }
 0x2b0   :  { %10189 = vst [vmem:[#allocation32_spill] sm:$0xff] %v7629_v18  ;;  %10190 = vst [vmem:[#allocation95_spill] sm:$0xff] %v7632_v21  ;;  %v2753_v13 = vmul.f32 %v2482_v38, %v6800_v47  ;;  %v2754_v39 = vmul.f32 %v2482_v38, %v6819_v30  ;;  %v2755_v27 = vmul.f32 %v2482_v38, %v10198_v31  ;;  %v10199_v21 = vld [vmem:[#allocation166_spill] sm:$0xff]  ;;  %v10202_v47 = vld [vmem:[#allocation147_spill] sm:$0xff] }
 0x2b1   :  { %10192 = vst [vmem:[#allocation229_spill] sm:$0xff] %v7635_v63  ;;  %10197 = vst [vmem:[#allocation127_spill] sm:$0xff] %v7641_v0  ;;  %v7647_v18 = vadd.f32 %v1896_v19, %v10199_v21  ;;  %v7651_v10 = vmul.f32 %v9890_v48, %v10201_v29  ;;  %v2089_v30 = vadd.f32 %v7386_v40, %v10202_v47  ;;  %v2470_v40 = vpop.permute.xlu1 %2469  ;;  %v10207_v53 = vld [vmem:[#allocation26_spill] sm:$0xff]  ;;  %v10210_v0 = vld [vmem:[#allocation61_spill] sm:$0xff] }
 0x2b2   :  { %2954 = vst [vmem:[%s8904_s3 + $0xf0] sm:$0xff] %v2738_v11  ;;  %2955 = vst [vmem:[%s8904_s3 + $0xf8] sm:$0xff] %v2739_v59  ;;  %v2090_v19 = vadd.f32 %v7390_v62, %v10203_v52  ;;  %v7668_v36 = vmul.f32 %v9893_v1, %v10201_v29  ;;  %v7672_v21 = vmul.f32 %v9894_v60, %v10201_v29  ;;  %v10205_v59 = vld [vmem:[#allocation33_spill] sm:$0xff]  ;;  %v2490_v29 = vpop.permute.xlu0 %2489  ;;  %v10209_v52 = vld [vmem:[#allocation34_spill] sm:$0xff] }
 0x2b3   :  { %10200 = vst [vmem:[#allocation226_spill] sm:$0xff] %v7647_v18  ;;  %2956 = vst [vmem:[%s8904_s3 + $0x100] sm:$0xff] %v2740_v57  ;;  %v1900_v11 = vmul.f32 %v9890_v48, %v10204_v33  ;;  %v1901_v54 = vmul.f32 %v9893_v1, %v10204_v33  ;;  %v1902_v62 = vmul.f32 %v9894_v60, %v10204_v33  ;;  %v10206_v57 = vld [vmem:[#allocation92_spill] sm:$0xff] }
 0x2b4   :  { %2969 = vst [vmem:[%s8904_s3 + $0x168] sm:$0xff] %v2753_v13  ;;  %2970 = vst [vmem:[%s8904_s3 + $0x170] sm:$0xff] %v2754_v39  ;;  %v2744_v4 = vmul.f32 %v2470_v40, %v10205_v59  ;;  %v2745_v38 = vmul.f32 %v2470_v40, %v10206_v57  ;;  %v2746_v31 = vmul.f32 %v2470_v40, %v10207_v53  ;;  %v10208_v13 = vld [vmem:[#allocation101_spill] sm:$0xff]  ;;  %v10211_v40 = vld [vmem:[#allocation136_spill] sm:$0xff] }
 0x2b5   :  { %2971 = vst [vmem:[%s8904_s3 + $0x178] sm:$0xff] %v2755_v27  ;;  %v2759_v47 = vmul.f32 %v2490_v29, %v10208_v13  ;;  %v2760_v18 = vmul.f32 %v2490_v29, %v10209_v52  ;;  %v2761_v39 = vmul.f32 %v2490_v29, %v6863_v6  ;;  %v2091_v27 = vadd.f32 %v7394_v56, %v10210_v0  ;;  %v10212_v0 = vld [vmem:[#allocation145_spill] sm:$0xff]  ;;  %v10217_v29 = vld [vmem:[#allocation238_spill] sm:$0xff] }
 0x2b6   :  { %2960 = vst [vmem:[%s8904_s3 + $0x120] sm:$0xff] %v2744_v4  ;;  %2961 = vst [vmem:[%s8904_s3 + $0x128] sm:$0xff] %v2745_v38  ;;  %v7707_v33 = vadd.f32 %v9921_v17, %v2089_v30  ;;  %v7710_v6 = vadd.f32 %v9924_v20, %v2090_v19  ;;  %v2080_v56 = vadd.f32 %v7197_v51, %v10211_v40  ;;  %v10213_v4 = vld [vmem:[#allocation5_spill] sm:$0xff]  ;;  %v2478_v51 = vpop.permute.xlu1 %2477  ;;  %v2498_v40 = vpop.permute.xlu0 %2497 }
 0x2b7   :  { %2962 = vst [vmem:[%s8904_s3 + $0x130] sm:$0xff] %v2746_v31  ;;  %v2081_v59 = vadd.f32 %v7201_v55, %v10212_v0  ;;  %v7717_v57 = vadd.f32 %v1900_v11, %v10213_v4  ;;  %v10215_v38 = vld [vmem:[#allocation165_spill] sm:$0xff]  ;;  %v1897_v31 = vmul.f32 %v9890_v48, %v10217_v29  ;;  %v1898_v30 = vmul.f32 %v9893_v1, %v10217_v29 }
 0x2b8   :  { %v7720_v53 = vadd.f32 %v1901_v54, %v10215_v38  ;;  %2975 = vst [vmem:[%s8904_s3 + $0x198] sm:$0xff] %v2759_v47  ;;  %2976 = vst [vmem:[%s8904_s3 + $0x1a0] sm:$0xff] %v2760_v18  ;;  %v1899_v55 = vmul.f32 %v9894_v60, %v10217_v29  ;;  %v2750_v19 = vmul.f32 %v2478_v51, %v6872_v46  ;;  %v10218_v11 = vld [vmem:[#allocation37_spill] sm:$0xff]  ;;  %v10220_v47 = vld [vmem:[#allocation172_spill] sm:$0xff] }
 0x2b9   :  { %10214 = vst [vmem:[#allocation130_spill] sm:$0xff] %v7717_v57  ;;  %2977 = vst [vmem:[%s8904_s3 + $0x1a8] sm:$0xff] %v2761_v39  ;;  %v2751_v54 = vmul.f32 %v2478_v51, %v10218_v11  ;;  %v10219_v13 = vld [vmem:[#allocation105_spill] sm:$0xff]  ;;  %v7741_v0 = vadd.f32 %v1902_v62, %v10220_v47  ;;  %v2765_v18 = vmul.f32 %v2498_v40, %v6912_v8  ;;  %v10222_v38 = vld [vmem:[#allocation75_spill] sm:$0xff] }
 0x2ba   :  { %10216 = vst [vmem:[#allocation131_spill] sm:$0xff] %v7720_v53  ;;  %v2752_v52 = vmul.f32 %v2478_v51, %v10219_v13  ;;  %v2766_v4 = vmul.f32 %v2498_v40, %v6915_v5  ;;  %v2767_v39 = vmul.f32 %v2498_v40, %v10222_v38  ;;  %v10223_v53 = vld [vmem:[#allocation239_spill] sm:$0xff]  ;;  %2966 = vst [vmem:[%s8904_s3 + $0x150] sm:$0xff] %v2750_v19  ;;  %v10224_v5 = vld [vmem:[#allocation56_spill] sm:$0xff]  ;;  %v2506_v38 = vpop.permute.xlu0 %2505 }
 0x2bb   :  { %10221 = vst [vmem:[#allocation53_spill] sm:$0xff] %v7741_v0  ;;  %v1906_v57 = vmul.f32 %v9890_v48, %v10223_v53  ;;  %v1907_v46 = vmul.f32 %v9893_v1, %v10223_v53  ;;  %2967 = vst [vmem:[%s8904_s3 + $0x158] sm:$0xff] %v2751_v54  ;;  %v7760_v8 = vadd.f32 %v9925_v44, %v2091_v27  ;;  %v10225_v29 = vld [vmem:[#allocation167_spill] sm:$0xff]  ;;  %v10227_v11 = vld [vmem:[#allocation168_spill] sm:$0xff] }
 0x2bc   :  { %2968 = vst [vmem:[%s8904_s3 + $0x160] sm:$0xff] %v2752_v52  ;;  %v2082_v62 = vadd.f32 %v7205_v43, %v10224_v5  ;;  %v7765_v51 = vadd.f32 %v1897_v31, %v10225_v29  ;;  %v7768_v13 = vadd.f32 %v1898_v30, %v10227_v11  ;;  %v1908_v19 = vmul.f32 %v9894_v60, %v10223_v53  ;;  %v2486_v43 = vpop.permute.xlu1 %2485  ;;  %v10229_v31 = vld [vmem:[#allocation164_spill] sm:$0xff]  ;;  %v10231_v53 = vld [vmem:[#allocation39_spill] sm:$0xff]  ;;  %v10232_v52 = vld [vmem:[#allocation38_spill] sm:$0xff] }
 0x2bd   :  { %2981 = vst [vmem:[%s8904_s3 + $0x1c8] sm:$0xff] %v2765_v18  ;;  %2982 = vst [vmem:[%s8904_s3 + $0x1d0] sm:$0xff] %v2766_v4  ;;  %v7782_v27 = vadd.f32 %v9921_v17, %v2080_v56  ;;  %v7785_v30 = vadd.f32 %v1899_v55, %v10229_v31  ;;  %v2756_v54 = vmul.f32 %v2486_v43, %v10231_v53  ;;  %v10233_v47 = vld [vmem:[#allocation21_spill] sm:$0xff]  ;;  %v10234_v5 = vld [vmem:[#allocation108_spill] sm:$0xff] }
 0x2be   :  { %10226 = vst [vmem:[#allocation57_spill] sm:$0xff] %v7765_v51  ;;  %10228 = vst [vmem:[#allocation225_spill] sm:$0xff] %v7768_v13  ;;  %v2757_v40 = vmul.f32 %v2486_v43, %v10232_v52  ;;  %v2758_v18 = vmul.f32 %v2486_v43, %v10233_v47  ;;  %v2771_v4 = vmul.f32 %v2506_v38, %v10234_v5  ;;  %v10235_v29 = vld [vmem:[#allocation41_spill] sm:$0xff]  ;;  %v10236_v0 = vld [vmem:[#allocation80_spill] sm:$0xff] }
 0x2bf   :  { %2983 = vst [vmem:[%s8904_s3 + $0x1d8] sm:$0xff] %v2767_v39  ;;  %10230 = vst [vmem:[#allocation129_spill] sm:$0xff] %v7785_v30  ;;  %v2772_v11 = vmul.f32 %v2506_v38, %v10235_v29  ;;  %v2773_v39 = vmul.f32 %v2506_v38, %v10236_v0  ;;  %v7794_v63 = vadd.f32 %v9924_v20, %v2081_v59  ;;  %v10237_v56 = vld [vmem:[#allocation216_spill] sm:$0xff]  ;;  %v10239_v55 = vld [vmem:[#allocation170_spill] sm:$0xff] }
 0x2c0   :  { %v7797_v13 = vadd.f32 %v1906_v57, %v10237_v56  ;;  %v7800_v31 = vadd.f32 %v1907_v46, %v10239_v55  ;;  %v10241_v53 = vld [vmem:[#allocation76_spill] sm:$0xff]  ;;  %2972 = vst [vmem:[%s8904_s3 + $0x180] sm:$0xff] %v2756_v54  ;;  %2973 = vst [vmem:[%s8904_s3 + $0x188] sm:$0xff] %v2757_v40  ;;  %v10242_v59 = vld [vmem:[#allocation7_spill] sm:$0xff]  ;;  %v2514_v55 = vpop.permute.xlu0 %2513 }
 0x2c1   :  { %v1903_v52 = vmul.f32 %v9890_v48, %v10241_v53  ;;  %v1904_v43 = vmul.f32 %v9893_v1, %v10241_v53  ;;  %2974 = vst [vmem:[%s8904_s3 + $0x190] sm:$0xff] %v2758_v18  ;;  %v7816_v57 = vadd.f32 %v1908_v19, %v10242_v59  ;;  %v1905_v0 = vmul.f32 %v9894_v60, %v10241_v53  ;;  %v10244_v46 = vld [vmem:[#allocation18_spill] sm:$0xff]  ;;  %v2494_v19 = vpop.permute.xlu1 %2493  ;;  %v10246_v38 = vld [vmem:[#allocation103_spill] sm:$0xff]  ;;  %v10248_v59 = vld [vmem:[#allocation77_spill] sm:$0xff] }
 0x2c2   :  { %10238 = vst [vmem:[#allocation13_spill] sm:$0xff] %v7797_v13  ;;  %10240 = vst [vmem:[#allocation116_spill] sm:$0xff] %v7800_v31  ;;  %v1912_v47 = vmul.f32 %v9890_v48, %v10244_v46  ;;  %v1913_v54 = vmul.f32 %v9893_v1, %v10244_v46  ;;  %v10245_v40 = vld [vmem:[#allocation102_spill] sm:$0xff]  ;;  %v2763_v5 = vmul.f32 %v2494_v19, %v10246_v38  ;;  %v10247_v29 = vld [vmem:[#allocation111_spill] sm:$0xff] }
 0x2c3   :  { %10243 = vst [vmem:[#allocation222_spill] sm:$0xff] %v7816_v57  ;;  %2987 = vst [vmem:[%s8904_s3 + $0x1f8] sm:$0xff] %v2771_v4  ;;  %v2762_v18 = vmul.f32 %v2494_v19, %v10245_v40  ;;  %v2764_v56 = vmul.f32 %v2494_v19, %v10247_v29  ;;  %v7837_v53 = vadd.f32 %v9925_v44, %v2082_v62  ;;  %v10250_v13 = vld [vmem:[#allocation60_spill] sm:$0xff]  ;;  %v10251_v30 = vld [vmem:[#allocation207_spill] sm:$0xff] }
 0x2c4   :  { %2988 = vst [vmem:[%s8904_s3 + $0x200] sm:$0xff] %v2772_v11  ;;  %2989 = vst [vmem:[%s8904_s3 + $0x208] sm:$0xff] %v2773_v39  ;;  %v2777_v4 = vmul.f32 %v2514_v55, %v7014_v24  ;;  %v2778_v57 = vmul.f32 %v2514_v55, %v10248_v59  ;;  %v10249_v11 = vld [vmem:[#allocation107_spill] sm:$0xff]  ;;  %v2095_v39 = vadd.f32 %v7483_v49, %v10250_v13  ;;  %v10252_v40 = vld [vmem:[#allocation169_spill] sm:$0xff]  ;;  %v2522_v59 = vpop.permute.xlu0 %2521 }
 0x2c5   :  { %v2779_v31 = vmul.f32 %v2514_v55, %v10249_v11  ;;  %v7845_v51 = vadd.f32 %v1903_v52, %v10251_v30  ;;  %v7848_v38 = vadd.f32 %v1904_v43, %v10252_v40  ;;  %v1914_v19 = vmul.f32 %v9894_v60, %v10244_v46  ;;  %2978 = vst [vmem:[%s8904_s3 + $0x1b0] sm:$0xff] %v2762_v18  ;;  %v10254_v24 = vld [vmem:[#allocation151_spill] sm:$0xff]  ;;  %v10255_v62 = vld [vmem:[#allocation220_spill] sm:$0xff]  ;;  %v10259_v43 = vld [vmem:[#allocation173_spill] sm:$0xff] }
 0x2c6   :  { %2979 = vst [vmem:[%s8904_s3 + $0x1b8] sm:$0xff] %v2763_v5  ;;  %2980 = vst [vmem:[%s8904_s3 + $0x1c0] sm:$0xff] %v2764_v56  ;;  %v2096_v49 = vadd.f32 %v7487_v45, %v10254_v24  ;;  %v7864_v13 = vadd.f32 %v1905_v0, %v10255_v62  ;;  %v10257_v30 = vld [vmem:[#allocation175_spill] sm:$0xff]  ;;  %v7870_v46 = vadd.f32 %v1913_v54, %v10259_v43  ;;  %v2502_v45 = vpop.permute.xlu1 %2501  ;;  %v10261_v0 = vld [vmem:[#allocation152_spill] sm:$0xff] }
 0x2c7   :  { %10253 = vst [vmem:[#allocation223_spill] sm:$0xff] %v7848_v38  ;;  %v7867_v52 = vadd.f32 %v1912_v47, %v10257_v30  ;;  %2993 = vst [vmem:[%s8904_s3 + $0x228] sm:$0xff] %v2777_v4  ;;  %v2097_v47 = vadd.f32 %v7491_v35, %v10261_v0  ;;  %v10262_v18 = vld [vmem:[#allocation22_spill] sm:$0xff]  ;;  %v2768_v5 = vmul.f32 %v2502_v45, %v7060_v25  ;;  %v10263_v29 = vld [vmem:[#allocation45_spill] sm:$0xff] }
 0x2c8   :  { %10256 = vst [vmem:[#allocation100_spill] sm:$0xff] %v7864_v13  ;;  %10260 = vst [vmem:[#allocation19_spill] sm:$0xff] %v7870_v46  ;;  %v1909_v54 = vmul.f32 %v9890_v48, %v10262_v18  ;;  %v2769_v56 = vmul.f32 %v2502_v45, %v10263_v29  ;;  %v10264_v55 = vld [vmem:[#allocation121_spill] sm:$0xff]  ;;  %v10265_v11 = vld [vmem:[#allocation112_spill] sm:$0xff]  ;;  %v1911_v25 = vmul.f32 %v9894_v60, %v10262_v18 }
 0x2c9   :  { %10258 = vst [vmem:[#allocation236_spill] sm:$0xff] %v7867_v52  ;;  %2994 = vst [vmem:[%s8904_s3 + $0x230] sm:$0xff] %v2778_v57  ;;  %v2770_v4 = vmul.f32 %v2502_v45, %v10264_v55  ;;  %v1910_v57 = vmul.f32 %v9893_v1, %v10262_v18  ;;  %v2783_v40 = vmul.f32 %v2522_v59, %v10265_v11  ;;  %v10267_v62 = vld [vmem:[#allocation40_spill] sm:$0xff]  ;;  %v10270_v0 = vld [vmem:[#allocation94_spill] sm:$0xff] }
 0x2ca   :  { %2995 = vst [vmem:[%s8904_s3 + $0x238] sm:$0xff] %v2779_v31  ;;  %v10266_v31 = vld [vmem:[#allocation83_spill] sm:$0xff]  ;;  %v2785_v30 = vmul.f32 %v2522_v59, %v10267_v62  ;;  %v10268_v35 = vld [vmem:[#allocation180_spill] sm:$0xff]  ;;  %v1918_v29 = vmul.f32 %v9890_v48, %v10270_v0  ;;  %v1919_v45 = vmul.f32 %v9893_v1, %v10270_v0  ;;  %2984 = vst [vmem:[%s8904_s3 + $0x1e0] sm:$0xff] %v2768_v5  ;;  %v2510_v18 = vpop.permute.xlu1 %2509 }
 0x2cb   :  { %v2784_v24 = vmul.f32 %v2522_v59, %v10266_v31  ;;  %v7894_v43 = vadd.f32 %v1914_v19, %v10268_v35  ;;  %2985 = vst [vmem:[%s8904_s3 + $0x1e8] sm:$0xff] %v2769_v56  ;;  %2986 = vst [vmem:[%s8904_s3 + $0x1f0] sm:$0xff] %v2770_v4  ;;  %v1920_v19 = vmul.f32 %v9894_v60, %v10270_v0  ;;  %v10271_v4 = vld [vmem:[#allocation171_spill] sm:$0xff]  ;;  %v10272_v11 = vld [vmem:[#allocation120_spill] sm:$0xff] }
 0x2cc   :  { %2999 = vst [vmem:[%s8904_s3 + $0x258] sm:$0xff] %v2783_v40  ;;  %3001 = vst [vmem:[%s8904_s3 + $0x268] sm:$0xff] %v2785_v30  ;;  %v7923_v5 = vadd.f32 %v9921_v17, %v2095_v39  ;;  %v7926_v56 = vadd.f32 %v9924_v20, %v2096_v49  ;;  %v7929_v55 = vadd.f32 %v9925_v44, %v2097_v47  ;;  %v10273_v31 = vld [vmem:[#allocation20_spill] sm:$0xff]  ;;  %v10274_v62 = vld [vmem:[#allocation42_spill] sm:$0xff]  ;;  %v2530_v30 = vpop.permute.xlu0 %2529 }
 0x2cd   :  { %10269 = vst [vmem:[#allocation144_spill] sm:$0xff] %v7894_v43  ;;  %3000 = vst [vmem:[%s8904_s3 + $0x260] sm:$0xff] %v2784_v24  ;;  %v7932_v59 = vadd.f32 %v1909_v54, %v10271_v4  ;;  %v2774_v40 = vmul.f32 %v2510_v18, %v10272_v11  ;;  %v2775_v24 = vmul.f32 %v2510_v18, %v10273_v31  ;;  %v10275_v0 = vld [vmem:[#allocation176_spill] sm:$0xff]  ;;  %v10276_v39 = vld [vmem:[#allocation115_spill] sm:$0xff] }
 0x2ce   :  { %v2776_v35 = vmul.f32 %v2510_v18, %v10274_v62  ;;  %v7938_v43 = vadd.f32 %v1910_v57, %v10275_v0  ;;  %v2789_v46 = vmul.f32 %v2530_v30, %v10276_v39  ;;  %v10277_v49 = vld [vmem:[#allocation46_spill] sm:$0xff]  ;;  %v2791_v47 = vmul.f32 %v2530_v30, %v7164_v58  ;;  %v10278_v13 = vld [vmem:[#allocation3_spill] sm:$0xff]  ;;  %v10281_v11 = vld [vmem:[#allocation177_spill] sm:$0xff] }
 0x2cf   :  { %v2790_v52 = vmul.f32 %v2530_v30, %v10277_v49  ;;  %v7944_v38 = vadd.f32 %v1911_v25, %v10278_v13  ;;  %v10279_v54 = vld [vmem:[#allocation182_spill] sm:$0xff]  ;;  %v7950_v31 = vadd.f32 %v1919_v45, %v10281_v11  ;;  %2990 = vst [vmem:[%s8904_s3 + $0x210] sm:$0xff] %v2774_v40  ;;  %2991 = vst [vmem:[%s8904_s3 + $0x218] sm:$0xff] %v2775_v24  ;;  %v10284_v57 = vld [vmem:[#allocation27_spill] sm:$0xff] }
 0x2d0   :  { %v7947_v4 = vadd.f32 %v1918_v29, %v10279_v54  ;;  %2992 = vst [vmem:[%s8904_s3 + $0x220] sm:$0xff] %v2776_v35  ;;  %v10283_v58 = vld [vmem:[#allocation150_spill] sm:$0xff]  ;;  %v1915_v25 = vmul.f32 %v9890_v48, %v10284_v57  ;;  %v1916_v29 = vmul.f32 %v9893_v1, %v10284_v57  ;;  %v1917_v45 = vmul.f32 %v9894_v60, %v10284_v57  ;;  %v2538_v49 = vpop.permute.xlu0 %2537  ;;  %v10293_v57 = vld [vmem:[#allocation181_spill] sm:$0xff] }
 0x2d1   :  { %10282 = vst [vmem:[#allocation14_spill] sm:$0xff] %v7950_v31  ;;  %v2086_v13 = vadd.f32 %v7250_v7, %v10283_v58  ;;  %3005 = vst [vmem:[%s8904_s3 + $0x288] sm:$0xff] %v2789_v46  ;;  %v2518_v7 = vpop.permute.xlu1 %2517  ;;  %v10285_v18 = vld [vmem:[#allocation58_spill] sm:$0xff]  ;;  %v10288_v46 = vld [vmem:[#allocation44_spill] sm:$0xff]  ;;  %v2795_v54 = vmul.f32 %v2538_v49, %v7213_v16  ;;  %v2797_v11 = vmul.f32 %v2538_v49, %v7219_v61 }
 0x2d2   :  { %10280 = vst [vmem:[#allocation134_spill] sm:$0xff] %v7947_v4  ;;  %3006 = vst [vmem:[%s8904_s3 + $0x290] sm:$0xff] %v2790_v52  ;;  %v2087_v40 = vadd.f32 %v7254_v9, %v10285_v18  ;;  %v10286_v24 = vld [vmem:[#allocation30_spill] sm:$0xff]  ;;  %v2780_v35 = vmul.f32 %v2518_v7, %v7172_v3  ;;  %v2782_v39 = vmul.f32 %v2518_v7, %v10288_v46  ;;  %v10289_v9 = vld [vmem:[#allocation4_spill] sm:$0xff] }
 0x2d3   :  { %3007 = vst [vmem:[%s8904_s3 + $0x298] sm:$0xff] %v2791_v47  ;;  %v1924_v62 = vmul.f32 %v9890_v48, %v10286_v24  ;;  %v10287_v30 = vld [vmem:[#allocation86_spill] sm:$0xff]  ;;  %v1925_v52 = vmul.f32 %v9893_v1, %v10286_v24  ;;  %v2796_v47 = vmul.f32 %v2538_v49, %v7216_v26  ;;  %v7991_v58 = vadd.f32 %v1920_v19, %v10289_v9  ;;  %v10292_v26 = vld [vmem:[#allocation47_spill] sm:$0xff] }
 0x2d4   :  { %v2781_v0 = vmul.f32 %v2518_v7, %v10287_v30  ;;  %v1926_v3 = vmul.f32 %v9894_v60, %v10286_v24  ;;  %2996 = vst [vmem:[%s8904_s3 + $0x240] sm:$0xff] %v2780_v35  ;;  %2998 = vst [vmem:[%s8904_s3 + $0x250] sm:$0xff] %v2782_v39  ;;  %v10291_v16 = vld [vmem:[#allocation138_spill] sm:$0xff]  ;;  %v8007_v19 = vadd.f32 %v9921_v17, %v2086_v13  ;;  %v10295_v35 = vld [vmem:[#allocation16_spill] sm:$0xff] }
 0x2d5   :  { %10290 = vst [vmem:[#allocation227_spill] sm:$0xff] %v7991_v58  ;;  %v2088_v61 = vadd.f32 %v10292_v26, %v10291_v16  ;;  %v8010_v7 = vadd.f32 %v1915_v25, %v10293_v57  ;;  %v10294_v18 = vld [vmem:[#allocation174_spill] sm:$0xff]  ;;  %v8016_v30 = vadd.f32 %v1917_v45, %v10295_v35  ;;  %3011 = vst [vmem:[%s8904_s3 + $0x2b8] sm:$0xff] %v2795_v54  ;;  %v2526_v13 = vpop.permute.xlu1 %2525  ;;  %v10300_v39 = vld [vmem:[#allocation128_spill] sm:$0xff]  ;;  %v2546_v16 = vpop.permute.xlu0 %2545 }
 0x2d6   :  { %2997 = vst [vmem:[%s8904_s3 + $0x248] sm:$0xff] %v2781_v0  ;;  %v8013_v24 = vadd.f32 %v1916_v29, %v10294_v18  ;;  %3012 = vst [vmem:[%s8904_s3 + $0x2c0] sm:$0xff] %v2796_v47  ;;  %v8028_v25 = vadd.f32 %v9924_v20, %v2087_v40  ;;  %v10297_v29 = vld [vmem:[#allocation187_spill] sm:$0xff]  ;;  %v10299_v45 = vld [vmem:[#allocation90_spill] sm:$0xff]  ;;  %v2787_v49 = vmul.f32 %v2526_v13, %v10300_v39 }
 0x2d7   :  { %10296 = vst [vmem:[#allocation17_spill] sm:$0xff] %v8016_v30  ;;  %3013 = vst [vmem:[%s8904_s3 + $0x2c8] sm:$0xff] %v2797_v11  ;;  %v8031_v0 = vadd.f32 %v1924_v62, %v10297_v29  ;;  %v2786_v46 = vmul.f32 %v2526_v13, %v10299_v45  ;;  %v10301_v54 = vld [vmem:[#allocation96_spill] sm:$0xff]  ;;  %v10302_v26 = vld [vmem:[#allocation183_spill] sm:$0xff]  ;;  %v2801_v57 = vmul.f32 %v2546_v16, %v7271_v32 }
 0x2d8   :  { %v2788_v9 = vmul.f32 %v2526_v13, %v10301_v54  ;;  %v8037_v47 = vadd.f32 %v1925_v52, %v10302_v26  ;;  %v2802_v11 = vmul.f32 %v2546_v16, %v7277_v37  ;;  %v10304_v18 = vld [vmem:[#allocation126_spill] sm:$0xff]  ;;  %v10305_v35 = vld [vmem:[#allocation184_spill] sm:$0xff]  ;;  %v10307_v62 = vld [vmem:[#allocation79_spill] sm:$0xff]  ;;  %3003 = vst [vmem:[%s8904_s3 + $0x278] sm:$0xff] %v2787_v49 }
 0x2d9   :  { %10298 = vst [vmem:[#allocation114_spill] sm:$0xff] %v8031_v0  ;;  %v2803_v40 = vmul.f32 %v2546_v16, %v10304_v18  ;;  %v8043_v58 = vadd.f32 %v1926_v3, %v10305_v35  ;;  %v1921_v29 = vmul.f32 %v9890_v48, %v10307_v62  ;;  %v1922_v45 = vmul.f32 %v9893_v1, %v10307_v62  ;;  %v10308_v32 = vld [vmem:[#allocation35_spill] sm:$0xff]  ;;  %v2534_v3 = vpop.permute.xlu1 %2533  ;;  %v10309_v39 = vld [vmem:[#allocation154_spill] sm:$0xff]  ;;  %v10311_v26 = vld [vmem:[#allocation49_spill] sm:$0xff]  ;;  %v2554_v35 = vpop.permute.xlu0 %2553 }
 0x2da   :  { %10303 = vst [vmem:[#allocation55_spill] sm:$0xff] %v8037_v47  ;;  %v1923_v13 = vmul.f32 %v9894_v60, %v10307_v62  ;;  %3002 = vst [vmem:[%s8904_s3 + $0x270] sm:$0xff] %v2786_v46  ;;  %v1930_v37 = vmul.f32 %v9890_v48, %v10308_v32  ;;  %v1931_v52 = vmul.f32 %v9893_v1, %v10308_v32  ;;  %v10312_v18 = vld [vmem:[#allocation48_spill] sm:$0xff]  ;;  %v10313_v62 = vld [vmem:[#allocation106_spill] sm:$0xff] }
 0x2db   :  { %10306 = vst [vmem:[#allocation232_spill] sm:$0xff] %v8043_v58  ;;  %3004 = vst [vmem:[%s8904_s3 + $0x280] sm:$0xff] %v2788_v9  ;;  %v8074_v46 = vadd.f32 %v9925_v44, %v2088_v61  ;;  %v2101_v49 = vadd.f32 %v7563_v41, %v10309_v39  ;;  %v1932_v54 = vmul.f32 %v9894_v60, %v10308_v32  ;;  %v10310_v9 = vld [vmem:[#allocation133_spill] sm:$0xff]  ;;  %v10315_v0 = vld [vmem:[#allocation52_spill] sm:$0xff] }
 0x2dc   :  { %3017 = vst [vmem:[%s8904_s3 + $0x2e8] sm:$0xff] %v2801_v57  ;;  %3018 = vst [vmem:[%s8904_s3 + $0x2f0] sm:$0xff] %v2802_v11  ;;  %v2792_v16 = vmul.f32 %v2534_v3, %v10310_v9  ;;  %v2793_v57 = vmul.f32 %v2534_v3, %v10311_v26  ;;  %v2794_v11 = vmul.f32 %v2534_v3, %v10312_v18  ;;  %v10316_v31 = vld [vmem:[#allocation155_spill] sm:$0xff]  ;;  %v10317_v41 = vld [vmem:[#allocation178_spill] sm:$0xff] }
 0x2dd   :  { %3019 = vst [vmem:[%s8904_s3 + $0x2f8] sm:$0xff] %v2803_v40  ;;  %v2807_v58 = vmul.f32 %v2554_v35, %v10313_v62  ;;  %v10314_v40 = vld [vmem:[#allocation137_spill] sm:$0xff]  ;;  %v2809_v61 = vmul.f32 %v2554_v35, %v10315_v0  ;;  %v2102_v4 = vadd.f32 %v7567_v50, %v10316_v31  ;;  %v8089_v39 = vadd.f32 %v1921_v29, %v10317_v41  ;;  %v10318_v32 = vld [vmem:[#allocation179_spill] sm:$0xff]  ;;  %v10319_v9 = vld [vmem:[#allocation186_spill] sm:$0xff] }
 0x2de   :  { %v2808_v47 = vmul.f32 %v2554_v35, %v10314_v40  ;;  %v8092_v30 = vadd.f32 %v1922_v45, %v10318_v32  ;;  %v8095_v26 = vadd.f32 %v1923_v13, %v10319_v9  ;;  %3008 = vst [vmem:[%s8904_s3 + $0x2a0] sm:$0xff] %v2792_v16  ;;  %3009 = vst [vmem:[%s8904_s3 + $0x2a8] sm:$0xff] %v2793_v57  ;;  %v10320_v50 = vld [vmem:[#allocation64_spill] sm:$0xff]  ;;  %v10324_v3 = vld [vmem:[#allocation74_spill] sm:$0xff]  ;;  %v2562_v35 = vpop.permute.xlu0 %2561 }
 0x2df   :  { %3010 = vst [vmem:[%s8904_s3 + $0x2b0] sm:$0xff] %v2794_v11  ;;  %v2103_v31 = vadd.f32 %v7594_v2, %v10320_v50  ;;  %v10321_v0 = vld [vmem:[#allocation192_spill] sm:$0xff]  ;;  %v1927_v16 = vmul.f32 %v9890_v48, %v10324_v3  ;;  %v1928_v18 = vmul.f32 %v9893_v1, %v10324_v3  ;;  %3023 = vst [vmem:[%s8904_s3 + $0x318] sm:$0xff] %v2807_v58  ;;  %v2542_v2 = vpop.permute.xlu1 %2541  ;;  %v10328_v32 = vld [vmem:[#allocation141_spill] sm:$0xff] }
 0x2e0   :  { %v8109_v29 = vadd.f32 %v1930_v37, %v10321_v0  ;;  %v10322_v45 = vld [vmem:[#allocation188_spill] sm:$0xff]  ;;  %3024 = vst [vmem:[%s8904_s3 + $0x320] sm:$0xff] %v2808_v47  ;;  %3025 = vst [vmem:[%s8904_s3 + $0x328] sm:$0xff] %v2809_v61  ;;  %v1929_v37 = vmul.f32 %v9894_v60, %v10324_v3  ;;  %v2799_v57 = vmul.f32 %v2542_v2, %v7444_v15  ;;  %v10329_v9 = vld [vmem:[#allocation99_spill] sm:$0xff] }
 0x2e1   :  { %v8112_v13 = vadd.f32 %v1931_v52, %v10322_v45  ;;  %v2798_v52 = vmul.f32 %v2542_v2, %v7441_v23  ;;  %v2800_v11 = vmul.f32 %v2542_v2, %v7458_v22  ;;  %v10325_v58 = vld [vmem:[#allocation8_spill] sm:$0xff]  ;;  %v2813_v47 = vmul.f32 %v2562_v35, %v7461_v14  ;;  %v10330_v14 = vld [vmem:[#allocation185_spill] sm:$0xff]  ;;  %v10331_v0 = vld [vmem:[#allocation190_spill] sm:$0xff] }
 0x2e2   :  { %v8133_v62 = vadd.f32 %v1932_v54, %v10325_v58  ;;  %v10327_v40 = vld [vmem:[#allocation132_spill] sm:$0xff]  ;;  %v2815_v61 = vmul.f32 %v2562_v35, %v10328_v32  ;;  %v1936_v50 = vmul.f32 %v9890_v48, %v10329_v9  ;;  %v1937_v23 = vmul.f32 %v9893_v1, %v10329_v9  ;;  %3015 = vst [vmem:[%s8904_s3 + $0x2d8] sm:$0xff] %v2799_v57  ;;  %v10334_v57 = vld [vmem:[#allocation234_spill] sm:$0xff] }
 0x2e3   :  { %10323 = vst [vmem:[#allocation233_spill] sm:$0xff] %v8112_v13  ;;  %v2814_v41 = vmul.f32 %v2562_v35, %v10327_v40  ;;  %3014 = vst [vmem:[%s8904_s3 + $0x2d0] sm:$0xff] %v2798_v52  ;;  %v8152_v15 = vadd.f32 %v9921_v17, %v2101_v49  ;;  %v8155_v22 = vadd.f32 %v9924_v20, %v2102_v4  ;;  %v2550_v4 = vpop.permute.xlu1 %2549  ;;  %v10333_v2 = vld [vmem:[#allocation224_spill] sm:$0xff]  ;;  %v10335_v35 = vld [vmem:[#allocation82_spill] sm:$0xff] }
 0x2e4   :  { %10326 = vst [vmem:[#allocation97_spill] sm:$0xff] %v8133_v62  ;;  %3016 = vst [vmem:[%s8904_s3 + $0x2e0] sm:$0xff] %v2800_v11  ;;  %v8158_v54 = vadd.f32 %v1927_v16, %v10330_v14  ;;  %v8161_v45 = vadd.f32 %v1928_v18, %v10331_v0  ;;  %v1938_v3 = vmul.f32 %v9894_v60, %v10329_v9  ;;  %v10332_v16 = vld [vmem:[#allocation191_spill] sm:$0xff]  ;;  %v10337_v9 = vld [vmem:[#allocation50_spill] sm:$0xff] }
 0x2e5   :  { %3029 = vst [vmem:[%s8904_s3 + $0x348] sm:$0xff] %v2813_v47  ;;  %3030 = vst [vmem:[%s8904_s3 + $0x350] sm:$0xff] %v2814_v41  ;;  %v8175_v49 = vadd.f32 %v9925_v44, %v2103_v31  ;;  %v8178_v18 = vadd.f32 %v1929_v37, %v10332_v16  ;;  %v2804_v52 = vmul.f32 %v2550_v4, %v10333_v2  ;;  %v2570_v47 = vpop.permute.xlu0 %2569  ;;  %v10338_v14 = vld [vmem:[#allocation196_spill] sm:$0xff]  ;;  %v10340_v37 = vld [vmem:[#allocation193_spill] sm:$0xff] }
 0x2e6   :  { %3031 = vst [vmem:[%s8904_s3 + $0x358] sm:$0xff] %v2815_v61  ;;  %v2805_v11 = vmul.f32 %v2550_v4, %v10334_v57  ;;  %v2806_v58 = vmul.f32 %v2550_v4, %v10335_v35  ;;  %v2819_v40 = vmul.f32 %v2570_v47, %v7608_v42  ;;  %v2820_v41 = vmul.f32 %v2570_v47, %v7611_v34  ;;  %v10336_v61 = vld [vmem:[#allocation146_spill] sm:$0xff]  ;;  %v10342_v2 = vld [vmem:[#allocation73_spill] sm:$0xff]  ;;  %v10343_v34 = vld [vmem:[#allocation36_spill] sm:$0xff] }
 0x2e7   :  { %v2821_v32 = vmul.f32 %v2570_v47, %v7623_v12  ;;  %v2092_v31 = vadd.f32 %v10337_v9, %v10336_v61  ;;  %v8189_v0 = vadd.f32 %v1936_v50, %v10338_v14  ;;  %v8192_v16 = vadd.f32 %v1937_v23, %v10340_v37  ;;  %3020 = vst [vmem:[%s8904_s3 + $0x300] sm:$0xff] %v2804_v52  ;;  %v2558_v23 = vpop.permute.xlu1 %2557  ;;  %v10344_v52 = vld [vmem:[#allocation153_spill] sm:$0xff]  ;;  %v10346_v61 = vld [vmem:[#allocation32_spill] sm:$0xff] }
 0x2e8   :  { %v1933_v57 = vmul.f32 %v9890_v48, %v10342_v2  ;;  %v1934_v4 = vmul.f32 %v9893_v1, %v10342_v2  ;;  %3021 = vst [vmem:[%s8904_s3 + $0x308] sm:$0xff] %v2805_v11  ;;  %3022 = vst [vmem:[%s8904_s3 + $0x310] sm:$0xff] %v2806_v58  ;;  %v1935_v42 = vmul.f32 %v9894_v60, %v10342_v2  ;;  %v10345_v11 = vld [vmem:[#allocation104_spill] sm:$0xff] }
 0x2e9   :  { %10339 = vst [vmem:[#allocation231_spill] sm:$0xff] %v8189_v0  ;;  %10341 = vst [vmem:[#allocation72_spill] sm:$0xff] %v8192_v16  ;;  %v1942_v12 = vmul.f32 %v9890_v48, %v10343_v34  ;;  %v1943_v50 = vmul.f32 %v9893_v1, %v10343_v34  ;;  %v2093_v35 = vadd.f32 %v10345_v11, %v10344_v52  ;;  %v2578_v37 = vpop.permute.xlu0 %2577  ;;  %v10348_v16 = vld [vmem:[#allocation149_spill] sm:$0xff]  ;;  %v10349_v0 = vld [vmem:[#allocation28_spill] sm:$0xff] }
 0x2ea   :  { %3035 = vst [vmem:[%s8904_s3 + $0x378] sm:$0xff] %v2819_v40  ;;  %3036 = vst [vmem:[%s8904_s3 + $0x380] sm:$0xff] %v2820_v41  ;;  %v1944_v58 = vmul.f32 %v9894_v60, %v10343_v34  ;;  %v2810_v47 = vmul.f32 %v2558_v23, %v7626_v28  ;;  %v2811_v9 = vmul.f32 %v2558_v23, %v10346_v61  ;;  %v10347_v40 = vld [vmem:[#allocation95_spill] sm:$0xff]  ;;  %v10350_v52 = vld [vmem:[#allocation194_spill] sm:$0xff] }
 0x2eb   :  { %3037 = vst [vmem:[%s8904_s3 + $0x388] sm:$0xff] %v2821_v32  ;;  %v2812_v14 = vmul.f32 %v2558_v23, %v10347_v40  ;;  %v2825_v41 = vmul.f32 %v2578_v37, %v7707_v33  ;;  %v2826_v2 = vmul.f32 %v2578_v37, %v7710_v6  ;;  %v2827_v32 = vmul.f32 %v2578_v37, %v7760_v8  ;;  %v10351_v34 = vld [vmem:[#allocation189_spill] sm:$0xff]  ;;  %v10353_v6 = vld [vmem:[#allocation198_spill] sm:$0xff] }
 0x2ec   :  { %v2094_v62 = vadd.f32 %v10349_v0, %v10348_v16  ;;  %v8235_v11 = vadd.f32 %v1938_v3, %v10350_v52  ;;  %v8238_v13 = vadd.f32 %v1933_v57, %v10351_v34  ;;  %v10352_v28 = vld [vmem:[#allocation197_spill] sm:$0xff]  ;;  %3026 = vst [vmem:[%s8904_s3 + $0x330] sm:$0xff] %v2810_v47  ;;  %3027 = vst [vmem:[%s8904_s3 + $0x338] sm:$0xff] %v2811_v9  ;;  %v10355_v16 = vld [vmem:[#allocation199_spill] sm:$0xff] }
 0x2ed   :  { %v8241_v61 = vadd.f32 %v1934_v4, %v10352_v28  ;;  %3028 = vst [vmem:[%s8904_s3 + $0x340] sm:$0xff] %v2812_v14  ;;  %v2324_v33 = vadd.f32 %v9921_v17, %v2092_v31  ;;  %v8254_v8 = vadd.f32 %v1935_v42, %v10353_v6  ;;  %v10354_v3 = vld [vmem:[#allocation9_spill] sm:$0xff]  ;;  %v8260_v57 = vadd.f32 %v1943_v50, %v10355_v16  ;;  %v2566_v31 = vpop.permute.xlu1 %2565  ;;  %v10356_v42 = vld [vmem:[#allocation66_spill] sm:$0xff]  ;;  %v2586_v9 = vpop.permute.xlu0 %2585 }
 0x2ee   :  { %v8257_v0 = vadd.f32 %v1942_v12, %v10354_v3  ;;  %3041 = vst [vmem:[%s8904_s3 + $0x3a8] sm:$0xff] %v2825_v41  ;;  %3042 = vst [vmem:[%s8904_s3 + $0x3b0] sm:$0xff] %v2826_v2  ;;  %v2325_v4 = vadd.f32 %v9924_v20, %v2093_v35  ;;  %v8273_v12 = vadd.f32 %v1944_v58, %v10356_v42  ;;  %v10357_v2 = vld [vmem:[#allocation110_spill] sm:$0xff]  ;;  %v10363_v42 = vld [vmem:[#allocation51_spill] sm:$0xff] }
 0x2ef   :  { %3043 = vst [vmem:[%s8904_s3 + $0x3b8] sm:$0xff] %v2827_v32  ;;  %v2816_v50 = vmul.f32 %v2566_v31, %v7782_v27  ;;  %v2817_v23 = vmul.f32 %v2566_v31, %v7794_v63  ;;  %v2818_v47 = vmul.f32 %v2566_v31, %v7837_v53  ;;  %v2831_v40 = vmul.f32 %v2586_v9, %v7923_v5  ;;  %v10358_v27 = vld [vmem:[#allocation158_spill] sm:$0xff]  ;;  %v10359_v5 = vld [vmem:[#allocation43_spill] sm:$0xff] }
 0x2f0   :  { %v2832_v14 = vmul.f32 %v2586_v9, %v7926_v56  ;;  %v2833_v37 = vmul.f32 %v2586_v9, %v7929_v55  ;;  %v2326_v41 = vadd.f32 %v9925_v44, %v2094_v62  ;;  %v1939_v35 = vmul.f32 %v9890_v48, %v10357_v2  ;;  %v10361_v52 = vld [vmem:[#allocation162_spill] sm:$0xff]  ;;  %v10362_v31 = vld [vmem:[#allocation63_spill] sm:$0xff] }
 0x2f1   :  { %v1940_v58 = vmul.f32 %v9893_v1, %v10357_v2  ;;  %v1941_v63 = vmul.f32 %v9894_v60, %v10357_v2  ;;  %3032 = vst [vmem:[%s8904_s3 + $0x360] sm:$0xff] %v2816_v50  ;;  %3033 = vst [vmem:[%s8904_s3 + $0x368] sm:$0xff] %v2817_v23  ;;  %v2107_v53 = vadd.f32 %v7651_v10, %v10358_v27  ;;  %v2574_v62 = vpop.permute.xlu1 %2573  ;;  %v10360_v10 = vld [vmem:[#allocation159_spill] sm:$0xff]  ;;  %v2594_v16 = vpop.permute.xlu0 %2593  ;;  %v10370_v2 = vld [vmem:[#allocation202_spill] sm:$0xff] }
 0x2f2   :  { %3034 = vst [vmem:[%s8904_s3 + $0x370] sm:$0xff] %v2818_v47  ;;  %v1948_v56 = vmul.f32 %v9890_v48, %v10359_v5  ;;  %v1949_v55 = vmul.f32 %v9893_v1, %v10359_v5  ;;  %3047 = vst [vmem:[%s8904_s3 + $0x3d8] sm:$0xff] %v2831_v40  ;;  %v2108_v32 = vadd.f32 %v7668_v36, %v10360_v10  ;;  %v10364_v36 = vld [vmem:[#allocation156_spill] sm:$0xff] }
 0x2f3   :  { %3048 = vst [vmem:[%s8904_s3 + $0x3e0] sm:$0xff] %v2832_v14  ;;  %3049 = vst [vmem:[%s8904_s3 + $0x3e8] sm:$0xff] %v2833_v37  ;;  %v2109_v34 = vadd.f32 %v7672_v21, %v10361_v52  ;;  %v2822_v28 = vmul.f32 %v2574_v62, %v8007_v19  ;;  %v2823_v6 = vmul.f32 %v2574_v62, %v8028_v25  ;;  %v10365_v40 = vld [vmem:[#allocation84_spill] sm:$0xff]  ;;  %v10366_v21 = vld [vmem:[#allocation195_spill] sm:$0xff] }
 0x2f4   :  { %v2824_v3 = vmul.f32 %v2574_v62, %v8074_v46  ;;  %v2098_v50 = vadd.f32 %v10363_v42, %v10362_v31  ;;  %v2837_v23 = vmul.f32 %v2594_v16, %v8152_v15  ;;  %v2838_v47 = vmul.f32 %v2594_v16, %v8155_v22  ;;  %v10367_v19 = vld [vmem:[#allocation201_spill] sm:$0xff]  ;;  %v10368_v15 = vld [vmem:[#allocation62_spill] sm:$0xff] }
 0x2f5   :  { %v2839_v9 = vmul.f32 %v2594_v16, %v8175_v49  ;;  %v2099_v14 = vadd.f32 %v10365_v40, %v10364_v36  ;;  %v8327_v37 = vadd.f32 %v1939_v35, %v10366_v21  ;;  %v8330_v25 = vadd.f32 %v1940_v58, %v10367_v19  ;;  %3038 = vst [vmem:[%s8904_s3 + $0x390] sm:$0xff] %v2822_v28  ;;  %v10369_v22 = vld [vmem:[#allocation98_spill] sm:$0xff]  ;;  %v2582_v58 = vpop.permute.xlu1 %2581  ;;  %v2602_v28 = vpop.permute.xlu0 %2601  ;;  %v10377_v36 = vld [vmem:[#allocation205_spill] sm:$0xff] }
 0x2f6   :  { %v1950_v46 = vmul.f32 %v9894_v60, %v10359_v5  ;;  %3039 = vst [vmem:[%s8904_s3 + $0x398] sm:$0xff] %v2823_v6  ;;  %3040 = vst [vmem:[%s8904_s3 + $0x3a0] sm:$0xff] %v2824_v3  ;;  %v2100_v49 = vadd.f32 %v10369_v22, %v10368_v15  ;;  %v8346_v35 = vadd.f32 %v1941_v63, %v10370_v2  ;;  %v10378_v21 = vld [vmem:[#allocation57_spill] sm:$0xff] }
 0x2f7   :  { %3053 = vst [vmem:[%s8904_s3 + $0x408] sm:$0xff] %v2837_v23  ;;  %3054 = vst [vmem:[%s8904_s3 + $0x410] sm:$0xff] %v2838_v47  ;;  %v2339_v27 = vadd.f32 %v9921_v17, %v2107_v53  ;;  %v2340_v5 = vadd.f32 %v9924_v20, %v2108_v32  ;;  %v2341_v63 = vadd.f32 %v9925_v44, %v2109_v34  ;;  %v10373_v32 = vld [vmem:[#allocation161_spill] sm:$0xff]  ;;  %v10374_v34 = vld [vmem:[#allocation54_spill] sm:$0xff] }
 0x2f8   :  { %3055 = vst [vmem:[%s8904_s3 + $0x418] sm:$0xff] %v2839_v9  ;;  %v2828_v62 = vmul.f32 %v2582_v58, %v2324_v33  ;;  %v2829_v10 = vmul.f32 %v2582_v58, %v2325_v4  ;;  %v2830_v52 = vmul.f32 %v2582_v58, %v2326_v41  ;;  %v2330_v6 = vadd.f32 %v9921_v17, %v2098_v50  ;;  %v10371_v4 = vld [vmem:[#allocation160_spill] sm:$0xff]  ;;  %v10372_v41 = vld [vmem:[#allocation218_spill] sm:$0xff]  ;;  %v10375_v23 = vld [vmem:[#allocation157_spill] sm:$0xff] }
 0x2f9   :  { %v2843_v3 = vmul.f32 %v2602_v28, %v2339_v27  ;;  %v2844_v16 = vmul.f32 %v2602_v28, %v2340_v5  ;;  %v2845_v31 = vmul.f32 %v2602_v28, %v2341_v63  ;;  %v2331_v42 = vadd.f32 %v9924_v20, %v2099_v14  ;;  %v10376_v47 = vld [vmem:[#allocation117_spill] sm:$0xff]  ;;  %v2590_v14 = vpop.permute.xlu1 %2589 }
 0x2fa   :  { %3044 = vst [vmem:[%s8904_s3 + $0x3c0] sm:$0xff] %v2828_v62  ;;  %3045 = vst [vmem:[%s8904_s3 + $0x3c8] sm:$0xff] %v2829_v10  ;;  %v2332_v33 = vadd.f32 %v9925_v44, %v2100_v49  ;;  %v2104_v53 = vadd.f32 %v10372_v41, %v10371_v4  ;;  %v2105_v50 = vadd.f32 %v10374_v34, %v10373_v32  ;;  %v10379_v15 = vld [vmem:[#allocation225_spill] sm:$0xff]  ;;  %v2610_v62 = vpop.permute.xlu0 %2609  ;;  %v10382_v10 = vld [vmem:[#allocation203_spill] sm:$0xff] }
 0x2fb   :  { %3046 = vst [vmem:[%s8904_s3 + $0x3d0] sm:$0xff] %v2830_v52  ;;  %v2106_v9 = vadd.f32 %v10376_v47, %v10375_v23  ;;  %v8379_v40 = vadd.f32 %v1948_v56, %v10377_v36  ;;  %3059 = vst [vmem:[%s8904_s3 + $0x438] sm:$0xff] %v2843_v3  ;;  %v2345_v19 = vadd.f32 %v9921_v17, %v10378_v21  ;;  %v10380_v22 = vld [vmem:[#allocation129_spill] sm:$0xff]  ;;  %v10385_v34 = vld [vmem:[#allocation100_spill] sm:$0xff] }
 0x2fc   :  { %3060 = vst [vmem:[%s8904_s3 + $0x440] sm:$0xff] %v2844_v16  ;;  %3061 = vst [vmem:[%s8904_s3 + $0x448] sm:$0xff] %v2845_v31  ;;  %v2346_v56 = vadd.f32 %v9924_v20, %v10379_v15  ;;  %v2347_v49 = vadd.f32 %v9925_v44, %v10380_v22  ;;  %v10381_v2 = vld [vmem:[#allocation65_spill] sm:$0xff]  ;;  %v2834_v27 = vmul.f32 %v2590_v14, %v2330_v6  ;;  %v10383_v31 = vld [vmem:[#allocation78_spill] sm:$0xff] }
 0x2fd   :  { %v8397_v58 = vadd.f32 %v1949_v55, %v10381_v2  ;;  %v2835_v5 = vmul.f32 %v2590_v14, %v2331_v42  ;;  %v2836_v63 = vmul.f32 %v2590_v14, %v2332_v33  ;;  %v8400_v52 = vadd.f32 %v1950_v46, %v10382_v10  ;;  %v2598_v33 = vpop.permute.xlu1 %2597  ;;  %v10386_v21 = vld [vmem:[#allocation85_spill] sm:$0xff] }
 0x2fe   :  { %v2849_v28 = vmul.f32 %v2610_v62, %v2345_v19  ;;  %v2850_v3 = vmul.f32 %v2610_v62, %v2346_v56  ;;  %v2851_v16 = vmul.f32 %v2610_v62, %v2347_v49  ;;  %v1945_v4 = vmul.f32 %v9890_v48, %v10383_v31  ;;  %3050 = vst [vmem:[%s8904_s3 + $0x3f0] sm:$0xff] %v2834_v27  ;;  %v2618_v14 = vpop.permute.xlu0 %2617  ;;  %v10387_v49 = vld [vmem:[#allocation229_spill] sm:$0xff]  ;;  %v10388_v27 = vld [vmem:[#allocation127_spill] sm:$0xff] }
 0x2ff   :  { %3051 = vst [vmem:[%s8904_s3 + $0x3f8] sm:$0xff] %v2835_v5  ;;  %3052 = vst [vmem:[%s8904_s3 + $0x400] sm:$0xff] %v2836_v63  ;;  %v2336_v55 = vadd.f32 %v9921_v17, %v2104_v53  ;;  %v2337_v46 = vadd.f32 %v9924_v20, %v2105_v50  ;;  %v2338_v6 = vadd.f32 %v9925_v44, %v2106_v9  ;;  %v10384_v53 = vld [vmem:[#allocation223_spill] sm:$0xff]  ;;  %v10389_v63 = vld [vmem:[#allocation226_spill] sm:$0xff] }
 0x300   :  { %v1946_v42 = vmul.f32 %v9893_v1, %v10383_v31  ;;  %3065 = vst [vmem:[%s8904_s3 + $0x468] sm:$0xff] %v2849_v28  ;;  %3066 = vst [vmem:[%s8904_s3 + $0x470] sm:$0xff] %v2850_v3  ;;  %v2351_v41 = vadd.f32 %v9921_v17, %v7845_v51  ;;  %v2352_v32 = vadd.f32 %v9924_v20, %v10384_v53 }
 0x301   :  { %3067 = vst [vmem:[%s8904_s3 + $0x478] sm:$0xff] %v2851_v16  ;;  %v2353_v50 = vadd.f32 %v9925_v44, %v10385_v34  ;;  %v1947_v23 = vmul.f32 %v9894_v60, %v10383_v31  ;;  %v2840_v47 = vmul.f32 %v2598_v33, %v2336_v55  ;;  %v2841_v9 = vmul.f32 %v2598_v33, %v2337_v46  ;;  %v2606_v28 = vpop.permute.xlu1 %2605  ;;  %v10390_v55 = vld [vmem:[#allocation6_spill] sm:$0xff] }
 0x302   :  { %v2842_v36 = vmul.f32 %v2598_v33, %v2338_v6  ;;  %v1954_v19 = vmul.f32 %v9890_v48, %v10386_v21  ;;  %v2855_v15 = vmul.f32 %v2618_v14, %v2351_v41  ;;  %v2856_v56 = vmul.f32 %v2618_v14, %v2352_v32  ;;  %v2626_v53 = vpop.permute.xlu0 %2625  ;;  %v10391_v32 = vld [vmem:[#allocation200_spill] sm:$0xff] }
 0x303   :  { %v2857_v22 = vmul.f32 %v2618_v14, %v2353_v50  ;;  %v1955_v51 = vmul.f32 %v9893_v1, %v10386_v21  ;;  %3056 = vst [vmem:[%s8904_s3 + $0x420] sm:$0xff] %v2840_v47  ;;  %3057 = vst [vmem:[%s8904_s3 + $0x428] sm:$0xff] %v2841_v9  ;;  %v2342_v2 = vadd.f32 %v9921_v17, %v10387_v49  ;;  %v10397_v49 = vld [vmem:[#allocation17_spill] sm:$0xff] }
 0x304   :  { %3058 = vst [vmem:[%s8904_s3 + $0x430] sm:$0xff] %v2842_v36  ;;  %v2343_v5 = vadd.f32 %v9924_v20, %v10388_v27  ;;  %v2344_v62 = vadd.f32 %v9925_v44, %v10389_v63  ;;  %v1956_v10 = vmul.f32 %v9894_v60, %v10386_v21  ;;  %3071 = vst [vmem:[%s8904_s3 + $0x498] sm:$0xff] %v2855_v15  ;;  %v10396_v21 = vld [vmem:[#allocation210_spill] sm:$0xff]  ;;  %v10398_v27 = vld [vmem:[#allocation211_spill] sm:$0xff] }
 0x305   :  { %3072 = vst [vmem:[%s8904_s3 + $0x4a0] sm:$0xff] %v2856_v56  ;;  %3073 = vst [vmem:[%s8904_s3 + $0x4a8] sm:$0xff] %v2857_v22  ;;  %v2357_v3 = vadd.f32 %v9921_v17, %v7932_v59  ;;  %v2358_v16 = vadd.f32 %v9924_v20, %v7938_v43  ;;  %v2359_v31 = vadd.f32 %v9925_v44, %v7944_v38  ;;  %v10392_v59 = vld [vmem:[#allocation206_spill] sm:$0xff]  ;;  %v2614_v56 = vpop.permute.xlu1 %2613 }
 0x306   :  { %v8472_v46 = vadd.f32 %v1945_v4, %v10390_v55  ;;  %v2846_v6 = vmul.f32 %v2606_v28, %v2342_v2  ;;  %v2847_v33 = vmul.f32 %v2606_v28, %v2343_v5  ;;  %v2848_v41 = vmul.f32 %v2606_v28, %v2344_v62  ;;  %v10393_v38 = vld [vmem:[#allocation130_spill] sm:$0xff]  ;;  %v10394_v4 = vld [vmem:[#allocation131_spill] sm:$0xff] }
 0x307   :  { %v8475_v34 = vadd.f32 %v1946_v42, %v10391_v32  ;;  %v2861_v50 = vmul.f32 %v2626_v53, %v2357_v3  ;;  %v2862_v47 = vmul.f32 %v2626_v53, %v2358_v16  ;;  %v2863_v9 = vmul.f32 %v2626_v53, %v2359_v31  ;;  %v2634_v3 = vpop.permute.xlu0 %2633  ;;  %v10399_v16 = vld [vmem:[#allocation208_spill] sm:$0xff]  ;;  %v10403_v32 = vld [vmem:[#allocation222_spill] sm:$0xff] }
 0x308   :  { %v8478_v36 = vadd.f32 %v1947_v23, %v10392_v59  ;;  %3062 = vst [vmem:[%s8904_s3 + $0x450] sm:$0xff] %v2846_v6  ;;  %3063 = vst [vmem:[%s8904_s3 + $0x458] sm:$0xff] %v2847_v33  ;;  %v2348_v43 = vadd.f32 %v9921_v17, %v10393_v38  ;;  %v2349_v42 = vadd.f32 %v9924_v20, %v10394_v4  ;;  %v10395_v23 = vld [vmem:[#allocation53_spill] sm:$0xff] }
 0x309   :  { %3064 = vst [vmem:[%s8904_s3 + $0x460] sm:$0xff] %v2848_v41  ;;  %v2350_v14 = vadd.f32 %v9925_v44, %v10395_v23  ;;  %v8496_v15 = vadd.f32 %v1954_v19, %v10396_v21  ;;  %3077 = vst [vmem:[%s8904_s3 + $0x4c8] sm:$0xff] %v2861_v50  ;;  %v2363_v22 = vadd.f32 %v9921_v17, %v8010_v7  ;;  %v10400_v7 = vld [vmem:[#allocation87_spill] sm:$0xff] }
 0x30a   :  { %3078 = vst [vmem:[%s8904_s3 + $0x4d0] sm:$0xff] %v2862_v47  ;;  %3079 = vst [vmem:[%s8904_s3 + $0x4d8] sm:$0xff] %v2863_v9  ;;  %v2364_v19 = vadd.f32 %v9924_v20, %v8013_v24  ;;  %v2365_v2 = vadd.f32 %v9925_v44, %v10397_v49  ;;  %v8514_v5 = vadd.f32 %v1955_v51, %v10398_v27  ;;  %v10401_v24 = vld [vmem:[#allocation13_spill] sm:$0xff]  ;;  %v2622_v9 = vpop.permute.xlu1 %2621  ;;  %v10406_v27 = vld [vmem:[#allocation19_spill] sm:$0xff] }
 0x30b   :  { %v2852_v63 = vmul.f32 %v2614_v56, %v2348_v43  ;;  %v2853_v62 = vmul.f32 %v2614_v56, %v2349_v42  ;;  %v2854_v28 = vmul.f32 %v2614_v56, %v2350_v14  ;;  %v8517_v31 = vadd.f32 %v1956_v10, %v10399_v16  ;;  %v10402_v10 = vld [vmem:[#allocation116_spill] sm:$0xff]  ;;  %v2642_v21 = vpop.permute.xlu0 %2641  ;;  %v10404_v56 = vld [vmem:[#allocation118_spill] sm:$0xff] }
 0x30c   :  { %v2867_v55 = vmul.f32 %v2634_v3, %v2363_v22  ;;  %v2868_v6 = vmul.f32 %v2634_v3, %v2364_v19  ;;  %v2869_v33 = vmul.f32 %v2634_v3, %v2365_v2  ;;  %v1951_v41 = vmul.f32 %v9890_v48, %v10400_v7 }
 0x30d   :  { %3068 = vst [vmem:[%s8904_s3 + $0x480] sm:$0xff] %v2852_v63  ;;  %3069 = vst [vmem:[%s8904_s3 + $0x488] sm:$0xff] %v2853_v62  ;;  %v2354_v51 = vadd.f32 %v9921_v17, %v10401_v24  ;;  %v2355_v53 = vadd.f32 %v9924_v20, %v10402_v10  ;;  %v2356_v50 = vadd.f32 %v9925_v44, %v10403_v32  ;;  %v10407_v62 = vld [vmem:[#allocation144_spill] sm:$0xff] }
 0x30e   :  { %3070 = vst [vmem:[%s8904_s3 + $0x490] sm:$0xff] %v2854_v28  ;;  %v1952_v47 = vmul.f32 %v9893_v1, %v10400_v7  ;;  %3083 = vst [vmem:[%s8904_s3 + $0x4f8] sm:$0xff] %v2867_v55  ;;  %v2369_v59 = vadd.f32 %v9921_v17, %v8089_v39  ;;  %v2370_v38 = vadd.f32 %v9924_v20, %v8092_v30  ;;  %v10405_v30 = vld [vmem:[#allocation236_spill] sm:$0xff]  ;;  %v2630_v16 = vpop.permute.xlu1 %2629 }
 0x30f   :  { %3084 = vst [vmem:[%s8904_s3 + $0x500] sm:$0xff] %v2868_v6  ;;  %3085 = vst [vmem:[%s8904_s3 + $0x508] sm:$0xff] %v2869_v33  ;;  %v2371_v43 = vadd.f32 %v9925_v44, %v8095_v26  ;;  %v1953_v4 = vmul.f32 %v9894_v60, %v10400_v7  ;;  %v2858_v42 = vmul.f32 %v2622_v9, %v2354_v51  ;;  %v10408_v7 = vld [vmem:[#allocation204_spill] sm:$0xff]  ;;  %v2650_v32 = vpop.permute.xlu0 %2649 }
 0x310   :  { %v2859_v23 = vmul.f32 %v2622_v9, %v2355_v53  ;;  %v2860_v14 = vmul.f32 %v2622_v9, %v2356_v50  ;;  %v1960_v22 = vmul.f32 %v9890_v48, %v10404_v56  ;;  %v2873_v19 = vmul.f32 %v2642_v21, %v2369_v59  ;;  %v10409_v50 = vld [vmem:[#allocation68_spill] sm:$0xff] }
 0x311   :  { %v2874_v49 = vmul.f32 %v2642_v21, %v2370_v38  ;;  %v2875_v2 = vmul.f32 %v2642_v21, %v2371_v43  ;;  %v1961_v39 = vmul.f32 %v9893_v1, %v10404_v56  ;;  %3074 = vst [vmem:[%s8904_s3 + $0x4b0] sm:$0xff] %v2858_v42  ;;  %v2360_v26 = vadd.f32 %v9921_v17, %v10405_v30 }
 0x312   :  { %3075 = vst [vmem:[%s8904_s3 + $0x4b8] sm:$0xff] %v2859_v23  ;;  %3076 = vst [vmem:[%s8904_s3 + $0x4c0] sm:$0xff] %v2860_v14  ;;  %v2361_v63 = vadd.f32 %v9924_v20, %v10406_v27  ;;  %v2362_v28 = vadd.f32 %v9925_v44, %v10407_v62  ;;  %v8576_v3 = vmul.f32 %v9894_v60, %v10404_v56  ;;  %v10414_v14 = vld [vmem:[#allocation70_spill] sm:$0xff]  ;;  %v2638_v56 = vpop.permute.xlu1 %2637 }
 0x313   :  { %3089 = vst [vmem:[%s8904_s3 + $0x528] sm:$0xff] %v2873_v19  ;;  %3090 = vst [vmem:[%s8904_s3 + $0x530] sm:$0xff] %v2874_v49  ;;  %v2375_v55 = vadd.f32 %v9921_v17, %v8158_v54  ;;  %v2376_v6 = vadd.f32 %v9924_v20, %v8161_v45  ;;  %v2377_v33 = vadd.f32 %v9925_v44, %v8178_v18  ;;  %v10410_v54 = vld [vmem:[#allocation67_spill] sm:$0xff]  ;;  %v10411_v45 = vld [vmem:[#allocation134_spill] sm:$0xff]  ;;  %v2658_v62 = vpop.permute.xlu0 %2657 }
 0x314   :  { %3091 = vst [vmem:[%s8904_s3 + $0x538] sm:$0xff] %v2875_v2  ;;  %v8594_v24 = vadd.f32 %v1951_v41, %v10408_v7  ;;  %v2864_v51 = vmul.f32 %v2630_v16, %v2360_v26  ;;  %v2865_v10 = vmul.f32 %v2630_v16, %v2361_v63  ;;  %v2866_v53 = vmul.f32 %v2630_v16, %v2362_v28  ;;  %v10412_v41 = vld [vmem:[#allocation14_spill] sm:$0xff]  ;;  %v10418_v7 = vld [vmem:[#allocation55_spill] sm:$0xff] }
 0x315   :  { %v8597_v9 = vadd.f32 %v1952_v47, %v10409_v50  ;;  %v2879_v59 = vmul.f32 %v2650_v32, %v2375_v55  ;;  %v2880_v38 = vmul.f32 %v2650_v32, %v2376_v6  ;;  %v2881_v43 = vmul.f32 %v2650_v32, %v2377_v33  ;;  %v10415_v2 = vld [vmem:[#allocation122_spill] sm:$0xff] }
 0x316   :  { %v8600_v42 = vadd.f32 %v1953_v4, %v10410_v54  ;;  %3080 = vst [vmem:[%s8904_s3 + $0x4e0] sm:$0xff] %v2864_v51  ;;  %3081 = vst [vmem:[%s8904_s3 + $0x4e8] sm:$0xff] %v2865_v10  ;;  %v2366_v18 = vadd.f32 %v9921_v17, %v10411_v45  ;;  %v2367_v47 = vadd.f32 %v9924_v20, %v10412_v41  ;;  %v10413_v4 = vld [vmem:[#allocation227_spill] sm:$0xff]  ;;  %v2646_v32 = vpop.permute.xlu1 %2645 }
 0x317   :  { %3082 = vst [vmem:[%s8904_s3 + $0x4f0] sm:$0xff] %v2866_v53  ;;  %v2368_v23 = vadd.f32 %v9925_v44, %v10413_v4  ;;  %v8618_v21 = vadd.f32 %v1960_v22, %v10414_v14  ;;  %3095 = vst [vmem:[%s8904_s3 + $0x558] sm:$0xff] %v2879_v59  ;;  %v2381_v19 = vadd.f32 %v9921_v17, %v8238_v13  ;;  %v10416_v13 = vld [vmem:[#allocation215_spill] sm:$0xff]  ;;  %v10421_v4 = vld [vmem:[#allocation209_spill] sm:$0xff] }
 0x318   :  { %3096 = vst [vmem:[%s8904_s3 + $0x560] sm:$0xff] %v2880_v38  ;;  %3097 = vst [vmem:[%s8904_s3 + $0x568] sm:$0xff] %v2881_v43  ;;  %v2382_v22 = vadd.f32 %v9924_v20, %v8241_v61  ;;  %v2383_v49 = vadd.f32 %v9925_v44, %v8254_v8  ;;  %v1957_v30 = vmul.f32 %v9890_v48, %v10415_v2  ;;  %v10417_v61 = vld [vmem:[#allocation114_spill] sm:$0xff]  ;;  %v10420_v43 = vld [vmem:[#allocation109_spill] sm:$0xff] }
 0x319   :  { %v2870_v26 = vmul.f32 %v2638_v56, %v2366_v18  ;;  %v2871_v27 = vmul.f32 %v2638_v56, %v2367_v47  ;;  %v2872_v63 = vmul.f32 %v2638_v56, %v2368_v23  ;;  %v1958_v28 = vmul.f32 %v9893_v1, %v10415_v2  ;;  %v2666_v47 = vpop.permute.xlu0 %2665 }
 0x31a   :  { %v2885_v16 = vmul.f32 %v2658_v62, %v2381_v19  ;;  %v2886_v55 = vmul.f32 %v2658_v62, %v2382_v22  ;;  %v2887_v6 = vmul.f32 %v2658_v62, %v2383_v49  ;;  %v8640_v33 = vadd.f32 %v1961_v39, %v10416_v13  ;;  %v10419_v39 = vld [vmem:[#allocation232_spill] sm:$0xff] }
 0x31b   :  { %3086 = vst [vmem:[%s8904_s3 + $0x510] sm:$0xff] %v2870_v26  ;;  %3087 = vst [vmem:[%s8904_s3 + $0x518] sm:$0xff] %v2871_v27  ;;  %v2372_v8 = vadd.f32 %v9921_v17, %v10417_v61  ;;  %v2373_v51 = vadd.f32 %v9924_v20, %v10418_v7  ;;  %v2374_v10 = vadd.f32 %v9925_v44, %v10419_v39  ;;  %v10425_v61 = vld [vmem:[#allocation214_spill] sm:$0xff] }
 0x31c   :  { %3088 = vst [vmem:[%s8904_s3 + $0x520] sm:$0xff] %v2872_v63  ;;  %v1959_v53 = vmul.f32 %v9894_v60, %v10415_v2  ;;  %3101 = vst [vmem:[%s8904_s3 + $0x588] sm:$0xff] %v2885_v16  ;;  %v2387_v50 = vadd.f32 %v9921_v17, %v8327_v37  ;;  %v2388_v59 = vadd.f32 %v9924_v20, %v8330_v25  ;;  %v10422_v37 = vld [vmem:[#allocation119_spill] sm:$0xff]  ;;  %v10424_v2 = vld [vmem:[#allocation97_spill] sm:$0xff] }
 0x31d   :  { %3102 = vst [vmem:[%s8904_s3 + $0x590] sm:$0xff] %v2886_v55  ;;  %3103 = vst [vmem:[%s8904_s3 + $0x598] sm:$0xff] %v2887_v6  ;;  %v2389_v38 = vadd.f32 %v9925_v44, %v8346_v35  ;;  %v8675_v54 = vadd.f32 %v1957_v30, %v10420_v43  ;;  %v2876_v45 = vmul.f32 %v2646_v32, %v2372_v8  ;;  %v10423_v35 = vld [vmem:[#allocation233_spill] sm:$0xff]  ;;  %v2674_v13 = vpop.permute.xlu0 %2673 }
 0x31e   :  { %v2877_v18 = vmul.f32 %v2646_v32, %v2373_v51  ;;  %v2878_v41 = vmul.f32 %v2646_v32, %v2374_v10  ;;  %v8678_v23 = vadd.f32 %v1958_v28, %v10421_v4  ;;  %v2891_v14 = vmul.f32 %v2666_v47, %v2387_v50  ;;  %v10426_v10 = vld [vmem:[#allocation212_spill] sm:$0xff] }
 0x31f   :  { %v2892_v56 = vmul.f32 %v2666_v47, %v2388_v59  ;;  %v2893_v19 = vmul.f32 %v2666_v47, %v2389_v38  ;;  %v1963_v22 = vmul.f32 %v9890_v48, %v10422_v37  ;;  %3092 = vst [vmem:[%s8904_s3 + $0x540] sm:$0xff] %v2876_v45  ;;  %v2378_v25 = vadd.f32 %v9921_v17, %v8109_v29  ;;  %v2654_v29 = vpop.permute.xlu1 %2653  ;;  %v10429_v59 = vld [vmem:[#allocation10_spill] sm:$0xff] }
 0x320   :  { %3093 = vst [vmem:[%s8904_s3 + $0x548] sm:$0xff] %v2877_v18  ;;  %3094 = vst [vmem:[%s8904_s3 + $0x550] sm:$0xff] %v2878_v41  ;;  %v2379_v49 = vadd.f32 %v9924_v20, %v10423_v35  ;;  %v2380_v30 = vadd.f32 %v9925_v44, %v10424_v2  ;;  %v1964_v26 = vmul.f32 %v9893_v1, %v10422_v37  ;;  %v10430_v41 = vld [vmem:[#allocation213_spill] sm:$0xff] }
 0x321   :  { %3107 = vst [vmem:[%s8904_s3 + $0x5b8] sm:$0xff] %v2891_v14  ;;  %3108 = vst [vmem:[%s8904_s3 + $0x5c0] sm:$0xff] %v2892_v56  ;;  %v2393_v27 = vadd.f32 %v9921_v17, %v8472_v46  ;;  %v2394_v63 = vadd.f32 %v9924_v20, %v8475_v34  ;;  %v2395_v62 = vadd.f32 %v9925_v44, %v8478_v36  ;;  %v10427_v34 = vld [vmem:[#allocation231_spill] sm:$0xff] }
 0x322   :  { %3109 = vst [vmem:[%s8904_s3 + $0x5c8] sm:$0xff] %v2893_v19  ;;  %v1965_v28 = vmul.f32 %v9894_v60, %v10422_v37  ;;  %v2882_v16 = vmul.f32 %v2654_v29, %v2378_v25  ;;  %v2883_v55 = vmul.f32 %v2654_v29, %v2379_v49  ;;  %v2884_v6 = vmul.f32 %v2654_v29, %v2380_v30  ;;  %v2682_v19 = vpop.permute.xlu0 %2681  ;;  %v10431_v37 = vld [vmem:[#allocation124_spill] sm:$0xff]  ;;  %v10432_v29 = vld [vmem:[#allocation69_spill] sm:$0xff] }
 0x323   :  { %v2175_v8 = vadd.f32 %v1959_v53, %v10425_v61  ;;  %v2897_v7 = vmul.f32 %v2674_v13, %v2393_v27  ;;  %v2898_v51 = vmul.f32 %v2674_v13, %v2394_v63  ;;  %v2899_v39 = vmul.f32 %v2674_v13, %v2395_v62  ;;  %v10428_v53 = vld [vmem:[#allocation72_spill] sm:$0xff]  ;;  %v2662_v43 = vpop.permute.xlu1 %2661 }
 0x324   :  { %v2179_v46 = vadd.f32 %v1963_v22, %v10426_v10  ;;  %3098 = vst [vmem:[%s8904_s3 + $0x570] sm:$0xff] %v2882_v16  ;;  %3099 = vst [vmem:[%s8904_s3 + $0x578] sm:$0xff] %v2883_v55  ;;  %v2384_v36 = vadd.f32 %v9921_v17, %v10427_v34  ;;  %v2385_v32 = vadd.f32 %v9924_v20, %v10428_v53  ;;  %v10433_v55 = vld [vmem:[#allocation11_spill] sm:$0xff] }
 0x325   :  { %3100 = vst [vmem:[%s8904_s3 + $0x580] sm:$0xff] %v2884_v6  ;;  %v2386_v50 = vadd.f32 %v9925_v44, %v8235_v11  ;;  %v2180_v38 = vadd.f32 %v1964_v26, %v10429_v59  ;;  %3113 = vst [vmem:[%s8904_s3 + $0x5e8] sm:$0xff] %v2897_v7  ;;  %v2399_v45 = vadd.f32 %v9921_v17, %v8594_v24 }
 0x326   :  { %3114 = vst [vmem:[%s8904_s3 + $0x5f0] sm:$0xff] %v2898_v51  ;;  %3115 = vst [vmem:[%s8904_s3 + $0x5f8] sm:$0xff] %v2899_v39  ;;  %v2400_v11 = vadd.f32 %v9924_v20, %v8597_v9  ;;  %v2401_v18 = vadd.f32 %v9925_v44, %v8600_v42  ;;  %v2181_v47 = vadd.f32 %v1965_v28, %v10430_v41  ;;  %v2690_v16 = vpop.permute.xlu0 %2689  ;;  %v10434_v51 = vld [vmem:[#allocation12_spill] sm:$0xff]  ;;  %v10435_v39 = vld [vmem:[#allocation217_spill] sm:$0xff] }
 0x327   :  { %v2888_v4 = vmul.f32 %v2662_v43, %v2384_v36  ;;  %v2889_v14 = vmul.f32 %v2662_v43, %v2385_v32  ;;  %v2890_v56 = vmul.f32 %v2662_v43, %v2386_v50  ;;  %v1969_v22 = vmul.f32 %v9890_v48, %v10431_v37  ;;  %v10436_v36 = vld [vmem:[#allocation123_spill] sm:$0xff] }
 0x328   :  { %v2903_v25 = vmul.f32 %v2682_v19, %v2399_v45  ;;  %v2904_v35 = vmul.f32 %v2682_v19, %v2400_v11  ;;  %v2905_v49 = vmul.f32 %v2682_v19, %v2401_v18  ;;  %v1970_v24 = vmul.f32 %v9893_v1, %v10431_v37 }
 0x329   :  { %3104 = vst [vmem:[%s8904_s3 + $0x5a0] sm:$0xff] %v2888_v4  ;;  %3105 = vst [vmem:[%s8904_s3 + $0x5a8] sm:$0xff] %v2889_v14  ;;  %v2390_v9 = vadd.f32 %v9921_v17, %v8257_v0  ;;  %v2391_v42 = vadd.f32 %v9924_v20, %v8260_v57  ;;  %v2392_v2 = vadd.f32 %v9925_v44, %v8273_v12  ;;  %v2670_v0 = vpop.permute.xlu1 %2669 }
 0x32a   :  { %3106 = vst [vmem:[%s8904_s3 + $0x5b0] sm:$0xff] %v2890_v56  ;;  %v1971_v30 = vmul.f32 %v9894_v60, %v10431_v37  ;;  %3119 = vst [vmem:[%s8904_s3 + $0x618] sm:$0xff] %v2903_v25  ;;  %v2405_v57 = vadd.f32 %v9921_v17, %v8675_v54  ;;  %v2406_v12 = vadd.f32 %v9924_v20, %v8678_v23  ;;  %v2698_v43 = vpop.permute.xlu0 %2697  ;;  %v10439_v56 = vld [vmem:[#allocation113_spill] sm:$0xff] }
 0x32b   :  { %3120 = vst [vmem:[%s8904_s3 + $0x620] sm:$0xff] %v2904_v35  ;;  %3121 = vst [vmem:[%s8904_s3 + $0x628] sm:$0xff] %v2905_v49  ;;  %v2407_v26 = vadd.f32 %v9925_v44, %v2175_v8  ;;  %v8787_v27 = vadd.f32 %v8576_v3, %v10432_v29  ;;  %v2894_v63 = vmul.f32 %v2670_v0, %v2390_v9  ;;  %v10440_v49 = vld [vmem:[#allocation221_spill] sm:$0xff] }
 0x32c   :  { %v2895_v62 = vmul.f32 %v2670_v0, %v2391_v42  ;;  %v2896_v28 = vmul.f32 %v2670_v0, %v2392_v2  ;;  %v2185_v6 = vadd.f32 %v1969_v22, %v10433_v55  ;;  %v2909_v13 = vmul.f32 %v2690_v16, %v2405_v57 }
 0x32d   :  { %v2910_v61 = vmul.f32 %v2690_v16, %v2406_v12  ;;  %v2911_v7 = vmul.f32 %v2690_v16, %v2407_v26  ;;  %v2186_v54 = vadd.f32 %v1970_v24, %v10434_v51  ;;  %3110 = vst [vmem:[%s8904_s3 + $0x5d0] sm:$0xff] %v2894_v63  ;;  %v2396_v3 = vadd.f32 %v9921_v17, %v8379_v40  ;;  %v2678_v40 = vpop.permute.xlu1 %2677 }
 0x32e   :  { %3111 = vst [vmem:[%s8904_s3 + $0x5d8] sm:$0xff] %v2895_v62  ;;  %3112 = vst [vmem:[%s8904_s3 + $0x5e0] sm:$0xff] %v2896_v28  ;;  %v2397_v23 = vadd.f32 %v9924_v20, %v8397_v58  ;;  %v2398_v8 = vadd.f32 %v9925_v44, %v8400_v52  ;;  %v2187_v10 = vadd.f32 %v1971_v30, %v10435_v39  ;;  %v2706_v35 = vpop.permute.xlu0 %2705 }
 0x32f   :  { %3125 = vst [vmem:[%s8904_s3 + $0x648] sm:$0xff] %v2909_v13  ;;  %3126 = vst [vmem:[%s8904_s3 + $0x650] sm:$0xff] %v2910_v61  ;;  %v2411_v58 = vadd.f32 %v9921_v17, %v2179_v46  ;;  %v2412_v34 = vadd.f32 %v9924_v20, %v2180_v38  ;;  %v2413_v52 = vadd.f32 %v9925_v44, %v2181_v47  ;;  %v10437_v38 = vld [vmem:[#allocation228_spill] sm:$0xff]  ;;  %v10438_v47 = vld [vmem:[#allocation219_spill] sm:$0xff] }
 0x330   :  { %3127 = vst [vmem:[%s8904_s3 + $0x658] sm:$0xff] %v2911_v7  ;;  %v1966_v53 = vmul.f32 %v9890_v48, %v10436_v36  ;;  %v2900_v32 = vmul.f32 %v2678_v40, %v2396_v3  ;;  %v2901_v50 = vmul.f32 %v2678_v40, %v2397_v23  ;;  %v2902_v59 = vmul.f32 %v2678_v40, %v2398_v8 }
 0x331   :  { %v1967_v45 = vmul.f32 %v9893_v1, %v10436_v36  ;;  %v2915_v11 = vmul.f32 %v2698_v43, %v2411_v58  ;;  %v2916_v18 = vmul.f32 %v2698_v43, %v2412_v34  ;;  %v2917_v41 = vmul.f32 %v2698_v43, %v2413_v52 }
 0x332   :  { %v1968_v46 = vmul.f32 %v9894_v60, %v10436_v36  ;;  %3116 = vst [vmem:[%s8904_s3 + $0x600] sm:$0xff] %v2900_v32  ;;  %3117 = vst [vmem:[%s8904_s3 + $0x608] sm:$0xff] %v2901_v50  ;;  %v2402_v48 = vadd.f32 %v9921_v17, %v8496_v15  ;;  %v2403_v1 = vadd.f32 %v9924_v20, %v8514_v5  ;;  %v2686_v15 = vpop.permute.xlu1 %2685 }
 0x333   :  { %3118 = vst [vmem:[%s8904_s3 + $0x610] sm:$0xff] %v2902_v59  ;;  %v2404_v60 = vadd.f32 %v9925_v44, %v8517_v31  ;;  %v1437_v4 = vadd.f32 %v10438_v47, %v10437_v38  ;;  %3131 = vst [vmem:[%s8904_s3 + $0x678] sm:$0xff] %v2915_v11  ;;  %v2417_v5 = vadd.f32 %v9921_v17, %v2185_v6 }
 0x334   :  { %3132 = vst [vmem:[%s8904_s3 + $0x680] sm:$0xff] %v2916_v18  ;;  %3133 = vst [vmem:[%s8904_s3 + $0x688] sm:$0xff] %v2917_v41  ;;  %v2418_v31 = vadd.f32 %v9924_v20, %v2186_v54  ;;  %v2419_v14 = vadd.f32 %v9925_v44, %v2187_v10  ;;  %v2182_v19 = vadd.f32 %v1966_v53, %v10439_v56 }
 0x335   :  { %v2906_v37 = vmul.f32 %v2686_v15, %v2402_v48  ;;  %v2907_v22 = vmul.f32 %v2686_v15, %v2403_v1  ;;  %v2908_v25 = vmul.f32 %v2686_v15, %v2404_v60  ;;  %v2183_v24 = vadd.f32 %v1967_v45, %v10440_v49 }
 0x336   :  { %v2921_v9 = vmul.f32 %v2706_v35, %v2417_v5  ;;  %v2922_v42 = vmul.f32 %v2706_v35, %v2418_v31  ;;  %v2923_v2 = vmul.f32 %v2706_v35, %v2419_v14  ;;  %v2184_v30 = vadd.f32 %v1968_v46, %v1437_v4  ;;  %v2694_v26 = vpop.permute.xlu1 %2693 }
 0x337   :  { %3122 = vst [vmem:[%s8904_s3 + $0x630] sm:$0xff] %v2906_v37  ;;  %3123 = vst [vmem:[%s8904_s3 + $0x638] sm:$0xff] %v2907_v22  ;;  %v2408_v0 = vadd.f32 %v9921_v17, %v8618_v21  ;;  %v2409_v57 = vadd.f32 %v9924_v20, %v8640_v33  ;;  %v2410_v12 = vadd.f32 %v9925_v44, %v8787_v27 }
 0x338   :  { %3124 = vst [vmem:[%s8904_s3 + $0x640] sm:$0xff] %v2908_v25  ;;  %3137 = vst [vmem:[%s8904_s3 + $0x6a8] sm:$0xff] %v2921_v9  ;;  %v2414_v33 = vadd.f32 %v9921_v17, %v2182_v19  ;;  %v2415_v27 = vadd.f32 %v9924_v20, %v2183_v24  ;;  %v2416_v62 = vadd.f32 %v9925_v44, %v2184_v30 }
 0x339   :  { %3138 = vst [vmem:[%s8904_s3 + $0x6b0] sm:$0xff] %v2922_v42  ;;  %3139 = vst [vmem:[%s8904_s3 + $0x6b8] sm:$0xff] %v2923_v2  ;;  %v2912_v21 = vmul.f32 %v2694_v26, %v2408_v0  ;;  %v2913_v29 = vmul.f32 %v2694_v26, %v2409_v57  ;;  %v2914_v63 = vmul.f32 %v2694_v26, %v2410_v12 }
 0x33a   :  { %v2702_v28 = vpop.permute.xlu1 %2701 }
 0x33b   :  { %3128 = vst [vmem:[%s8904_s3 + $0x660] sm:$0xff] %v2912_v21  ;;  %3129 = vst [vmem:[%s8904_s3 + $0x668] sm:$0xff] %v2913_v29  ;;  %v2918_v16 = vmul.f32 %v2702_v28, %v2414_v33  ;;  %v2919_v55 = vmul.f32 %v2702_v28, %v2415_v27  ;;  %v2920_v6 = vmul.f32 %v2702_v28, %v2416_v62 }
 0x33c   :  { %3130 = vst [vmem:[%s8904_s3 + $0x670] sm:$0xff] %v2914_v63 }
 0x33d   :  { %3134 = vst [vmem:[%s8904_s3 + $0x690] sm:$0xff] %v2918_v16  ;;  %3135 = vst [vmem:[%s8904_s3 + $0x698] sm:$0xff] %v2919_v55 }
 0x33e   :  { %3136 = vst [vmem:[%s8904_s3 + $0x6a0] sm:$0xff] %v2920_v6 }

</bundles_post_ra>
